<compile_context>
chip_gen: v5e
topology: v5e:2x2
jax: 0.10.0
libtpu: 0.0.40
codegen_flags: <defaults>
</compile_context>

<pallas_src>
import functools

import jax
import jax.numpy as jnp
from jax import lax
from jax.experimental import pallas as pl
from jax.experimental.pallas import tpu as pltpu

BN_EPS = 1e-5
LANE = 128


def _round_up(n, m):
    return ((n + m - 1) // m) * m


# --------------------------------------------------------------------------
# Fused Pallas kernel: the whole PreActBlock for one batch element.
# --------------------------------------------------------------------------
def _preact_block_kernel(x_ref, s1_ref, b1_ref, w1_ref, s2_ref, b2_ref, w2_ref,
                         *rest, stride, has_projection):
    if has_projection:
        wsc_ref, o_ref, pre_pad, a2_pad = rest
    else:
        wsc_ref = None
        o_ref, pre_pad, a2_pad = rest

    _, H, W, Cin = x_ref.shape
    _, Ho, Wo, Cout = o_ref.shape

    def zero_halo(ref, h, w):
        """Zero only the 1-pixel halo ring of a (h+2, w+2, c) padded scratch."""
        c = ref.shape[-1]
        zrow = jnp.zeros((1, w + 2, c), ref.dtype)
        zcol = jnp.zeros((h + 2, 1, c), ref.dtype)
        ref[pl.ds(0, 1), :, :] = zrow
        ref[pl.ds(h + 1, 1), :, :] = zrow
        ref[:, pl.ds(0, 1), :] = zcol
        ref[:, pl.ds(w + 1, 1), :] = zcol

    def conv3x3(pad_ref, w_ref, n0, n1, cin, s):
        """3x3 / pad=1 / stride=s conv as nine accumulating MXU matmuls."""
        acc = None
        for kh in range(3):
            for kw in range(3):
                if s == 1:
                    t = pad_ref[pl.ds(kh, n0), pl.ds(kw, n1), :]
                else:
                    # stride folded into the patch gather (strided VMEM load)
                    t = pad_ref[pl.ds(kh, n0, stride=s), pl.ds(kw, n1, stride=s), :]
                d = jnp.dot(t.reshape(n0 * n1, cin), w_ref[kh * 3 + kw],
                            preferred_element_type=jnp.float32)
                acc = d if acc is None else acc + d
        return acc                                        # (n0*n1, Cout) f32

    # ---- bn1 + relu (fused, f32) ------------------------------------------
    pre = jnp.maximum(x_ref[0].astype(jnp.float32) * s1_ref[...] + b1_ref[...], 0.0)

    # Interior write (cast once to the MXU/scratch dtype); halo ring zeroed.
    zero_halo(pre_pad, H, W)
    pre_pad[pl.ds(1, H), pl.ds(1, W), :] = pre.astype(pre_pad.dtype)

    # ---- conv1: 3x3, stride s ----------------------------------------------
    out1 = conv3x3(pre_pad, w1_ref, Ho, Wo, Cin, stride)

    # ---- bn2 + relu (fused, f32) -------------------------------------------
    a2 = jnp.maximum(out1 * s2_ref[...] + b2_ref[...], 0.0)   # (Ho*Wo, Cout)
    zero_halo(a2_pad, Ho, Wo)
    a2_pad[pl.ds(1, Ho), pl.ds(1, Wo), :] = a2.reshape(Ho, Wo, Cout).astype(a2_pad.dtype)

    # ---- conv2: 3x3, stride 1 ----------------------------------------------
    out2 = conv3x3(a2_pad, w2_ref, Ho, Wo, Cout, 1)

    # ---- shortcut (kept in f32 for residual accuracy) ------------------------
    if has_projection:
        if stride == 1:
            pre_dec = pre.reshape(Ho * Wo, Cin)
        else:
            # Recompute relu(bn1(x)) on the strided taps directly from x (f32),
            # so the residual path never goes through the bf16 scratch.
            x_dec = x_ref[:, pl.ds(0, Ho, stride=stride), pl.ds(0, Wo, stride=stride), :]
            x_dec = x_dec.reshape(Ho * Wo, Cin).astype(jnp.float32)
            pre_dec = jnp.maximum(
                x_dec * s1_ref[...].reshape(1, Cin) + b1_ref[...].reshape(1, Cin), 0.0)
        shortcut = jnp.dot(pre_dec, wsc_ref[...], preferred_element_type=jnp.float32)
    else:
        # Identity shortcut of THIS module: relu(bn1(x)); stride==1, Cin==Cout.
        shortcut = pre.reshape(Ho * Wo, Cout)

    o_ref[...] = (out2 + shortcut).reshape(1, Ho, Wo, Cout).astype(o_ref.dtype)


# --------------------------------------------------------------------------
# Wrapper: one pallas_call for the whole block.
# --------------------------------------------------------------------------
def _fold_bn(gamma, beta, mean, var):
    scale = gamma / jnp.sqrt(var + BN_EPS)
    return scale, beta - mean * scale


def _padc(a, axis, target):
    """Zero-pad axis `axis` of `a` up to length `target`."""
    if a.shape[axis] == target:
        return a
    widths = [(0, 0)] * a.ndim
    widths[axis] = (0, target - a.shape[axis])
    return jnp.pad(a, widths)


def preact_block_forward(params, x_nhwc, stride=1, mxu_dtype=jnp.bfloat16):
    """Fused PreActBlock forward.  x_nhwc: (B, H, W, Cin) float32.

    mxu_dtype: matmul-operand / scratch dtype (bf16 is MXU-native on all
    generations); element-wise BN/ReLU math and accumulation stay in f32.
    """
    B, H, W, Cin = x_nhwc.shape
    planes = params["conv2_w"].shape[3]
    Ho = (H - 1) // stride + 1          # PyTorch conv output size for k=3, pad=1
    Wo = (W - 1) // stride + 1
    has_projection = "shortcut_w" in params
    if not has_projection:
        assert stride == 1 and Cin == planes, (
            "identity shortcut requires stride == 1 and in_planes == planes")

    # Lane-dense channels: zero-pad Cin/Cout to a multiple of 128.  Padded
    # channels are exactly zero through every stage and are sliced off below.
    cin_p = _round_up(Cin, LANE)
    cout_p = _round_up(planes, LANE)

    s1, b1 = _fold_bn(params["bn1_gamma"], params["bn1_beta"],
                      params["bn1_mean"], params["bn1_var"])
    s2, b2 = _fold_bn(params["bn2_gamma"], params["bn2_beta"],
                      params["bn2_mean"], params["bn2_var"])

    x_p = _padc(x_nhwc, 3, cin_p)
    s1_p = _padc(s1, 0, cin_p).reshape(1, 1, cin_p).astype(jnp.float32)
    b1_p = _padc(b1, 0, cin_p).reshape(1, 1, cin_p).astype(jnp.float32)
    s2_p = _padc(s2, 0, cout_p).reshape(1, cout_p).astype(jnp.float32)
    b2_p = _padc(b2, 0, cout_p).reshape(1, cout_p).astype(jnp.float32)

    # HWIO (3,3,Ci,Co) -> (9, Ci_p, Co_p); slab k = kh*3+kw matches tap order.
    w1 = _padc(_padc(params["conv1_w"], 2, cin_p), 3, cout_p)
    w1 = w1.reshape(9, cin_p, cout_p).astype(mxu_dtype)
    w2 = _padc(_padc(params["conv2_w"], 2, cout_p), 3, cout_p)
    w2 = w2.reshape(9, cout_p, cout_p).astype(mxu_dtype)

    inputs = [x_p, s1_p, b1_p, w1, s2_p, b2_p, w2]
    in_specs = [
        pl.BlockSpec((1, H, W, cin_p), lambda b: (b, 0, 0, 0)),
        pl.BlockSpec((1, 1, cin_p), lambda b: (0, 0, 0)),
        pl.BlockSpec((1, 1, cin_p), lambda b: (0, 0, 0)),
        pl.BlockSpec((9, cin_p, cout_p), lambda b: (0, 0, 0)),
        pl.BlockSpec((1, cout_p), lambda b: (0, 0)),
        pl.BlockSpec((1, cout_p), lambda b: (0, 0)),
        pl.BlockSpec((9, cout_p, cout_p), lambda b: (0, 0, 0)),
    ]
    if has_projection:
        wsc = _padc(_padc(params["shortcut_w"], 0, cin_p), 1, cout_p).astype(jnp.float32)
        inputs.append(wsc)                                   # f32 residual path
        in_specs.append(pl.BlockSpec((cin_p, cout_p), lambda b: (0, 0)))

    kernel = functools.partial(_preact_block_kernel, stride=stride,
                               has_projection=has_projection)

    out_p = pl.pallas_call(
        kernel,
        out_shape=jax.ShapeDtypeStruct((B, Ho, Wo, cout_p), x_nhwc.dtype),
        grid=(B,),
        in_specs=in_specs,
        out_specs=pl.BlockSpec((1, Ho, Wo, cout_p), lambda b: (b, 0, 0, 0)),
        scratch_shapes=[
            pltpu.VMEM((H + 2, W + 2, cin_p), mxu_dtype),      # padded relu(bn1(x))
            pltpu.VMEM((Ho + 2, Wo + 2, cout_p), mxu_dtype),   # padded relu(bn2(conv1))
        ],
        compiler_params=pltpu.CompilerParams(
            dimension_semantics=("parallel",),   # batch shards across TCs (v7x)
            # 48 MiB: above v5e/v6e scoped defaults, still safe on v7x's 64 MiB.
            vmem_limit_bytes=48 * 1024 * 1024),
    )(*inputs)

    if cout_p != planes:
        out_p = out_p[..., :planes]
    return out_p


# --------------------------------------------------------------------------
# Parameters (inference-mode BN running stats), matching the PyTorch module.
# --------------------------------------------------------------------------
def init_preact_block_params(key, in_planes, planes, stride=1):
    ks = jax.random.split(key, 12)
    p = {}
    p["bn1_gamma"] = 1.0 + 0.1 * jax.random.normal(ks[0], (in_planes,), jnp.float32)
    p["bn1_beta"] = 0.1 * jax.random.normal(ks[1], (in_planes,), jnp.float32)
    p["bn1_mean"] = 0.1 * jax.random.normal(ks[2], (in_planes,), jnp.float32)
    p["bn1_var"] = jnp.abs(1.0 + 0.1 * jax.random.normal(ks[3], (in_planes,), jnp.float32))
    p["bn2_gamma"] = 1.0 + 0.1 * jax.random.normal(ks[4], (planes,), jnp.float32)
    p["bn2_beta"] = 0.1 * jax.random.normal(ks[5], (planes,), jnp.float32)
    p["bn2_mean"] = 0.1 * jax.random.normal(ks[6], (planes,), jnp.float32)
    p["bn2_var"] = jnp.abs(1.0 + 0.1 * jax.random.normal(ks[7], (planes,), jnp.float32))
    w1 = 0.1 * jax.random.normal(ks[8], (planes, in_planes, 3, 3), jnp.float32)   # OIHW
    p["conv1_w"] = jnp.transpose(w1, (2, 3, 1, 0))                                # HWIO
    w2 = 0.1 * jax.random.normal(ks[9], (planes, planes, 3, 3), jnp.float32)
    p["conv2_w"] = jnp.transpose(w2, (2, 3, 1, 0))
    if stride != 1 or in_planes != planes:
        ws = 0.1 * jax.random.normal(ks[10], (planes, in_planes, 1, 1), jnp.float32)
        p["shortcut_w"] = jnp.transpose(ws[:, :, 0, 0], (1, 0))    # (in_planes, planes)
    return p


# --------------------------------------------------------------------------
# Pure-JAX reference (correctness check only)
# --------------------------------------------------------------------------
def reference_forward(params, x_nhwc, stride=1):
    def bnr(x, g, b, m, v):
        return jnp.maximum((x - m) / jnp.sqrt(v + BN_EPS) * g + b, 0.0)

    def conv(x, w, s, pad):
        return lax.conv_general_dilated(
            x, w, (s, s), pad, dimension_numbers=("NHWC", "HWIO", "NHWC"))

    pre = bnr(x_nhwc, params["bn1_gamma"], params["bn1_beta"],
              params["bn1_mean"], params["bn1_var"])
    if "shortcut_w" in params:
        w = params["shortcut_w"].reshape(1, 1, *params["shortcut_w"].shape)
        shortcut = conv(pre, w, stride, [(0, 0), (0, 0)])
    else:
        shortcut = pre
    out = conv(pre, params["conv1_w"], stride, [(1, 1), (1, 1)])
    out = bnr(out, params["bn2_gamma"], params["bn2_beta"],
              params["bn2_mean"], params["bn2_var"])
    out = conv(out, params["conv2_w"], 1, [(1, 1), (1, 1)])
    return out + shortcut


# --------------------------------------------------------------------------
if __name__ == "__main__":
    key = jax.random.PRNGKey(0)
    kx, kp1, kp2 = jax.random.split(key, 3)

    B, C, H, W = 2, 4, 16, 16
    x_nchw = jax.random.normal(kx, (B, C, H, W), jnp.float32)     # PyTorch layout
    x_nhwc = jnp.transpose(x_nchw, (0, 2, 3, 1))                  # kernel layout

    # --- config 1: identity shortcut (stride 1, Cin == planes), f32 MXU path ---
    params1 = init_preact_block_params(kp1, in_planes=4, planes=4, stride=1)
    out1 = jax.block_until_ready(
        preact_block_forward(params1, x_nhwc, stride=1, mxu_dtype=jnp.float32))
    ref1 = reference_forward(params1, x_nhwc, stride=1)
    assert out1.shape == (B, H, W, 4)
    assert jnp.allclose(out1, ref1, atol=1e-4, rtol=1e-4), "config1 mismatch"

    # --- config 2: projection shortcut (stride 2, channel change), f32 MXU path ---
    params2 = init_preact_block_params(kp2, in_planes=4, planes=8, stride=2)
    out2 = jax.block_until_ready(
        preact_block_forward(params2, x_nhwc, stride=2, mxu_dtype=jnp.float32))
    ref2 = reference_forward(params2, x_nhwc, stride=2)
    assert out2.shape == (B, H // 2, W // 2, 8)
    assert jnp.allclose(out2, ref2, atol=1e-4, rtol=1e-4), "config2 mismatch"

    # --- default (bf16 MXU operands + bf16 scratch, f32 accumulation) ---
    out1_bf = jax.block_until_ready(preact_block_forward(params1, x_nhwc, stride=1))
    out2_bf = jax.block_until_ready(preact_block_forward(params2, x_nhwc, stride=2))
    assert jnp.allclose(out1_bf, ref1, atol=5e-2, rtol=5e-2), "bf16 config1 mismatch"
    assert jnp.allclose(out2_bf, ref2, atol=5e-2, rtol=5e-2), "bf16 config2 mismatch"

    print("KERNEL_OK")
</pallas_src>

<mosaic_0001>
module attributes {stable_mosaic.version = 11 : i64} {
  func.func @_preact_block_kernel(%arg0: i32, %arg1: memref<1x16x16x128xf32, #tpu.memory_space<vmem>>, %arg2: memref<1x1x128xf32, #tpu.memory_space<vmem>>, %arg3: memref<1x1x128xf32, #tpu.memory_space<vmem>>, %arg4: memref<9x128x128xf32, #tpu.memory_space<vmem>>, %arg5: memref<1x128xf32, #tpu.memory_space<vmem>>, %arg6: memref<1x128xf32, #tpu.memory_space<vmem>>, %arg7: memref<9x128x128xf32, #tpu.memory_space<vmem>>, %arg8: memref<1x16x16x128xf32, #tpu.memory_space<vmem>>, %arg9: memref<18x18x128xf32, #tpu.memory_space<vmem>>, %arg10: memref<18x18x128xf32, #tpu.memory_space<vmem>>) attributes {dimension_semantics = [#tpu.dimension_semantics<parallel>], iteration_bounds = array<i64: 2>, scalar_prefetch = 0 : i64, scratch_operands = 2 : i64, tpu.core_type = #tpu.core_type<tc>, window_params = [{transform_indices = @transform_0, window_bounds = array<i64: 1, 16, 16, 128>}, {pipeline_mode = #tpu.pipeline_mode<synchronous>, transform_indices = @transform_1, window_bounds = array<i64: 1, 1, 128>}, {pipeline_mode = #tpu.pipeline_mode<synchronous>, transform_indices = @transform_2, window_bounds = array<i64: 1, 1, 128>}, {pipeline_mode = #tpu.pipeline_mode<synchronous>, transform_indices = @transform_3, window_bounds = array<i64: 9, 128, 128>}, {pipeline_mode = #tpu.pipeline_mode<synchronous>, transform_indices = @transform_4, window_bounds = array<i64: 1, 128>}, {pipeline_mode = #tpu.pipeline_mode<synchronous>, transform_indices = @transform_5, window_bounds = array<i64: 1, 128>}, {pipeline_mode = #tpu.pipeline_mode<synchronous>, transform_indices = @transform_6, window_bounds = array<i64: 9, 128, 128>}, {transform_indices = @transform_7, window_bounds = array<i64: 1, 16, 16, 128>}]} {
    %c0 = arith.constant 0 : index
    %c0_0 = arith.constant 0 : index
    %c0_1 = arith.constant 0 : index
    %c0_2 = arith.constant 0 : index
    %0 = vector.load %arg1[%c0, %c0_0, %c0_1, %c0_2] : memref<1x16x16x128xf32, #tpu.memory_space<vmem>>, vector<1x16x16x128xf32>
    %1 = vector.shape_cast %0 : vector<1x16x16x128xf32> to vector<16x16x128xf32>
    %c0_3 = arith.constant 0 : index
    %c0_4 = arith.constant 0 : index
    %c0_5 = arith.constant 0 : index
    %2 = vector.load %arg2[%c0_3, %c0_4, %c0_5] : memref<1x1x128xf32, #tpu.memory_space<vmem>>, vector<1x1x128xf32>
    %3 = vector.broadcast %2 : vector<1x1x128xf32> to vector<16x16x128xf32>
    %4 = arith.mulf %1, %3 : vector<16x16x128xf32>
    %c0_6 = arith.constant 0 : index
    %c0_7 = arith.constant 0 : index
    %c0_8 = arith.constant 0 : index
    %5 = vector.load %arg3[%c0_6, %c0_7, %c0_8] : memref<1x1x128xf32, #tpu.memory_space<vmem>>, vector<1x1x128xf32>
    %6 = vector.broadcast %5 : vector<1x1x128xf32> to vector<16x16x128xf32>
    %7 = arith.addf %4, %6 : vector<16x16x128xf32>
    %cst = arith.constant 0.000000e+00 : f32
    %8 = vector.broadcast %cst : f32 to vector<16x16x128xf32>
    %9 = arith.maximumf %7, %8 : vector<16x16x128xf32>
    %cst_9 = arith.constant 0.000000e+00 : f32
    %10 = vector.broadcast %cst_9 : f32 to vector<1x18x128xf32>
    %cst_10 = arith.constant 0.000000e+00 : f32
    %11 = vector.broadcast %cst_10 : f32 to vector<18x1x128xf32>
    %c0_11 = arith.constant 0 : index
    %c0_12 = arith.constant 0 : index
    %c0_13 = arith.constant 0 : index
    %12 = vector.load %arg9[%c0_11, %c0_12, %c0_13] : memref<18x18x128xf32, #tpu.memory_space<vmem>>, vector<1x18x128xf32>
    tpu.vector_store %arg9[%c0_11, %c0_12, %c0_13], %10 {strides = array<i32>} : memref<18x18x128xf32, #tpu.memory_space<vmem>>, vector<1x18x128xf32>,
    %c17 = arith.constant 17 : index
    %c0_14 = arith.constant 0 : index
    %c0_15 = arith.constant 0 : index
    %13 = vector.load %arg9[%c17, %c0_14, %c0_15] : memref<18x18x128xf32, #tpu.memory_space<vmem>>, vector<1x18x128xf32>
    tpu.vector_store %arg9[%c17, %c0_14, %c0_15], %10 {strides = array<i32>} : memref<18x18x128xf32, #tpu.memory_space<vmem>>, vector<1x18x128xf32>,
    %c0_16 = arith.constant 0 : index
    %c0_17 = arith.constant 0 : index
    %c0_18 = arith.constant 0 : index
    %14 = vector.load %arg9[%c0_16, %c0_17, %c0_18] : memref<18x18x128xf32, #tpu.memory_space<vmem>>, vector<18x1x128xf32>
    tpu.vector_store %arg9[%c0_16, %c0_17, %c0_18], %11 {strides = array<i32>} : memref<18x18x128xf32, #tpu.memory_space<vmem>>, vector<18x1x128xf32>,
    %c0_19 = arith.constant 0 : index
    %c17_20 = arith.constant 17 : index
    %c0_21 = arith.constant 0 : index
    %15 = vector.load %arg9[%c0_19, %c17_20, %c0_21] : memref<18x18x128xf32, #tpu.memory_space<vmem>>, vector<18x1x128xf32>
    tpu.vector_store %arg9[%c0_19, %c17_20, %c0_21], %11 {strides = array<i32>} : memref<18x18x128xf32, #tpu.memory_space<vmem>>, vector<18x1x128xf32>,
    %c1 = arith.constant 1 : index
    %c1_22 = arith.constant 1 : index
    %c0_23 = arith.constant 0 : index
    %16 = vector.load %arg9[%c1, %c1_22, %c0_23] : memref<18x18x128xf32, #tpu.memory_space<vmem>>, vector<16x16x128xf32>
    tpu.vector_store %arg9[%c1, %c1_22, %c0_23], %9 {strides = array<i32>} : memref<18x18x128xf32, #tpu.memory_space<vmem>>, vector<16x16x128xf32>,
    %c0_24 = arith.constant 0 : index
    %c0_25 = arith.constant 0 : index
    %c0_26 = arith.constant 0 : index
    %17 = vector.load %arg9[%c0_24, %c0_25, %c0_26] : memref<18x18x128xf32, #tpu.memory_space<vmem>>, vector<16x16x128xf32>
    %18 = vector.shape_cast %17 : vector<16x16x128xf32> to vector<256x128xf32>
    %c0_27 = arith.constant 0 : index
    %c0_28 = arith.constant 0 : index
    %c0_29 = arith.constant 0 : index
    %19 = vector.load %arg4[%c0_27, %c0_28, %c0_29] : memref<9x128x128xf32, #tpu.memory_space<vmem>>, vector<1x128x128xf32>
    %20 = vector.shape_cast %19 : vector<1x128x128xf32> to vector<128x128xf32>
    %cst_30 = arith.constant dense<0.000000e+00> : vector<256x128xf32>
    %21 = tpu.matmul %18, %20, %cst_30 {dimension_numbers = #tpu.dot_dimension_numbers<[1], [0], [0], [1], [0, 0, 1, 1], [], []>} : vector<256x128xf32>, vector<128x128xf32>, vector<256x128xf32> -> vector<256x128xf32>
    %c0_31 = arith.constant 0 : index
    %c1_32 = arith.constant 1 : index
    %c0_33 = arith.constant 0 : index
    %22 = vector.load %arg9[%c0_31, %c1_32, %c0_33] : memref<18x18x128xf32, #tpu.memory_space<vmem>>, vector<16x16x128xf32>
    %23 = vector.shape_cast %22 : vector<16x16x128xf32> to vector<256x128xf32>
    %c1_34 = arith.constant 1 : index
    %c0_35 = arith.constant 0 : index
    %c0_36 = arith.constant 0 : index
    %24 = vector.load %arg4[%c1_34, %c0_35, %c0_36] : memref<9x128x128xf32, #tpu.memory_space<vmem>>, vector<1x128x128xf32>
    %25 = vector.shape_cast %24 : vector<1x128x128xf32> to vector<128x128xf32>
    %cst_37 = arith.constant dense<0.000000e+00> : vector<256x128xf32>
    %26 = tpu.matmul %23, %25, %cst_37 {dimension_numbers = #tpu.dot_dimension_numbers<[1], [0], [0], [1], [0, 0, 1, 1], [], []>} : vector<256x128xf32>, vector<128x128xf32>, vector<256x128xf32> -> vector<256x128xf32>
    %27 = arith.addf %21, %26 : vector<256x128xf32>
    %c0_38 = arith.constant 0 : index
    %c2 = arith.constant 2 : index
    %c0_39 = arith.constant 0 : index
    %28 = vector.load %arg9[%c0_38, %c2, %c0_39] : memref<18x18x128xf32, #tpu.memory_space<vmem>>, vector<16x16x128xf32>
    %29 = vector.shape_cast %28 : vector<16x16x128xf32> to vector<256x128xf32>
    %c2_40 = arith.constant 2 : index
    %c0_41 = arith.constant 0 : index
    %c0_42 = arith.constant 0 : index
    %30 = vector.load %arg4[%c2_40, %c0_41, %c0_42] : memref<9x128x128xf32, #tpu.memory_space<vmem>>, vector<1x128x128xf32>
    %31 = vector.shape_cast %30 : vector<1x128x128xf32> to vector<128x128xf32>
    %cst_43 = arith.constant dense<0.000000e+00> : vector<256x128xf32>
    %32 = tpu.matmul %29, %31, %cst_43 {dimension_numbers = #tpu.dot_dimension_numbers<[1], [0], [0], [1], [0, 0, 1, 1], [], []>} : vector<256x128xf32>, vector<128x128xf32>, vector<256x128xf32> -> vector<256x128xf32>
    %33 = arith.addf %27, %32 : vector<256x128xf32>
    %c1_44 = arith.constant 1 : index
    %c0_45 = arith.constant 0 : index
    %c0_46 = arith.constant 0 : index
    %34 = vector.load %arg9[%c1_44, %c0_45, %c0_46] : memref<18x18x128xf32, #tpu.memory_space<vmem>>, vector<16x16x128xf32>
    %35 = vector.shape_cast %34 : vector<16x16x128xf32> to vector<256x128xf32>
    %c3 = arith.constant 3 : index
    %c0_47 = arith.constant 0 : index
    %c0_48 = arith.constant 0 : index
    %36 = vector.load %arg4[%c3, %c0_47, %c0_48] : memref<9x128x128xf32, #tpu.memory_space<vmem>>, vector<1x128x128xf32>
    %37 = vector.shape_cast %36 : vector<1x128x128xf32> to vector<128x128xf32>
    %cst_49 = arith.constant dense<0.000000e+00> : vector<256x128xf32>
    %38 = tpu.matmul %35, %37, %cst_49 {dimension_numbers = #tpu.dot_dimension_numbers<[1], [0], [0], [1], [0, 0, 1, 1], [], []>} : vector<256x128xf32>, vector<128x128xf32>, vector<256x128xf32> -> vector<256x128xf32>
    %39 = arith.addf %33, %38 : vector<256x128xf32>
    %c1_50 = arith.constant 1 : index
    %c1_51 = arith.constant 1 : index
    %c0_52 = arith.constant 0 : index
    %40 = vector.load %arg9[%c1_50, %c1_51, %c0_52] : memref<18x18x128xf32, #tpu.memory_space<vmem>>, vector<16x16x128xf32>
    %41 = vector.shape_cast %40 : vector<16x16x128xf32> to vector<256x128xf32>
    %c4 = arith.constant 4 : index
    %c0_53 = arith.constant 0 : index
    %c0_54 = arith.constant 0 : index
    %42 = vector.load %arg4[%c4, %c0_53, %c0_54] : memref<9x128x128xf32, #tpu.memory_space<vmem>>, vector<1x128x128xf32>
    %43 = vector.shape_cast %42 : vector<1x128x128xf32> to vector<128x128xf32>
    %cst_55 = arith.constant dense<0.000000e+00> : vector<256x128xf32>
    %44 = tpu.matmul %41, %43, %cst_55 {dimension_numbers = #tpu.dot_dimension_numbers<[1], [0], [0], [1], [0, 0, 1, 1], [], []>} : vector<256x128xf32>, vector<128x128xf32>, vector<256x128xf32> -> vector<256x128xf32>
    %45 = arith.addf %39, %44 : vector<256x128xf32>
    %c1_56 = arith.constant 1 : index
    %c2_57 = arith.constant 2 : index
    %c0_58 = arith.constant 0 : index
    %46 = vector.load %arg9[%c1_56, %c2_57, %c0_58] : memref<18x18x128xf32, #tpu.memory_space<vmem>>, vector<16x16x128xf32>
    %47 = vector.shape_cast %46 : vector<16x16x128xf32> to vector<256x128xf32>
    %c5 = arith.constant 5 : index
    %c0_59 = arith.constant 0 : index
    %c0_60 = arith.constant 0 : index
    %48 = vector.load %arg4[%c5, %c0_59, %c0_60] : memref<9x128x128xf32, #tpu.memory_space<vmem>>, vector<1x128x128xf32>
    %49 = vector.shape_cast %48 : vector<1x128x128xf32> to vector<128x128xf32>
    %cst_61 = arith.constant dense<0.000000e+00> : vector<256x128xf32>
    %50 = tpu.matmul %47, %49, %cst_61 {dimension_numbers = #tpu.dot_dimension_numbers<[1], [0], [0], [1], [0, 0, 1, 1], [], []>} : vector<256x128xf32>, vector<128x128xf32>, vector<256x128xf32> -> vector<256x128xf32>
    %51 = arith.addf %45, %50 : vector<256x128xf32>
    %c2_62 = arith.constant 2 : index
    %c0_63 = arith.constant 0 : index
    %c0_64 = arith.constant 0 : index
    %52 = vector.load %arg9[%c2_62, %c0_63, %c0_64] : memref<18x18x128xf32, #tpu.memory_space<vmem>>, vector<16x16x128xf32>
    %53 = vector.shape_cast %52 : vector<16x16x128xf32> to vector<256x128xf32>
    %c6 = arith.constant 6 : index
    %c0_65 = arith.constant 0 : index
    %c0_66 = arith.constant 0 : index
    %54 = vector.load %arg4[%c6, %c0_65, %c0_66] : memref<9x128x128xf32, #tpu.memory_space<vmem>>, vector<1x128x128xf32>
    %55 = vector.shape_cast %54 : vector<1x128x128xf32> to vector<128x128xf32>
    %cst_67 = arith.constant dense<0.000000e+00> : vector<256x128xf32>
    %56 = tpu.matmul %53, %55, %cst_67 {dimension_numbers = #tpu.dot_dimension_numbers<[1], [0], [0], [1], [0, 0, 1, 1], [], []>} : vector<256x128xf32>, vector<128x128xf32>, vector<256x128xf32> -> vector<256x128xf32>
    %57 = arith.addf %51, %56 : vector<256x128xf32>
    %c2_68 = arith.constant 2 : index
    %c1_69 = arith.constant 1 : index
    %c0_70 = arith.constant 0 : index
    %58 = vector.load %arg9[%c2_68, %c1_69, %c0_70] : memref<18x18x128xf32, #tpu.memory_space<vmem>>, vector<16x16x128xf32>
    %59 = vector.shape_cast %58 : vector<16x16x128xf32> to vector<256x128xf32>
    %c7 = arith.constant 7 : index
    %c0_71 = arith.constant 0 : index
    %c0_72 = arith.constant 0 : index
    %60 = vector.load %arg4[%c7, %c0_71, %c0_72] : memref<9x128x128xf32, #tpu.memory_space<vmem>>, vector<1x128x128xf32>
    %61 = vector.shape_cast %60 : vector<1x128x128xf32> to vector<128x128xf32>
    %cst_73 = arith.constant dense<0.000000e+00> : vector<256x128xf32>
    %62 = tpu.matmul %59, %61, %cst_73 {dimension_numbers = #tpu.dot_dimension_numbers<[1], [0], [0], [1], [0, 0, 1, 1], [], []>} : vector<256x128xf32>, vector<128x128xf32>, vector<256x128xf32> -> vector<256x128xf32>
    %63 = arith.addf %57, %62 : vector<256x128xf32>
    %c2_74 = arith.constant 2 : index
    %c2_75 = arith.constant 2 : index
    %c0_76 = arith.constant 0 : index
    %64 = vector.load %arg9[%c2_74, %c2_75, %c0_76] : memref<18x18x128xf32, #tpu.memory_space<vmem>>, vector<16x16x128xf32>
    %65 = vector.shape_cast %64 : vector<16x16x128xf32> to vector<256x128xf32>
    %c8 = arith.constant 8 : index
    %c0_77 = arith.constant 0 : index
    %c0_78 = arith.constant 0 : index
    %66 = vector.load %arg4[%c8, %c0_77, %c0_78] : memref<9x128x128xf32, #tpu.memory_space<vmem>>, vector<1x128x128xf32>
    %67 = vector.shape_cast %66 : vector<1x128x128xf32> to vector<128x128xf32>
    %cst_79 = arith.constant dense<0.000000e+00> : vector<256x128xf32>
    %68 = tpu.matmul %65, %67, %cst_79 {dimension_numbers = #tpu.dot_dimension_numbers<[1], [0], [0], [1], [0, 0, 1, 1], [], []>} : vector<256x128xf32>, vector<128x128xf32>, vector<256x128xf32> -> vector<256x128xf32>
    %69 = arith.addf %63, %68 : vector<256x128xf32>
    %c0_80 = arith.constant 0 : index
    %c0_81 = arith.constant 0 : index
    %70 = vector.load %arg5[%c0_80, %c0_81] : memref<1x128xf32, #tpu.memory_space<vmem>>, vector<1x128xf32>
    %71 = vector.broadcast %70 : vector<1x128xf32> to vector<256x128xf32>
    %72 = arith.mulf %69, %71 : vector<256x128xf32>
    %c0_82 = arith.constant 0 : index
    %c0_83 = arith.constant 0 : index
    %73 = vector.load %arg6[%c0_82, %c0_83] : memref<1x128xf32, #tpu.memory_space<vmem>>, vector<1x128xf32>
    %74 = vector.broadcast %73 : vector<1x128xf32> to vector<256x128xf32>
    %75 = arith.addf %72, %74 : vector<256x128xf32>
    %cst_84 = arith.constant 0.000000e+00 : f32
    %76 = vector.broadcast %cst_84 : f32 to vector<256x128xf32>
    %77 = arith.maximumf %75, %76 : vector<256x128xf32>
    %cst_85 = arith.constant 0.000000e+00 : f32
    %78 = vector.broadcast %cst_85 : f32 to vector<1x18x128xf32>
    %cst_86 = arith.constant 0.000000e+00 : f32
    %79 = vector.broadcast %cst_86 : f32 to vector<18x1x128xf32>
    %c0_87 = arith.constant 0 : index
    %c0_88 = arith.constant 0 : index
    %c0_89 = arith.constant 0 : index
    %80 = vector.load %arg10[%c0_87, %c0_88, %c0_89] : memref<18x18x128xf32, #tpu.memory_space<vmem>>, vector<1x18x128xf32>
    tpu.vector_store %arg10[%c0_87, %c0_88, %c0_89], %78 {strides = array<i32>} : memref<18x18x128xf32, #tpu.memory_space<vmem>>, vector<1x18x128xf32>,
    %c17_90 = arith.constant 17 : index
    %c0_91 = arith.constant 0 : index
    %c0_92 = arith.constant 0 : index
    %81 = vector.load %arg10[%c17_90, %c0_91, %c0_92] : memref<18x18x128xf32, #tpu.memory_space<vmem>>, vector<1x18x128xf32>
    tpu.vector_store %arg10[%c17_90, %c0_91, %c0_92], %78 {strides = array<i32>} : memref<18x18x128xf32, #tpu.memory_space<vmem>>, vector<1x18x128xf32>,
    %c0_93 = arith.constant 0 : index
    %c0_94 = arith.constant 0 : index
    %c0_95 = arith.constant 0 : index
    %82 = vector.load %arg10[%c0_93, %c0_94, %c0_95] : memref<18x18x128xf32, #tpu.memory_space<vmem>>, vector<18x1x128xf32>
    tpu.vector_store %arg10[%c0_93, %c0_94, %c0_95], %79 {strides = array<i32>} : memref<18x18x128xf32, #tpu.memory_space<vmem>>, vector<18x1x128xf32>,
    %c0_96 = arith.constant 0 : index
    %c17_97 = arith.constant 17 : index
    %c0_98 = arith.constant 0 : index
    %83 = vector.load %arg10[%c0_96, %c17_97, %c0_98] : memref<18x18x128xf32, #tpu.memory_space<vmem>>, vector<18x1x128xf32>
    tpu.vector_store %arg10[%c0_96, %c17_97, %c0_98], %79 {strides = array<i32>} : memref<18x18x128xf32, #tpu.memory_space<vmem>>, vector<18x1x128xf32>,
    %84 = vector.shape_cast %77 : vector<256x128xf32> to vector<16x16x128xf32>
    %c1_99 = arith.constant 1 : index
    %c1_100 = arith.constant 1 : index
    %c0_101 = arith.constant 0 : index
    %85 = vector.load %arg10[%c1_99, %c1_100, %c0_101] : memref<18x18x128xf32, #tpu.memory_space<vmem>>, vector<16x16x128xf32>
    tpu.vector_store %arg10[%c1_99, %c1_100, %c0_101], %84 {strides = array<i32>} : memref<18x18x128xf32, #tpu.memory_space<vmem>>, vector<16x16x128xf32>,
    %c0_102 = arith.constant 0 : index
    %c0_103 = arith.constant 0 : index
    %c0_104 = arith.constant 0 : index
    %86 = vector.load %arg10[%c0_102, %c0_103, %c0_104] : memref<18x18x128xf32, #tpu.memory_space<vmem>>, vector<16x16x128xf32>
    %87 = vector.shape_cast %86 : vector<16x16x128xf32> to vector<256x128xf32>
    %c0_105 = arith.constant 0 : index
    %c0_106 = arith.constant 0 : index
    %c0_107 = arith.constant 0 : index
    %88 = vector.load %arg7[%c0_105, %c0_106, %c0_107] : memref<9x128x128xf32, #tpu.memory_space<vmem>>, vector<1x128x128xf32>
    %89 = vector.shape_cast %88 : vector<1x128x128xf32> to vector<128x128xf32>
    %cst_108 = arith.constant dense<0.000000e+00> : vector<256x128xf32>
    %90 = tpu.matmul %87, %89, %cst_108 {dimension_numbers = #tpu.dot_dimension_numbers<[1], [0], [0], [1], [0, 0, 1, 1], [], []>} : vector<256x128xf32>, vector<128x128xf32>, vector<256x128xf32> -> vector<256x128xf32>
    %c0_109 = arith.constant 0 : index
    %c1_110 = arith.constant 1 : index
    %c0_111 = arith.constant 0 : index
    %91 = vector.load %arg10[%c0_109, %c1_110, %c0_111] : memref<18x18x128xf32, #tpu.memory_space<vmem>>, vector<16x16x128xf32>
    %92 = vector.shape_cast %91 : vector<16x16x128xf32> to vector<256x128xf32>
    %c1_112 = arith.constant 1 : index
    %c0_113 = arith.constant 0 : index
    %c0_114 = arith.constant 0 : index
    %93 = vector.load %arg7[%c1_112, %c0_113, %c0_114] : memref<9x128x128xf32, #tpu.memory_space<vmem>>, vector<1x128x128xf32>
    %94 = vector.shape_cast %93 : vector<1x128x128xf32> to vector<128x128xf32>
    %cst_115 = arith.constant dense<0.000000e+00> : vector<256x128xf32>
    %95 = tpu.matmul %92, %94, %cst_115 {dimension_numbers = #tpu.dot_dimension_numbers<[1], [0], [0], [1], [0, 0, 1, 1], [], []>} : vector<256x128xf32>, vector<128x128xf32>, vector<256x128xf32> -> vector<256x128xf32>
    %96 = arith.addf %90, %95 : vector<256x128xf32>
    %c0_116 = arith.constant 0 : index
    %c2_117 = arith.constant 2 : index
    %c0_118 = arith.constant 0 : index
    %97 = vector.load %arg10[%c0_116, %c2_117, %c0_118] : memref<18x18x128xf32, #tpu.memory_space<vmem>>, vector<16x16x128xf32>
    %98 = vector.shape_cast %97 : vector<16x16x128xf32> to vector<256x128xf32>
    %c2_119 = arith.constant 2 : index
    %c0_120 = arith.constant 0 : index
    %c0_121 = arith.constant 0 : index
    %99 = vector.load %arg7[%c2_119, %c0_120, %c0_121] : memref<9x128x128xf32, #tpu.memory_space<vmem>>, vector<1x128x128xf32>
    %100 = vector.shape_cast %99 : vector<1x128x128xf32> to vector<128x128xf32>
    %cst_122 = arith.constant dense<0.000000e+00> : vector<256x128xf32>
    %101 = tpu.matmul %98, %100, %cst_122 {dimension_numbers = #tpu.dot_dimension_numbers<[1], [0], [0], [1], [0, 0, 1, 1], [], []>} : vector<256x128xf32>, vector<128x128xf32>, vector<256x128xf32> -> vector<256x128xf32>
    %102 = arith.addf %96, %101 : vector<256x128xf32>
    %c1_123 = arith.constant 1 : index
    %c0_124 = arith.constant 0 : index
    %c0_125 = arith.constant 0 : index
    %103 = vector.load %arg10[%c1_123, %c0_124, %c0_125] : memref<18x18x128xf32, #tpu.memory_space<vmem>>, vector<16x16x128xf32>
    %104 = vector.shape_cast %103 : vector<16x16x128xf32> to vector<256x128xf32>
    %c3_126 = arith.constant 3 : index
    %c0_127 = arith.constant 0 : index
    %c0_128 = arith.constant 0 : index
    %105 = vector.load %arg7[%c3_126, %c0_127, %c0_128] : memref<9x128x128xf32, #tpu.memory_space<vmem>>, vector<1x128x128xf32>
    %106 = vector.shape_cast %105 : vector<1x128x128xf32> to vector<128x128xf32>
    %cst_129 = arith.constant dense<0.000000e+00> : vector<256x128xf32>
    %107 = tpu.matmul %104, %106, %cst_129 {dimension_numbers = #tpu.dot_dimension_numbers<[1], [0], [0], [1], [0, 0, 1, 1], [], []>} : vector<256x128xf32>, vector<128x128xf32>, vector<256x128xf32> -> vector<256x128xf32>
    %108 = arith.addf %102, %107 : vector<256x128xf32>
    %c1_130 = arith.constant 1 : index
    %c1_131 = arith.constant 1 : index
    %c0_132 = arith.constant 0 : index
    %109 = vector.load %arg10[%c1_130, %c1_131, %c0_132] : memref<18x18x128xf32, #tpu.memory_space<vmem>>, vector<16x16x128xf32>
    %110 = vector.shape_cast %109 : vector<16x16x128xf32> to vector<256x128xf32>
    %c4_133 = arith.constant 4 : index
    %c0_134 = arith.constant 0 : index
    %c0_135 = arith.constant 0 : index
    %111 = vector.load %arg7[%c4_133, %c0_134, %c0_135] : memref<9x128x128xf32, #tpu.memory_space<vmem>>, vector<1x128x128xf32>
    %112 = vector.shape_cast %111 : vector<1x128x128xf32> to vector<128x128xf32>
    %cst_136 = arith.constant dense<0.000000e+00> : vector<256x128xf32>
    %113 = tpu.matmul %110, %112, %cst_136 {dimension_numbers = #tpu.dot_dimension_numbers<[1], [0], [0], [1], [0, 0, 1, 1], [], []>} : vector<256x128xf32>, vector<128x128xf32>, vector<256x128xf32> -> vector<256x128xf32>
    %114 = arith.addf %108, %113 : vector<256x128xf32>
    %c1_137 = arith.constant 1 : index
    %c2_138 = arith.constant 2 : index
    %c0_139 = arith.constant 0 : index
    %115 = vector.load %arg10[%c1_137, %c2_138, %c0_139] : memref<18x18x128xf32, #tpu.memory_space<vmem>>, vector<16x16x128xf32>
    %116 = vector.shape_cast %115 : vector<16x16x128xf32> to vector<256x128xf32>
    %c5_140 = arith.constant 5 : index
    %c0_141 = arith.constant 0 : index
    %c0_142 = arith.constant 0 : index
    %117 = vector.load %arg7[%c5_140, %c0_141, %c0_142] : memref<9x128x128xf32, #tpu.memory_space<vmem>>, vector<1x128x128xf32>
    %118 = vector.shape_cast %117 : vector<1x128x128xf32> to vector<128x128xf32>
    %cst_143 = arith.constant dense<0.000000e+00> : vector<256x128xf32>
    %119 = tpu.matmul %116, %118, %cst_143 {dimension_numbers = #tpu.dot_dimension_numbers<[1], [0], [0], [1], [0, 0, 1, 1], [], []>} : vector<256x128xf32>, vector<128x128xf32>, vector<256x128xf32> -> vector<256x128xf32>
    %120 = arith.addf %114, %119 : vector<256x128xf32>
    %c2_144 = arith.constant 2 : index
    %c0_145 = arith.constant 0 : index
    %c0_146 = arith.constant 0 : index
    %121 = vector.load %arg10[%c2_144, %c0_145, %c0_146] : memref<18x18x128xf32, #tpu.memory_space<vmem>>, vector<16x16x128xf32>
    %122 = vector.shape_cast %121 : vector<16x16x128xf32> to vector<256x128xf32>
    %c6_147 = arith.constant 6 : index
    %c0_148 = arith.constant 0 : index
    %c0_149 = arith.constant 0 : index
    %123 = vector.load %arg7[%c6_147, %c0_148, %c0_149] : memref<9x128x128xf32, #tpu.memory_space<vmem>>, vector<1x128x128xf32>
    %124 = vector.shape_cast %123 : vector<1x128x128xf32> to vector<128x128xf32>
    %cst_150 = arith.constant dense<0.000000e+00> : vector<256x128xf32>
    %125 = tpu.matmul %122, %124, %cst_150 {dimension_numbers = #tpu.dot_dimension_numbers<[1], [0], [0], [1], [0, 0, 1, 1], [], []>} : vector<256x128xf32>, vector<128x128xf32>, vector<256x128xf32> -> vector<256x128xf32>
    %126 = arith.addf %120, %125 : vector<256x128xf32>
    %c2_151 = arith.constant 2 : index
    %c1_152 = arith.constant 1 : index
    %c0_153 = arith.constant 0 : index
    %127 = vector.load %arg10[%c2_151, %c1_152, %c0_153] : memref<18x18x128xf32, #tpu.memory_space<vmem>>, vector<16x16x128xf32>
    %128 = vector.shape_cast %127 : vector<16x16x128xf32> to vector<256x128xf32>
    %c7_154 = arith.constant 7 : index
    %c0_155 = arith.constant 0 : index
    %c0_156 = arith.constant 0 : index
    %129 = vector.load %arg7[%c7_154, %c0_155, %c0_156] : memref<9x128x128xf32, #tpu.memory_space<vmem>>, vector<1x128x128xf32>
    %130 = vector.shape_cast %129 : vector<1x128x128xf32> to vector<128x128xf32>
    %cst_157 = arith.constant dense<0.000000e+00> : vector<256x128xf32>
    %131 = tpu.matmul %128, %130, %cst_157 {dimension_numbers = #tpu.dot_dimension_numbers<[1], [0], [0], [1], [0, 0, 1, 1], [], []>} : vector<256x128xf32>, vector<128x128xf32>, vector<256x128xf32> -> vector<256x128xf32>
    %132 = arith.addf %126, %131 : vector<256x128xf32>
    %c2_158 = arith.constant 2 : index
    %c2_159 = arith.constant 2 : index
    %c0_160 = arith.constant 0 : index
    %133 = vector.load %arg10[%c2_158, %c2_159, %c0_160] : memref<18x18x128xf32, #tpu.memory_space<vmem>>, vector<16x16x128xf32>
    %134 = vector.shape_cast %133 : vector<16x16x128xf32> to vector<256x128xf32>
    %c8_161 = arith.constant 8 : index
    %c0_162 = arith.constant 0 : index
    %c0_163 = arith.constant 0 : index
    %135 = vector.load %arg7[%c8_161, %c0_162, %c0_163] : memref<9x128x128xf32, #tpu.memory_space<vmem>>, vector<1x128x128xf32>
    %136 = vector.shape_cast %135 : vector<1x128x128xf32> to vector<128x128xf32>
    %cst_164 = arith.constant dense<0.000000e+00> : vector<256x128xf32>
    %137 = tpu.matmul %134, %136, %cst_164 {dimension_numbers = #tpu.dot_dimension_numbers<[1], [0], [0], [1], [0, 0, 1, 1], [], []>} : vector<256x128xf32>, vector<128x128xf32>, vector<256x128xf32> -> vector<256x128xf32>
    %138 = arith.addf %132, %137 : vector<256x128xf32>
    %139 = vector.shape_cast %9 : vector<16x16x128xf32> to vector<256x128xf32>
    %140 = arith.addf %138, %139 : vector<256x128xf32>
    %141 = vector.shape_cast %140 : vector<256x128xf32> to vector<1x16x16x128xf32>
    %c0_165 = arith.constant 0 : index
    %c0_166 = arith.constant 0 : index
    %c0_167 = arith.constant 0 : index
    %c0_168 = arith.constant 0 : index
    %142 = vector.load %arg8[%c0_165, %c0_166, %c0_167, %c0_168] : memref<1x16x16x128xf32, #tpu.memory_space<vmem>>, vector<1x16x16x128xf32>
    tpu.vector_store %arg8[%c0_165, %c0_166, %c0_167, %c0_168], %141 {strides = array<i32>} : memref<1x16x16x128xf32, #tpu.memory_space<vmem>>, vector<1x16x16x128xf32>,
    return
  }
  func.func @transform_0(%arg0: i32) -> (i32, i32, i32, i32) {
    %c0_i32 = arith.constant 0 : i32
    %c0_i32_0 = arith.constant 0 : i32
    %c0_i32_1 = arith.constant 0 : i32
    %c0_i32_2 = arith.constant 0 : i32
    return %arg0, %c0_i32, %c0_i32_0, %c0_i32_1 : i32, i32, i32, i32
  }
  func.func @transform_1(%arg0: i32) -> (i32, i32, i32) {
    %c0_i32 = arith.constant 0 : i32
    %c0_i32_0 = arith.constant 0 : i32
    %c0_i32_1 = arith.constant 0 : i32
    %c0_i32_2 = arith.constant 0 : i32
    return %c0_i32, %c0_i32_0, %c0_i32_1 : i32, i32, i32
  }
  func.func @transform_2(%arg0: i32) -> (i32, i32, i32) {
    %c0_i32 = arith.constant 0 : i32
    %c0_i32_0 = arith.constant 0 : i32
    %c0_i32_1 = arith.constant 0 : i32
    %c0_i32_2 = arith.constant 0 : i32
    return %c0_i32, %c0_i32_0, %c0_i32_1 : i32, i32, i32
  }
  func.func @transform_3(%arg0: i32) -> (i32, i32, i32) {
    %c0_i32 = arith.constant 0 : i32
    %c0_i32_0 = arith.constant 0 : i32
    %c0_i32_1 = arith.constant 0 : i32
    %c0_i32_2 = arith.constant 0 : i32
    return %c0_i32, %c0_i32_0, %c0_i32_1 : i32, i32, i32
  }
  func.func @transform_4(%arg0: i32) -> (i32, i32) {
    %c0_i32 = arith.constant 0 : i32
    %c0_i32_0 = arith.constant 0 : i32
    %c0_i32_1 = arith.constant 0 : i32
    return %c0_i32, %c0_i32_0 : i32, i32
  }
  func.func @transform_5(%arg0: i32) -> (i32, i32) {
    %c0_i32 = arith.constant 0 : i32
    %c0_i32_0 = arith.constant 0 : i32
    %c0_i32_1 = arith.constant 0 : i32
    return %c0_i32, %c0_i32_0 : i32, i32
  }
  func.func @transform_6(%arg0: i32) -> (i32, i32, i32) {
    %c0_i32 = arith.constant 0 : i32
    %c0_i32_0 = arith.constant 0 : i32
    %c0_i32_1 = arith.constant 0 : i32
    %c0_i32_2 = arith.constant 0 : i32
    return %c0_i32, %c0_i32_0, %c0_i32_1 : i32, i32, i32
  }
  func.func @transform_7(%arg0: i32) -> (i32, i32, i32, i32) {
    %c0_i32 = arith.constant 0 : i32
    %c0_i32_0 = arith.constant 0 : i32
    %c0_i32_1 = arith.constant 0 : i32
    %c0_i32_2 = arith.constant 0 : i32
    return %arg0, %c0_i32, %c0_i32_0, %c0_i32_1 : i32, i32, i32, i32
  }
}

</mosaic_0001>

<bundles_post_ra>
// kernel: tpu_custom_call.1
= control target key start
LH: loop header
LB: loop body
LE: loop exit
PB: predicated region body
PF: predicated region fallthrough
CT: control target
= control target key end

     0   :  { %s6681_s0 = inlined_call_operand.hbm [shape: f32[2,16,16,128], index: 0, kind: input, shape index: {}]   ;;  %s6682_s1 = inlined_call_operand.hbm [shape: f32[1,1,128], index: 1, kind: input, shape index: {}]   ;;  %s6683_s2 = inlined_call_operand.vmem [shape: f32[1,1,128], index: 2, kind: input, shape index: {}]   ;;  %s6684_s3 = inlined_call_operand.hbm [shape: f32[9,128,128], index: 3, kind: input, shape index: {}]   ;;  %s6685_s4 = inlined_call_operand.vmem [shape: f32[1,128], index: 4, kind: input, shape index: {}]   ;;  %s6686_s5 = inlined_call_operand.vmem [shape: f32[1,128], index: 5, kind: input, shape index: {}]   ;;  %s6687_s6 = inlined_call_operand.hbm [shape: f32[9,128,128], index: 6, kind: input, shape index: {}]   ;;  %s6688_s7 = inlined_call_operand.hbm [shape: f32[2,16,16,128], index: 7, kind: output, shape index: {}]  }
   0x1   :  { %6691 = sst [smem:[#allocation42_spill]] %s6682_s1 }
   0x2   :  { %12 = vsyncpa [#allocation5], 0 }
   0x3   :  { %14 = vsyncpa [#allocation5 + $0x1], 0 }
   0x4   :  { %15 = vsyncpa [#allocation8], 0 }
   0x5   :  { %16 = vsyncpa [#allocation11], 0 }
   0x6   :  { %17 = vsyncpa [#allocation6], 0 }
   0x7   :  { %19 = vsyncpa [#allocation6 + $0x1], 0  ;;  %s4707_s24 = smov 0   ;;  %s4709_s25 = smov 0  }
   0x8   :  { %s4711_s26 = smov 0   ;;  %s4713_s27 = smov 0  }
   0x9 LB: > { %s4728_s28 = sadd.s32 4294967295, %s4657_s27   ;;  %s4285_s29 = sadd.s32 4294967294, %s4657_s27   ;;  %s4657_s27 = sphi %s4713_s27, %s6769_s27   ;;  %s4653_s26 = sphi %s4711_s26, %s6768_s26   ;;  %s4649_s25 = sphi %s4709_s25, %s6767_s25   ;;  %s4645_s24 = sphi %s4707_s24, %s6766_s24  }
   0xa   : > { %p45_p0 = scmp.ne.s32.totalorder %s4649_s25, %s4645_s24  ;;  %p46_p1 = scmp.eq.s32.totalorder %s4728_s28, 0 }
   0xb   : > { %p195_p2 = scmp.eq.s32.totalorder %s4728_s28, 1  ;;  %p201_p3 = scmp.eq.s32.totalorder %s4285_s29, 1 }
   0xc   : > { %p4737_p4 = por %p46_p1, %p45_p0  ;;  %p4286_p5 = scmp.ge.s32.totalorder %s4657_s27, 1 }
   0xd   : > { %p4742_p6 = por %p201_p3, %p45_p0  ;;  %p208_p7 = scmp.lt.s32.totalorder %s4657_s27, 3 }
   0xe   : > { %s6694_s1 = sld [smem:[#allocation42_spill]]  ;;  %s4659_s13 = smov [#allocation7]  }
   0xf   : > { %p4750_p8 = pnand %p4286_p5, %p208_p7  ;;  %s222_s14 = sshll.u32 %s4659_s13, 4  ;;  %s223_s14 = int_to_ptr.vmem [resolvable:$true] %s222_s14 }
  0x10   : > { %s234_s17 = sshll.u32 %s6684_s3, 4  ;;  %s4660_s19 = smov [#allocation9]   ;;  %s235_s17 = int_to_ptr.hbm [resolvable:$true] %s234_s17 }
  0x11   : > { %p4355_p10 = pneg %p4750_p8  ;;  %s236_s20 = sshll.u32 %s4660_s19, 4  ;;  %s237_s20 = int_to_ptr.vmem [resolvable:$true] %s236_s20 }
  0x12   : > { %s6689_s21 = smov 128   ;;  %s6690_s22 = smov 8  }
  0x13   : > { %p4762_p11 = pnand %p4355_p10, %p46_p1  ;;  %s254_s9 = sshll.u32 %s6687_s6, 4  ;;  %s255_s9 = int_to_ptr.hbm [resolvable:$true] %s254_s9 }
  0x14   : > { %s220_s11 = sshll.u32 %s6694_s1, 4  ;;  %s4663_s10 = smov [#allocation10]   ;;  %s221_s11 = int_to_ptr.hbm [resolvable:$true] %s220_s11 }
  0x15   : > { %4358 = dma.hbm_to_vmem [thread:$0]  (!%p4762_p11), %s221_s11, 16, %s223_s14, [#allocation8]  }
  0x16   : > { %4361 = dma.hbm_to_vmem [thread:$0]  (!%p4762_p11), %s235_s17, 18432, %s237_s20, [#allocation8], %s6689_s21, %s6689_s21, %s6690_s22  }
  0x17   : > { %s256_s11 = sshll.u32 %s4663_s10, 4  ;;  %s4782_s13 = sadd.s32 1, %s4657_s27   ;;  %s257_s11 = int_to_ptr.vmem [resolvable:$true] %s256_s11 }
  0x18   : > { %4364 = dma.hbm_to_vmem [thread:$0]  (!%p4762_p11), %s255_s9, 18432, %s257_s11, [#allocation11], %s6689_s21, %s6689_s21, %s6690_s22  }
  0x19   : > { %s29_s14 = ssub.s32 %s4657_s27, %s4782_s13  ;;  %s32_s15 = sadd.s32 1, %s4653_s26 }
  0x1a   : > { %p30_p12 = scmp.eq.s32.totalorder %s29_s14, 0  ;;  %p39_p13 = scmp.ne.s32.totalorder %s4653_s26, %s4649_s25 }
  0x1b   : > { %p40_p0 = scmp.eq.s32.totalorder %s4657_s27, 0  ;;  %p4376_p5 = scmp.lt.s32.totalorder %s4657_s27, 2 }
  0x1c   : > { %s4791_s16 = scalar_select %p30_p12, %s4653_s26, %s32_s15  }
  0x1d   : > { %p4795_p3 = por %p195_p2, %p39_p13  ;;  %s270_s18 = sand.u32 1, %s4653_s26  }
  0x1e   : > { %s4305_s19 = sshll.u32 %s4657_s27, 8  ;;  %p41_p7 = por %p40_p0, %p39_p13 }
  0x1f   : > { %s4291_s20 = sshll.u32 %s270_s18, 8  ;;  %s279_s9 = scalar_lea.hbm %s6681_s0, %s4305_s19 }
  0x20   : > { %s280_s10 = sshll.u32 %s279_s9, 4  ;;  %s274_s11 = scalar_lea.vmem [#allocation4], %s4291_s20  ;;  %s281_s10 = int_to_ptr.hbm [resolvable:$true] %s280_s10 }
  0x21   : > { %s282_s14 = sshll.u32 %s274_s11, 4  ;;  %p4805_p10 = pnand %p4376_p5, %p41_p7  ;;  %s283_s14 = int_to_ptr.vmem [resolvable:$true] %s282_s14 }
  0x22   : > { %s271_s21 = scalar_lea.sflag [#allocation5], %s270_s18  ;;  %s4553_s22 = sshra.s32 %s281_s10, 4  ;;  %s4554_s22 = int_to_ptr.hbm [resolvable:$true] %s4553_s22 }
  0x23   : > { %s4555_s1 = scalar_lea.hbm %s4554_s22, 256  ;;  %p4557_p11 = pneg %p4805_p10 }
  0x24   : > { %p4556_p2 = scmp.ne.s32.totalorder %s4554_s22, %s4555_s1  ;;  %s4560_s20 = scalar_lea.hbm %s6681_s0, 512 }
  0x25   : > { %p4561_p0 = scmp.lt.s32.totalorder %s4554_s22, %s6681_s0  ;;  %p4562_p5 = scmp.lt.s32.totalorder %s4560_s20, %s4555_s1 }
  0x26   : > { %p4558_p12 = pnand %p4557_p11, %p4556_p2 }
  0x27   : > { %p4563_p7 = por %p4562_p5, %p4561_p0 }
  0x28   : > { %p4559_p13 = pneg %p4558_p12 }
  0x2a   : > { %p4564_p9 = pnand %p4563_p7, %p4559_p13 }
  0x2c   : > { %4567 = shalt.err (!%p4564_p9)
}
  0x2d   : > { %s6699_s18 = smov 8   ;;  %s6700_s11 = smov 128  }
  0x2e   : > { %4368 = dma.hbm_to_vmem [thread:$0]  (!%p4805_p10), %s281_s10, 4096, %s283_s14, %s271_s21, %s6700_s11, %s6700_s11, %s6699_s18  }
  0x2f   : > { %294 = sbr.rel (%p4750_p8) target bundleno = 1550 (0x60e), region = 48 }
  0x34   : > { %s4825_s19 = sand.u32 1, %s4649_s25  }
  0x35   : > { %s4295_s1 = sshll.u32 %s4825_s19, 8  ;;  %s297_s22 = scalar_lea.sflag [#allocation5], %s4825_s19 }
  0x36   : > { %s4831_s23 = scalar_lea.vmem [#allocation4], %s4295_s1 }
  0x37   : > { %4628 = dma.done.wait (%p4737_p4), %s297_s22, 4096  }
  0x38   : > { %4630 = vsyncadd (%p4737_p4), %s297_s22, 4294963200 }
  0x39   : > { %4632 = dma.done.wait (%p46_p1), [#allocation8], 18448  }
  0x3a   : > { %4634 = vsyncadd (%p46_p1), [#allocation8], 4294948848 }
  0x3b   : > { %4636 = dma.done.wait (%p46_p1), [#allocation11], 18432  }
  0x3c   : > { %4638 = vsyncadd (%p46_p1), [#allocation11], 4294948864  ;;  %v4664_v0 = vmov 0.0   ;;  %v655_v1 = vld [vmem:[#allocation9 + $0xf8] sm:$0xff]  ;;  %v654_v3 = vld [vmem:[#allocation9 + $0xf0] sm:$0xff]  ;;  %s4603_s18 = scalar_lea.hbm %s6688_s7, 512 }
  0x3d   : > { %483 = vst [vmem:[#allocation2] sm:$0xff] %v4664_v0  ;;  %v606_v2 = vld [vmem:[#allocation9 + $0x78] sm:$0xff]  ;;  %656 = vmatpush.msra.mxu0 %v655_v1  ;;  %4307 = vmatpush.msra.mxu2 %v655_v1  ;;  %v605_v4 = vld [vmem:[#allocation9 + $0x70] sm:$0xff]  ;;  %v653_v5 = vld [vmem:[#allocation9 + $0xe8] sm:$0xff] }
  0x3e   : > { %484 = vst [vmem:[#allocation2 + $0x8] sm:$0xff] %v4664_v0  ;;  %4323 = vmatpush.msra.mxu3 %v606_v2  ;;  %769 = vmatpush.msra.mxu1 %v606_v2  ;;  %v604_v6 = vld [vmem:[#allocation9 + $0x68] sm:$0xff]  ;;  %v652_v7 = vld [vmem:[#allocation9 + $0xe0] sm:$0xff]  ;;  %v651_v9 = vld [vmem:[#allocation9 + $0xd8] sm:$0xff] }
  0x3f   : > { %485 = vst [vmem:[#allocation2 + $0x10] sm:$0x3] %v4664_v0  ;;  %657 = vmatpush.msra.mxu0 %v654_v3  ;;  %4308 = vmatpush.msra.mxu2 %v654_v3  ;;  %v603_v8 = vld [vmem:[#allocation9 + $0x60] sm:$0xff]  ;;  %v602_v10 = vld [vmem:[#allocation9 + $0x58] sm:$0xff]  ;;  %v650_v11 = vld [vmem:[#allocation9 + $0xd0] sm:$0xff] }
  0x40   : > { %487 = vst [vmem:[#allocation2 + $0x198] sm:$0xff] %v4664_v0  ;;  %4324 = vmatpush.msra.mxu3 %v605_v4  ;;  %770 = vmatpush.msra.mxu1 %v605_v4  ;;  %v601_v12 = vld [vmem:[#allocation9 + $0x50] sm:$0xff]  ;;  %v649_v13 = vld [vmem:[#allocation9 + $0xc8] sm:$0xff]  ;;  %v648_v15 = vld [vmem:[#allocation9 + $0xc0] sm:$0xff] }
  0x41   : > { %488 = vst [vmem:[#allocation2 + $0x1a0] sm:$0xff] %v4664_v0  ;;  %658 = vmatpush.msra.mxu0 %v653_v5  ;;  %4309 = vmatpush.msra.mxu2 %v653_v5  ;;  %v600_v14 = vld [vmem:[#allocation9 + $0x48] sm:$0xff]  ;;  %v599_v16 = vld [vmem:[#allocation9 + $0x40] sm:$0xff]  ;;  %v647_v17 = vld [vmem:[#allocation9 + $0xb8] sm:$0xff] }
  0x42   : > { %489 = vst [vmem:[#allocation2 + $0x1a8] sm:$0x3] %v4664_v0  ;;  %4325 = vmatpush.msra.mxu3 %v604_v6  ;;  %771 = vmatpush.msra.mxu1 %v604_v6  ;;  %v598_v18 = vld [vmem:[#allocation9 + $0x38] sm:$0xff]  ;;  %v646_v19 = vld [vmem:[#allocation9 + $0xb0] sm:$0xff]  ;;  %v645_v21 = vld [vmem:[#allocation9 + $0xa8] sm:$0xff] }
  0x43   : > { %490 = vst [vmem:[#allocation2] sm:$0x1] %v4664_v0  ;;  %659 = vmatpush.msra.mxu0 %v652_v7  ;;  %4310 = vmatpush.msra.mxu2 %v652_v7  ;;  %v597_v20 = vld [vmem:[#allocation9 + $0x30] sm:$0xff]  ;;  %v596_v22 = vld [vmem:[#allocation9 + $0x28] sm:$0xff]  ;;  %v4871_v23 = vld [vmem:[#allocation7] ss:$0 sm:$0xff] }
  0x44   : > { %491 = vst [vmem:[#allocation2 + $0x18] sm:$0x1] %v4664_v0  ;;  %4326 = vmatpush.msra.mxu3 %v603_v8  ;;  %772 = vmatpush.msra.mxu1 %v603_v8  ;;  %v644_v24 = vld [vmem:[#allocation9 + $0xa0] sm:$0xff]  ;;  %v361_v25 = vld [vmem:[%s4831_s23 + $0x70] sm:$0xff]  ;;  %v643_v27 = vld [vmem:[#allocation9 + $0x98] sm:$0xff] }
  0x45   : > { %492 = vst [vmem:[#allocation2 + $0x30] sm:$0x1] %v4664_v0  ;;  %660 = vmatpush.msra.mxu0 %v651_v9  ;;  %4311 = vmatpush.msra.mxu2 %v651_v9  ;;  %v595_v26 = vld [vmem:[#allocation9 + $0x20] sm:$0xff]  ;;  %v594_v28 = vld [vmem:[#allocation9 + $0x18] sm:$0xff]  ;;  %v397_v29 = vmul.f32 %v4871_v23, %v361_v25  ;;  %v642_v31 = vld [vmem:[#allocation9 + $0x90] sm:$0xff] }
  0x46   : > { %493 = vst [vmem:[#allocation2 + $0x48] sm:$0x1] %v4664_v0  ;;  %4327 = vmatpush.msra.mxu3 %v602_v10  ;;  %773 = vmatpush.msra.mxu1 %v602_v10  ;;  %v4882_v30 = vld [vmem:[%s6683_s2] ss:$0 sm:$0xff]  ;;  %v593_v32 = vld [vmem:[#allocation9 + $0x10] sm:$0xff]  ;;  %v641_v33 = vld [vmem:[#allocation9 + $0x88] sm:$0xff] }
  0x47   : > { %494 = vst [vmem:[#allocation2 + $0x60] sm:$0x1] %v4664_v0  ;;  %661 = vmatpush.msra.mxu0 %v650_v11  ;;  %4312 = vmatpush.msra.mxu2 %v650_v11  ;;  %v592_v34 = vld [vmem:[#allocation9 + $0x8] sm:$0xff]  ;;  %v4889_v35 = vadd.f32 %v4882_v30, %v397_v29  ;;  %v640_v36 = vld [vmem:[#allocation9 + $0x80] sm:$0xff]  ;;  %v362_v40 = vld [vmem:[%s4831_s23 + $0x78] sm:$0xff] }
  0x48   : > { %495 = vst [vmem:[#allocation2 + $0x78] sm:$0x1] %v4664_v0  ;;  %4328 = vmatpush.msra.mxu3 %v601_v12  ;;  %774 = vmatpush.msra.mxu1 %v601_v12  ;;  %v591_v37 = vld [vmem:[#allocation9] sm:$0xff]  ;;  %v398_v41 = vmul.f32 %v4871_v23, %v362_v40  ;;  %v930_v44 = vld [vmem:[#allocation9 + $0x178] sm:$0xff]  ;;  %v929_v51 = vld [vmem:[#allocation9 + $0x170] sm:$0xff] }
  0x49   : > { %496 = vst [vmem:[#allocation2 + $0x90] sm:$0x1] %v4664_v0  ;;  %662 = vmatpush.msra.mxu0 %v649_v13  ;;  %4313 = vmatpush.msra.mxu2 %v649_v13  ;;  %v607_v38 = vld [vmem:[#allocation2 + $0x1] sm:$0xff]  ;;  %v465_v39 = vmax.f32 %v4889_v35, 0.0  ;;  %v608_v46 = vld [vmem:[#allocation2 + $0x9] sm:$0xff]  ;;  %v1123_v53 = vld [vmem:[#allocation9 + $0x1f0] sm:$0xff] }
  0x4a   : > { %497 = vst [vmem:[#allocation2 + $0xa8] sm:$0x1] %v4664_v0  ;;  %4329 = vmatpush.msra.mxu3 %v600_v14  ;;  %775 = vmatpush.msra.mxu1 %v600_v14  ;;  %v4913_v42 = vadd.f32 %v4882_v30, %v398_v41  ;;  %v1124_v45 = vld [vmem:[#allocation9 + $0x1f8] sm:$0xff]  ;;  %v364_v56 = vld [vmem:[%s4831_s23 + $0x88] sm:$0xff]  ;;  %v1317_v2 = vld [vmem:[#allocation9 + $0x270] sm:$0xff] }
  0x4b   : > { %498 = vst [vmem:[#allocation2 + $0xc0] sm:$0x1] %v4664_v0  ;;  %663 = vmatpush.msra.mxu0 %v648_v15  ;;  %4314 = vmatpush.msra.mxu2 %v648_v15  ;;  %v363_v47 = vld [vmem:[%s4831_s23 + $0x80] sm:$0xff]  ;;  %v400_v58 = vmul.f32 %v4871_v23, %v364_v56  ;;  %v928_v63 = vld [vmem:[#allocation9 + $0x168] sm:$0xff]  ;;  %v366_v15 = vld [vmem:[%s4831_s23 + $0x98] sm:$0xff] }
  0x4c   : > { %499 = vst [vmem:[#allocation2 + $0xd8] sm:$0x1] %v4664_v0  ;;  %4330 = vmatpush.msra.mxu3 %v599_v16  ;;  %776 = vmatpush.msra.mxu1 %v599_v16  ;;  %v466_v43 = vmax.f32 %v4913_v42, 0.0  ;;  %v399_v48 = vmul.f32 %v4871_v23, %v363_v47  ;;  %v559_v52 = vld [vmem:[#allocation2] sm:$0xff]  ;;  %v1122_v1 = vld [vmem:[#allocation9 + $0x1e8] sm:$0xff] }
  0x4d   : > { %500 = vst [vmem:[#allocation2 + $0xf0] sm:$0x1] %v4664_v0  ;;  %664 = vmatpush.msra.mxu0 %v647_v17  ;;  %4315 = vmatpush.msra.mxu2 %v647_v17  ;;  %v1318_v54 = vld [vmem:[#allocation9 + $0x278] sm:$0xff]  ;;  %v4948_v60 = vadd.f32 %v4882_v30, %v400_v58  ;;  %v348_v3 = vld [vmem:[%s4831_s23 + $0x8] sm:$0xff]  ;;  %v365_v4 = vld [vmem:[%s4831_s23 + $0x90] sm:$0xff]  ;;  %v402_v17 = vmul.f32 %v4871_v23, %v366_v15 }
  0x4e   : > { %501 = vst [vmem:[#allocation2 + $0x108] sm:$0x1] %v4664_v0  ;;  %4331 = vmatpush.msra.mxu3 %v598_v18  ;;  %777 = vmatpush.msra.mxu1 %v598_v18  ;;  %v4929_v49 = vadd.f32 %v4882_v30, %v399_v48  ;;  %v347_v55 = vld [vmem:[%s4831_s23] sm:$0xff]  ;;  %v384_v5 = vmul.f32 %v4871_v23, %v348_v3  ;;  %v1316_v13 = vld [vmem:[#allocation9 + $0x268] sm:$0xff] }
  0x4f   : > { %502 = vst [vmem:[#allocation2 + $0x120] sm:$0x1] %v4664_v0  ;;  %665 = vmatpush.msra.mxu0 %v646_v19  ;;  %4316 = vmatpush.msra.mxu2 %v646_v19  ;;  %v383_v57 = vmul.f32 %v4871_v23, %v347_v55  ;;  %v468_v62 = vmax.f32 %v4948_v60, 0.0  ;;  %v401_v6 = vmul.f32 %v4871_v23, %v365_v4  ;;  %v927_v11 = vld [vmem:[#allocation9 + $0x160] sm:$0xff]  ;;  %v349_v14 = vld [vmem:[%s4831_s23 + $0x10] sm:$0xff]  ;;  %v922_v15 = vld [vmem:[#allocation9 + $0x138] sm:$0xff] }
  0x50   : > { %503 = vst [vmem:[#allocation2 + $0x138] sm:$0x1] %v4664_v0  ;;  %4332 = vmatpush.msra.mxu3 %v597_v20  ;;  %778 = vmatpush.msra.mxu1 %v597_v20  ;;  %v467_v50 = vmax.f32 %v4929_v49, 0.0  ;;  %v420_v7 = vadd.f32 %v4882_v30, %v384_v5  ;;  %v1121_v12 = vld [vmem:[#allocation9 + $0x1e0] sm:$0xff]  ;;  %v385_v16 = vmul.f32 %v4871_v23, %v349_v14  ;;  %v369_v55 = vld [vmem:[%s4831_s23 + $0xb0] sm:$0xff] }
  0x51   : > { %504 = vst [vmem:[#allocation2 + $0x150] sm:$0x1] %v4664_v0  ;;  %666 = vmatpush.msra.mxu0 %v645_v21  ;;  %4317 = vmatpush.msra.mxu2 %v645_v21  ;;  %v419_v59 = vadd.f32 %v4882_v30, %v383_v57  ;;  %v437_v8 = vadd.f32 %v4882_v30, %v401_v6  ;;  %v1315_v25 = vld [vmem:[#allocation9 + $0x260] sm:$0xff]  ;;  %v1312_v3 = vld [vmem:[#allocation9 + $0x248] sm:$0xff]  ;;  %v370_v6 = vld [vmem:[%s4831_s23 + $0xb8] sm:$0xff] }
  0x52   : > { %505 = vst [vmem:[#allocation2 + $0x168] sm:$0x1] %v4664_v0  ;;  %4333 = vmatpush.msra.mxu3 %v596_v22  ;;  %779 = vmatpush.msra.mxu1 %v596_v22  ;;  %v4973_v9 = vmax.f32 %v420_v7, 0.0  ;;  %v421_v18 = vadd.f32 %v4882_v30, %v385_v16  ;;  %v438_v19 = vadd.f32 %v4882_v30, %v402_v17  ;;  %v926_v22 = vld [vmem:[#allocation9 + $0x158] sm:$0xff]  ;;  %v368_v42 = vld [vmem:[%s4831_s23 + $0xa8] sm:$0xff]  ;;  %v353_v4 = vld [vmem:[%s4831_s23 + $0x30] sm:$0xff] }
  0x53   : > { %506 = vst [vmem:[#allocation2 + $0x180] sm:$0x1] %v4664_v0  ;;  %667 = vmatpush.msra.mxu0 %v644_v24  ;;  %4318 = vmatpush.msra.mxu2 %v644_v24  ;;  %v4952_v61 = vmax.f32 %v419_v59, 0.0  ;;  %v469_v10 = vmax.f32 %v437_v8, 0.0  ;;  %v1120_v24 = vld [vmem:[#allocation9 + $0x1d8] sm:$0xff]  ;;  %v405_v56 = vmul.f32 %v4871_v23, %v369_v55  ;;  %v389_v5 = vmul.f32 %v4871_v23, %v353_v4  ;;  %v1311_v17 = vld [vmem:[#allocation9 + $0x240] sm:$0xff] }
  0x54   : > { %509 = vst [vmem:[#allocation2 + $0x29] sm:$0x1] %v4664_v0  ;;  %4334 = vmatpush.msra.mxu3 %v595_v26  ;;  %780 = vmatpush.msra.mxu1 %v595_v26  ;;  %v4991_v20 = vmax.f32 %v421_v18, 0.0  ;;  %v470_v26 = vmax.f32 %v438_v19, 0.0  ;;  %v351_v40 = vld [vmem:[%s4831_s23 + $0x20] sm:$0xff]  ;;  %v406_v7 = vmul.f32 %v4871_v23, %v370_v6  ;;  %v354_v18 = vld [vmem:[%s4831_s23 + $0x38] sm:$0xff] }
  0x55   : > { %510 = vst [vmem:[#allocation2 + $0x41] sm:$0x1] %v4664_v0  ;;  %668 = vmatpush.msra.mxu0 %v643_v27  ;;  %4319 = vmatpush.msra.mxu2 %v643_v27  ;;  %v350_v27 = vld [vmem:[%s4831_s23 + $0x18] sm:$0xff]  ;;  %v387_v41 = vmul.f32 %v4871_v23, %v351_v40  ;;  %v441_v59 = vadd.f32 %v4882_v30, %v405_v56 }
  0x56   : > { %511 = vst [vmem:[#allocation2 + $0x59] sm:$0x1] %v4664_v0  ;;  %4335 = vmatpush.msra.mxu3 %v594_v28  ;;  %781 = vmatpush.msra.mxu1 %v594_v28  ;;  %v367_v28 = vld [vmem:[%s4831_s23 + $0xa0] sm:$0xff]  ;;  %v425_v8 = vadd.f32 %v4882_v30, %v389_v5  ;;  %v390_v19 = vmul.f32 %v4871_v23, %v354_v18  ;;  %v374_v5 = vld [vmem:[%s4831_s23 + $0xd8] sm:$0xff] }
  0x57   : > { %512 = vst [vmem:[#allocation2 + $0x71] sm:$0x1] %v4664_v0  ;;  %669 = vmatpush.msra.mxu0 %v642_v31  ;;  %4320 = vmatpush.msra.mxu2 %v642_v31  ;;  %v403_v29 = vmul.f32 %v4871_v23, %v367_v28  ;;  %v1116_v16 = vld [vmem:[#allocation9 + $0x1b8] sm:$0xff]  ;;  %v410_v6 = vmul.f32 %v4871_v23, %v374_v5  ;;  %v1307_v18 = vld [vmem:[#allocation9 + $0x220] sm:$0xff]  ;;  %v1507_v5 = vld [vmem:[#allocation9 + $0x2d0] sm:$0xff] }
  0x58   : > { %513 = vst [vmem:[#allocation2 + $0x89] sm:$0x1] %v4664_v0  ;;  %4336 = vmatpush.msra.mxu3 %v593_v32  ;;  %782 = vmatpush.msra.mxu1 %v593_v32 }
  0x59   : > { %514 = vst [vmem:[#allocation2 + $0xa1] sm:$0x1] %v4664_v0  ;;  %670 = vmatpush.msra.mxu0 %v641_v33  ;;  %4321 = vmatpush.msra.mxu2 %v641_v33  ;;  %v439_v32 = vadd.f32 %v4882_v30, %v403_v29  ;;  %v921_v29 = vld [vmem:[#allocation9 + $0x130] sm:$0xff] }
  0x5a   : > { %515 = vst [vmem:[#allocation2 + $0xb9] sm:$0x1] %v4664_v0  ;;  %4337 = vmatpush.msra.mxu3 %v592_v34  ;;  %783 = vmatpush.msra.mxu1 %v592_v34 }
  0x5b   : > { %516 = vst [vmem:[#allocation2 + $0xd1] sm:$0x1] %v4664_v0  ;;  %671 = vmatpush.msra.mxu0 %v640_v36  ;;  %4322 = vmatpush.msra.mxu2 %v640_v36  ;;  %v471_v34 = vmax.f32 %v439_v32, 0.0  ;;  %v1310_v32 = vld [vmem:[#allocation9 + $0x238] sm:$0xff] }
  0x5c   : > { %517 = vst [vmem:[#allocation2 + $0xe9] sm:$0x1] %v4664_v0  ;;  %4338 = vmatpush.msra.mxu3 %v591_v37  ;;  %672 = vmatmul.f32.vlgmr.msra.gmra.mxu0 %v607_v38  ;;  %v1119_v38 = vld [vmem:[#allocation9 + $0x1d0] sm:$0xff] }
  0x5d   : > { %518 = vst [vmem:[#allocation2 + $0x101] sm:$0x1] %v4664_v0  ;;  %720 = vmatmul.f32.vlgmr.msra.gmra.mxu2 %v465_v39  ;;  %784 = vmatpush.msra.mxu1 %v591_v37  ;;  %v925_v37 = vld [vmem:[#allocation9 + $0x150] sm:$0xff] }
  0x5e   : > { %519 = vst [vmem:[#allocation2 + $0x119] sm:$0x1] %v4664_v0  ;;  %931 = vmatpush.msrb.mxu2 %v930_v44  ;;  %1125 = vmatpush.msrb.mxu3 %v1124_v45  ;;  %v423_v44 = vadd.f32 %v4882_v30, %v387_v41 }
  0x5f   : > { %520 = vst [vmem:[#allocation2 + $0x131] sm:$0x1] %v4664_v0  ;;  %785 = vmatmul.f32.vlgmr.msra.gmra.mxu1 %v559_v52  ;;  %1319 = vmatpush.msrb.mxu0 %v1318_v54  ;;  %v1313_v52 = vld [vmem:[#allocation9 + $0x250] sm:$0xff] }
  0x60   : > { %521 = vst [vmem:[#allocation2 + $0x149] sm:$0x1] %v4664_v0  ;;  %932 = vmatpush.msrb.mxu2 %v929_v51  ;;  %1126 = vmatpush.msrb.mxu3 %v1123_v53  ;;  %v5025_v48 = vmax.f32 %v423_v44, 0.0  ;;  %v1118_v51 = vld [vmem:[#allocation9 + $0x1c8] sm:$0xff] }
  0x61   : > { %522 = vst [vmem:[#allocation2 + $0x161] sm:$0x1] %v4664_v0  ;;  %1320 = vmatpush.msrb.mxu0 %v1317_v2  ;;  %v352_v53 = vld [vmem:[%s4831_s23 + $0x28] sm:$0xff] }
  0x62   : > { %523 = vst [vmem:[#allocation2 + $0x179] sm:$0x1] %v4664_v0  ;;  %933 = vmatpush.msrb.mxu2 %v928_v63  ;;  %1127 = vmatpush.msrb.mxu3 %v1122_v1  ;;  %v388_v54 = vmul.f32 %v4871_v23, %v352_v53  ;;  %v473_v63 = vmax.f32 %v441_v59, 0.0  ;;  %v923_v1 = vld [vmem:[#allocation9 + $0x140] sm:$0xff] }
  0x63   : > { %524 = vst [vmem:[#allocation2 + $0x191] sm:$0x1] %v4664_v0  ;;  %1321 = vmatpush.msrb.mxu0 %v1316_v13  ;;  %v1117_v2 = vld [vmem:[#allocation9 + $0x1c0] sm:$0xff]  ;;  %v5051_v13 = vmax.f32 %v425_v8, 0.0 }
  0x64   : > { %2345 = vst [vmem:[#allocation3] sm:$0xff] %v4664_v0  ;;  %675 = vmatmul.f32.gmra.mxu0 %v608_v46  ;;  %934 = vmatpush.msrb.mxu2 %v927_v11  ;;  %v424_v57 = vadd.f32 %v4882_v30, %v388_v54  ;;  %v442_v11 = vadd.f32 %v4882_v30, %v406_v7 }
  0x65   : > { %2346 = vst [vmem:[#allocation3 + $0x8] sm:$0xff] %v4664_v0  ;;  %723 = vmatmul.f32.gmra.mxu2 %v466_v43  ;;  %1128 = vmatpush.msrb.mxu3 %v1121_v12 }
  0x66   : > { %2347 = vst [vmem:[#allocation3 + $0x10] sm:$0x3] %v4664_v0  ;;  %935 = vmatpush.msrb.mxu2 %v926_v22  ;;  %1322 = vmatpush.msrb.mxu0 %v1315_v25  ;;  %v474_v14 = vmax.f32 %v442_v11, 0.0 }
  0x67   : > { %2349 = vst [vmem:[#allocation3 + $0x198] sm:$0xff] %v4664_v0  ;;  %788 = vmatmul.f32.gmra.mxu1 %v4664_v0  ;;  %1129 = vmatpush.msrb.mxu3 %v1120_v24  ;;  %v426_v24 = vadd.f32 %v4882_v30, %v390_v19  ;;  %v358_v19 = vld [vmem:[%s4831_s23 + $0x58] sm:$0xff] }
  0x68   : > { %2350 = vst [vmem:[#allocation3 + $0x1a0] sm:$0xff] %v4664_v0  ;;  %936 = vmatpush.msrb.mxu2 %v925_v37  ;;  %v372_v37 = vld [vmem:[%s4831_s23 + $0xc8] sm:$0xff] }
  0x69   : > { %2351 = vst [vmem:[#allocation3 + $0x1a8] sm:$0x3] %v4664_v0  ;;  %1130 = vmatpush.msrb.mxu3 %v1119_v38  ;;  %v5064_v28 = vmax.f32 %v426_v24, 0.0  ;;  %v408_v38 = vmul.f32 %v4871_v23, %v372_v37  ;;  %v1306_v37 = vld [vmem:[#allocation9 + $0x218] sm:$0xff] }
  0x6a   : > { %2353 = vst [vmem:[#allocation3 + $0x18] sm:$0x1] %v4664_v0 }
  0x6b   : > { %2354 = vst [vmem:[#allocation3 + $0x30] sm:$0x1] %v4664_v0  ;;  %1131 = vmatpush.msrb.mxu3 %v1118_v51  ;;  %v444_v41 = vadd.f32 %v4882_v30, %v408_v38  ;;  %v1512_v38 = vld [vmem:[#allocation9 + $0x2f8] sm:$0xff] }
  0x6c   : > { %2355 = vst [vmem:[#allocation3 + $0x48] sm:$0x1] %v4664_v0  ;;  %678 = vmatmul.f32.gmra.mxu0 %v4952_v61  ;;  %1513 = vmatpush.msrb.mxu1 %v1512_v38  ;;  %v1500_v38 = vld [vmem:[#allocation9 + $0x298] sm:$0xff] }
  0x6d   : > { %2356 = vst [vmem:[#allocation3 + $0x60] sm:$0x1] %v4664_v0  ;;  %726 = vmatmul.f32.gmra.mxu2 %v467_v50  ;;  %1132 = vmatpush.msrb.mxu3 %v1117_v2  ;;  %v476_v44 = vmax.f32 %v444_v41, 0.0  ;;  %v1308_v2 = vld [vmem:[#allocation9 + $0x228] sm:$0xff] }
  0x6e   : > { %2357 = vst [vmem:[#allocation3 + $0x78] sm:$0x1] %v4664_v0  ;;  %v376_v41 = vld [vmem:[%s4831_s23 + $0xe8] sm:$0xff] }
  0x6f   : > { %2358 = vst [vmem:[#allocation3 + $0x90] sm:$0x1] %v4664_v0  ;;  %1133 = vmatpush.msrb.mxu3 %v1116_v16  ;;  %v918_v16 = vld [vmem:[#allocation9 + $0x118] sm:$0xff] }
  0x70   : > { %2359 = vst [vmem:[#allocation3 + $0xa8] sm:$0x1] %v4664_v0 }
  0x71   : > { %2360 = vst [vmem:[#allocation3 + $0xc0] sm:$0x1] %v4664_v0 }
  0x72   : > { %2361 = vst [vmem:[#allocation3 + $0xd8] sm:$0x1] %v4664_v0 }
  0x73   : > { %2362 = vst [vmem:[#allocation3 + $0xf0] sm:$0x1] %v4664_v0 }
  0x74   : > { %2363 = vst [vmem:[#allocation3 + $0x108] sm:$0x1] %v4664_v0  ;;  %681 = vmatmul.f32.gmra.mxu0 %v4973_v9 }
  0x75   : > { %2364 = vst [vmem:[#allocation3 + $0x120] sm:$0x1] %v4664_v0  ;;  %729 = vmatmul.f32.gmra.mxu2 %v468_v62 }
  0x76   : > { %2365 = vst [vmem:[#allocation3 + $0x138] sm:$0x1] %v4664_v0 }
  0x77   : > { %2366 = vst [vmem:[#allocation3 + $0x150] sm:$0x1] %v4664_v0 }
  0x78   : > { %2367 = vst [vmem:[#allocation3 + $0x168] sm:$0x1] %v4664_v0 }
  0x79   : > { %2368 = vst [vmem:[#allocation3 + $0x180] sm:$0x1] %v4664_v0 }
  0x7a   : > { %2371 = vst [vmem:[#allocation3 + $0x29] sm:$0x1] %v4664_v0 }
  0x7b   : > { %2372 = vst [vmem:[#allocation3 + $0x41] sm:$0x1] %v4664_v0 }
  0x7c   : > { %2373 = vst [vmem:[#allocation3 + $0x59] sm:$0x1] %v4664_v0  ;;  %684 = vmatmul.f32.gmra.mxu0 %v4991_v20 }
  0x7d   : > { %2374 = vst [vmem:[#allocation3 + $0x71] sm:$0x1] %v4664_v0  ;;  %732 = vmatmul.f32.gmra.mxu2 %v469_v10 }
  0x7e   : > { %2375 = vst [vmem:[#allocation3 + $0x89] sm:$0x1] %v4664_v0 }
  0x7f   : > { %2376 = vst [vmem:[#allocation3 + $0xa1] sm:$0x1] %v4664_v0 }
  0x80   : > { %2377 = vst [vmem:[#allocation3 + $0xb9] sm:$0x1] %v4664_v0 }
  0x81   : > { %2378 = vst [vmem:[#allocation3 + $0xd1] sm:$0x1] %v4664_v0 }
  0x82   : > { %2379 = vst [vmem:[#allocation3 + $0xe9] sm:$0x1] %v4664_v0 }
  0x83   : > { %2380 = vst [vmem:[#allocation3 + $0x101] sm:$0x1] %v4664_v0 }
  0x84   : > { %2381 = vst [vmem:[#allocation3 + $0x119] sm:$0x1] %v4664_v0 }
  0x85   : > { %2382 = vst [vmem:[#allocation3 + $0x131] sm:$0x1] %v4664_v0  ;;  %735 = vmatmul.f32.gmra.mxu2 %v470_v26 }
  0x86   : > { %2383 = vst [vmem:[#allocation3 + $0x149] sm:$0x1] %v4664_v0 }
  0x87   : > { %2384 = vst [vmem:[#allocation3 + $0x161] sm:$0x1] %v4664_v0 }
  0x88   : > { %2385 = vst [vmem:[#allocation3 + $0x179] sm:$0x1] %v4664_v0 }
  0x89   : > { %2386 = vst [vmem:[#allocation3 + $0x191] sm:$0x1] %v4664_v0 }
  0x8a   : > { %541 = vst [vmem:[#allocation2 + $0xc1] sm:$0xff] %v465_v39  ;;  %v1314_v39 = vld [vmem:[#allocation9 + $0x258] sm:$0xff] }
  0x8b   : > { %507 = vst [vmem:[#allocation2 + $0x198] sm:$0x1] %v4664_v0  ;;  %1323 = vmatpush.msrb.mxu0 %v1314_v39 }
  0x8c   : > { %508 = vst [vmem:[#allocation2 + $0x11] sm:$0x1] %v4664_v0 }
  0x8d   : > { %525 = vst [vmem:[#allocation2 + $0x1a9] sm:$0x1] %v4664_v0  ;;  %738 = vmatmul.f32.gmra.mxu2 %v471_v34  ;;  %1324 = vmatpush.msrb.mxu0 %v1313_v52  ;;  %v373_v52 = vld [vmem:[%s4831_s23 + $0xd0] sm:$0xff] }
  0x8e   : > { %2352 = vst [vmem:[#allocation3] sm:$0x1] %v4664_v0  ;;  %v409_v53 = vmul.f32 %v4871_v23, %v373_v52 }
  0x8f   : > { %2369 = vst [vmem:[#allocation3 + $0x198] sm:$0x1] %v4664_v0  ;;  %1325 = vmatpush.msrb.mxu0 %v1312_v3  ;;  %v357_v3 = vld [vmem:[%s4831_s23 + $0x50] sm:$0xff] }
  0x90   : > { %2370 = vst [vmem:[#allocation3 + $0x11] sm:$0x1] %v4664_v0  ;;  %v445_v56 = vadd.f32 %v4882_v30, %v409_v53  ;;  %v393_v4 = vmul.f32 %v4871_v23, %v357_v3 }
  0x91   : > { %2387 = vst [vmem:[#allocation3 + $0x1a9] sm:$0x1] %v4664_v0  ;;  %v575_v21 = vld [vmem:[#allocation2 + $0xc0] sm:$0xff]  ;;  %v386_v0 = vmul.f32 %v4871_v23, %v350_v27  ;;  %1326 = vmatpush.msrb.mxu0 %v1311_v17 }
  0x92   : > { %833 = vmatmul.f32.vlgmr.msra.gmra.mxu3 %v575_v21  ;;  %542 = vst [vmem:[#allocation2 + $0xc9] sm:$0xff] %v466_v43  ;;  %v404_v43 = vmul.f32 %v4871_v23, %v368_v42  ;;  %v371_v21 = vld [vmem:[%s4831_s23 + $0xc0] sm:$0xff]  ;;  %v477_v59 = vmax.f32 %v445_v56, 0.0  ;;  %v429_v7 = vadd.f32 %v4882_v30, %v393_v4  ;;  %v1110_v56 = vld [vmem:[#allocation9 + $0x188] sm:$0xff] }
  0x93   : > { %527 = vst [vmem:[#allocation2 + $0x19] sm:$0xff] %v4952_v61  ;;  %v422_v31 = vadd.f32 %v4882_v30, %v386_v0  ;;  %v407_v22 = vmul.f32 %v4871_v23, %v371_v21  ;;  %1327 = vmatpush.msrb.mxu0 %v1310_v32  ;;  %v1112_v17 = vld [vmem:[#allocation9 + $0x198] sm:$0xff]  ;;  %v394_v21 = vmul.f32 %v4871_v23, %v358_v19 }
  0x94   : > { %543 = vst [vmem:[#allocation2 + $0xd9] sm:$0xff] %v467_v50  ;;  %v440_v46 = vadd.f32 %v4882_v30, %v404_v43  ;;  %v924_v50 = vld [vmem:[#allocation9 + $0x148] sm:$0xff]  ;;  %v1504_v19 = vld [vmem:[#allocation9 + $0x2b8] sm:$0xff] }
  0x95   : > { %528 = vst [vmem:[#allocation2 + $0x21] sm:$0xff] %v4973_v9  ;;  %v5010_v33 = vmax.f32 %v422_v31, 0.0  ;;  %937 = vmatpush.msrb.mxu2 %v924_v50  ;;  %v1115_v31 = vld [vmem:[#allocation9 + $0x1b0] sm:$0xff]  ;;  %v356_v50 = vld [vmem:[%s4831_s23 + $0x48] sm:$0xff] }
  0x96   : > { %544 = vst [vmem:[#allocation2 + $0xe1] sm:$0xff] %v468_v62  ;;  %v472_v49 = vmax.f32 %v440_v46, 0.0  ;;  %v5038_v62 = vmax.f32 %v424_v57, 0.0  ;;  %1134 = vmatpush.msrb.mxu3 %v1115_v31  ;;  %v1114_v46 = vld [vmem:[#allocation9 + $0x1a8] sm:$0xff]  ;;  %v392_v51 = vmul.f32 %v4871_v23, %v356_v50 }
  0x97   : > { %529 = vst [vmem:[#allocation2 + $0x31] sm:$0xff] %v4991_v20  ;;  %687 = vmatmul.f32.gmra.mxu0 %v5010_v33  ;;  %938 = vmatpush.msrb.mxu2 %v923_v1  ;;  %v1113_v1 = vld [vmem:[#allocation9 + $0x1a0] sm:$0xff] }
  0x98   : > { %545 = vst [vmem:[#allocation2 + $0xf1] sm:$0xff] %v469_v10  ;;  %741 = vmatmul.f32.gmra.mxu2 %v472_v49  ;;  %1135 = vmatpush.msrb.mxu3 %v1114_v46  ;;  %v428_v54 = vadd.f32 %v4882_v30, %v392_v51 }
  0x99   : > { %v576_v35 = vld [vmem:[#allocation2 + $0xc8] sm:$0xff]  ;;  %546 = vst [vmem:[#allocation2 + $0xf9] sm:$0xff] %v470_v26  ;;  %939 = vmatpush.msrb.mxu2 %v922_v15  ;;  %v443_v26 = vadd.f32 %v4882_v30, %v407_v22  ;;  %v375_v22 = vld [vmem:[%s4831_s23 + $0xe0] sm:$0xff] }
  0x9a   : > { %836 = vmatmul.f32.gmra.mxu3 %v576_v35  ;;  %v5012_v36 = vld [vmem:[#allocation2 + $0x18] sm:$0xff]  ;;  %530 = vst [vmem:[#allocation2 + $0x39] sm:$0xff] %v5010_v33  ;;  %v411_v24 = vmul.f32 %v4871_v23, %v375_v22 }
  0x9b   : > { %791 = vmatmul.f32.gmra.mxu1 %v5012_v36  ;;  %547 = vst [vmem:[#allocation2 + $0x109] sm:$0xff] %v471_v34  ;;  %v577_v45 = vld [vmem:[#allocation2 + $0xd8] sm:$0xff]  ;;  %v475_v0 = vmax.f32 %v443_v26, 0.0  ;;  %940 = vmatpush.msrb.mxu2 %v921_v29  ;;  %v355_v34 = vld [vmem:[%s4831_s23 + $0x40] sm:$0xff] }
  0x9c   : > { %v5023_v47 = vld [vmem:[#allocation2 + $0x20] sm:$0xff]  ;;  %531 = vst [vmem:[#allocation2 + $0x49] sm:$0xff] %v5025_v48  ;;  %v391_v35 = vmul.f32 %v4871_v23, %v355_v34  ;;  %1136 = vmatpush.msrb.mxu3 %v1113_v1  ;;  %v917_v34 = vld [vmem:[#allocation9 + $0x110] sm:$0xff] }
  0x9d   : > { %548 = vst [vmem:[#allocation2 + $0x111] sm:$0xff] %v472_v49  ;;  %v578_v58 = vld [vmem:[#allocation2 + $0xe0] sm:$0xff]  ;;  %v1309_v49 = vld [vmem:[#allocation9 + $0x230] sm:$0xff] }
  0x9e   : > { %v5036_v60 = vld [vmem:[#allocation2 + $0x30] sm:$0xff]  ;;  %532 = vst [vmem:[#allocation2 + $0x51] sm:$0xff] %v5038_v62  ;;  %v427_v39 = vadd.f32 %v4882_v30, %v391_v35  ;;  %1328 = vmatpush.msrb.mxu0 %v1309_v49  ;;  %1137 = vmatpush.msrb.mxu3 %v1112_v17  ;;  %v1508_v1 = vld [vmem:[#allocation9 + $0x2d8] sm:$0xff] }
  0x9f   : > { %690 = vmatmul.f32.gmra.mxu0 %v5025_v48  ;;  %549 = vst [vmem:[#allocation2 + $0x121] sm:$0xff] %v473_v63  ;;  %v579_v10 = vld [vmem:[#allocation2 + $0xf0] sm:$0xff] }
  0xa0   : > { %744 = vmatmul.f32.gmra.mxu2 %v473_v63  ;;  %533 = vst [vmem:[#allocation2 + $0x61] sm:$0xff] %v5051_v13  ;;  %v580_v25 = vld [vmem:[#allocation2 + $0xf8] sm:$0xff]  ;;  %v5077_v43 = vmax.f32 %v427_v39, 0.0  ;;  %v919_v63 = vld [vmem:[#allocation9 + $0x120] sm:$0xff]  ;;  %1329 = vmatpush.msrb.mxu0 %v1308_v2  ;;  %v1304_v17 = vld [vmem:[#allocation9 + $0x208] sm:$0xff] }
  0xa1   : > { %v5049_v12 = vld [vmem:[#allocation2 + $0x38] sm:$0xff]  ;;  %550 = vst [vmem:[#allocation2 + $0x129] sm:$0xff] %v474_v14  ;;  %v360_v2 = vld [vmem:[%s4831_s23 + $0x68] sm:$0xff] }
  0xa2   : > { %839 = vmatmul.f32.gmra.mxu3 %v577_v45  ;;  %534 = vst [vmem:[#allocation2 + $0x69] sm:$0xff] %v5064_v28  ;;  %v581_v40 = vld [vmem:[#allocation2 + $0x108] sm:$0xff]  ;;  %1330 = vmatpush.msrb.mxu0 %v1307_v18  ;;  %v1111_v35 = vld [vmem:[#allocation9 + $0x190] sm:$0xff]  ;;  %v396_v3 = vmul.f32 %v4871_v23, %v360_v2 }
  0xa3   : > { %794 = vmatmul.f32.gmra.mxu1 %v5023_v47  ;;  %v5062_v27 = vld [vmem:[#allocation2 + $0x48] sm:$0xff]  ;;  %551 = vst [vmem:[#allocation2 + $0x139] sm:$0xff] %v475_v0  ;;  %1138 = vmatpush.msrb.mxu3 %v1111_v35  ;;  %v1511_v39 = vld [vmem:[#allocation9 + $0x2f0] sm:$0xff] }
  0xa4   : > { %535 = vst [vmem:[#allocation2 + $0x79] sm:$0xff] %v5077_v43  ;;  %v920_v45 = vld [vmem:[#allocation9 + $0x128] sm:$0xff]  ;;  %1331 = vmatpush.msrb.mxu0 %v1306_v37  ;;  %1514 = vmatpush.msrb.mxu1 %v1511_v39  ;;  %v1501_v35 = vld [vmem:[#allocation9 + $0x2a0] sm:$0xff] }
  0xa5   : > { %v5075_v42 = vld [vmem:[#allocation2 + $0x50] sm:$0xff]  ;;  %941 = vmatpush.msrb.mxu2 %v920_v45  ;;  %552 = vst [vmem:[#allocation2 + $0x141] sm:$0xff] %v476_v44  ;;  %v412_v45 = vmul.f32 %v4871_v23, %v376_v41  ;;  %1139 = vmatpush.msrb.mxu3 %v1110_v56 }
  0xa6   : > { %v582_v55 = vld [vmem:[#allocation2 + $0x110] sm:$0xff]  ;;  %553 = vst [vmem:[#allocation2 + $0x151] sm:$0xff] %v477_v59  ;;  %v583_v8 = vld [vmem:[#allocation2 + $0x120] sm:$0xff] }
  0xa7   : > { %693 = vmatmul.f32.gmra.mxu0 %v5038_v62  ;;  %v5088_v57 = vld [vmem:[#allocation2 + $0x60] sm:$0xff]  ;;  %942 = vmatpush.msrb.mxu2 %v919_v63  ;;  %v448_v50 = vadd.f32 %v4882_v30, %v412_v45  ;;  %v883_v39 = vld [vmem:[#allocation2 + $0xa] sm:$0xff]  ;;  %v1499_v41 = vld [vmem:[#allocation9 + $0x290] sm:$0xff] }
  0xa8   : > { %747 = vmatmul.f32.gmra.mxu2 %v474_v14  ;;  %v5103_v14 = vmax.f32 %v429_v7, 0.0  ;;  %v584_v26 = vld [vmem:[#allocation2 + $0x128] sm:$0xff]  ;;  %v432_v7 = vadd.f32 %v4882_v30, %v396_v3  ;;  %v1706_v56 = vld [vmem:[#allocation9 + $0x370] sm:$0xff] }
  0xa9   : > { %v5101_v11 = vld [vmem:[#allocation2 + $0x68] sm:$0xff]  ;;  %943 = vmatpush.msrb.mxu2 %v918_v16  ;;  %v480_v53 = vmax.f32 %v448_v50, 0.0  ;;  %v1464_v50 = vld [vmem:[#allocation2 + $0x1a] sm:$0xff] }
  0xaa   : > { %842 = vmatmul.f32.gmra.mxu3 %v578_v58  ;;  %v5090_v58 = vmax.f32 %v428_v54, 0.0  ;;  %537 = vst [vmem:[#allocation2 + $0x91] sm:$0xff] %v5103_v14  ;;  %v585_v46 = vld [vmem:[#allocation2 + $0x138] sm:$0xff]  ;;  %v916_v54 = vld [vmem:[#allocation9 + $0x108] sm:$0xff]  ;;  %v1509_v63 = vld [vmem:[#allocation9 + $0x2e0] sm:$0xff] }
  0xab   : > { %797 = vmatmul.f32.gmra.mxu1 %v5036_v60  ;;  %v5114_v29 = vld [vmem:[#allocation2 + $0x78] sm:$0xff]  ;;  %944 = vmatpush.msrb.mxu2 %v917_v34  ;;  %556 = vst [vmem:[#allocation2 + $0x171] sm:$0xff] %v480_v53  ;;  %v1109_v16 = vld [vmem:[#allocation9 + $0x180] sm:$0xff]  ;;  %v1498_v45 = vld [vmem:[#allocation9 + $0x288] sm:$0xff] }
  0xac   : > { %536 = vst [vmem:[#allocation2 + $0x81] sm:$0xff] %v5090_v58  ;;  %v586_v4 = vld [vmem:[#allocation2 + $0x140] sm:$0xff]  ;;  %1140 = vmatpush.msrb.mxu3 %v1109_v16  ;;  %v1899_v16 = vld [vmem:[#allocation9 + $0x3e8] sm:$0xff] }
  0xad   : > { %945 = vmatpush.msrb.mxu2 %v916_v54  ;;  %v587_v22 = vld [vmem:[#allocation2 + $0x150] sm:$0xff] }
  0xaf   : > { %696 = vmatmul.f32.gmra.mxu0 %v5051_v13 }
  0xb0   : > { %750 = vmatmul.f32.gmra.mxu2 %v475_v0  ;;  %v447_v0 = vadd.f32 %v4882_v30, %v411_v24  ;;  %v1503_v24 = vld [vmem:[#allocation9 + $0x2b0] sm:$0xff] }
  0xb2   : > { %845 = vmatmul.f32.gmra.mxu3 %v579_v10  ;;  %v446_v10 = vadd.f32 %v4882_v30, %v410_v6  ;;  %v479_v32 = vmax.f32 %v447_v0, 0.0  ;;  %v5136_v6 = vld [vmem:[#allocation2 + $0x90] sm:$0xff] }
  0xb3   : > { %800 = vmatmul.f32.gmra.mxu1 %v5049_v12  ;;  %v5127_v51 = vld [vmem:[#allocation2 + $0x80] sm:$0xff]  ;;  %v1502_v0 = vld [vmem:[#allocation9 + $0x2a8] sm:$0xff] }
  0xb4   : > { %v478_v15 = vmax.f32 %v446_v10, 0.0  ;;  %555 = vst [vmem:[#allocation2 + $0x169] sm:$0xff] %v479_v32  ;;  %v915_v10 = vld [vmem:[#allocation9 + $0x100] sm:$0xff] }
  0xb5   : > { %946 = vmatpush.msrb.mxu2 %v915_v10  ;;  %v1466_v10 = vld [vmem:[#allocation2 + $0x32] sm:$0xff] }
  0xb6   : > { %554 = vst [vmem:[#allocation2 + $0x159] sm:$0xff] %v478_v15 }
  0xb7   : > { %699 = vmatmul.f32.gmra.mxu0 %v5064_v28 }
  0xb8   : > { %753 = vmatmul.f32.gmra.mxu2 %v476_v44 }
  0xba   : > { %848 = vmatmul.f32.gmra.mxu3 %v580_v25  ;;  %v430_v25 = vadd.f32 %v4882_v30, %v394_v21  ;;  %v882_v21 = vld [vmem:[#allocation2 + $0x2] sm:$0xff] }
  0xbb   : > { %803 = vmatmul.f32.gmra.mxu1 %v5062_v27  ;;  %v590_v2 = vld [vmem:[#allocation2 + $0x170] sm:$0xff] }
  0xbc   : > { %v5116_v31 = vmax.f32 %v430_v25, 0.0 }
  0xbe   : > { %538 = vst [vmem:[#allocation2 + $0x99] sm:$0xff] %v5116_v31 }
  0xbf   : > { %702 = vmatmul.f32.gmra.mxu0 %v5077_v43 }
  0xc0   : > { %756 = vmatmul.f32.gmra.mxu2 %v477_v59  ;;  %v1305_v59 = vld [vmem:[#allocation9 + $0x210] sm:$0xff] }
  0xc1   : > { %1332 = vmatpush.msrb.mxu0 %v1305_v59  ;;  %v1900_v59 = vld [vmem:[#allocation9 + $0x3f0] sm:$0xff] }
  0xc2   : > { %851 = vmatmul.f32.gmra.mxu3 %v581_v40  ;;  %v359_v40 = vld [vmem:[%s4831_s23 + $0x60] sm:$0xff] }
  0xc3   : > { %806 = vmatmul.f32.gmra.mxu1 %v5075_v42  ;;  %v395_v44 = vmul.f32 %v4871_v23, %v359_v40  ;;  %v1505_v23 = vld [vmem:[#allocation9 + $0x2c0] sm:$0xff]  ;;  %1333 = vmatpush.msrb.mxu0 %v1304_v17  ;;  %v588_v40 = vld [vmem:[#allocation2 + $0x158] sm:$0xff] }
  0xc5   : > { %v431_v49 = vadd.f32 %v4882_v30, %v395_v44  ;;  %v1303_v30 = vld [vmem:[#allocation9 + $0x200] sm:$0xff]  ;;  %v5146_v25 = vld [vmem:[#allocation2 + $0x98] sm:$0xff] }
  0xc6   : > { %1334 = vmatpush.msrb.mxu0 %v1303_v30 }
  0xc7   : > { %705 = vmatmul.f32.gmra.mxu0 %v5090_v58  ;;  %v5129_v52 = vmax.f32 %v431_v49, 0.0 }
  0xc8   : > { %759 = vmatmul.f32.gmra.mxu2 %v478_v15  ;;  %v1506_v15 = vld [vmem:[#allocation9 + $0x2c8] sm:$0xff] }
  0xc9   : > { %539 = vst [vmem:[#allocation2 + $0xa9] sm:$0xff] %v5129_v52 }
  0xca   : > { %854 = vmatmul.f32.gmra.mxu3 %v582_v55  ;;  %v1510_v55 = vld [vmem:[#allocation9 + $0x2e8] sm:$0xff] }
  0xcb   : > { %809 = vmatmul.f32.gmra.mxu1 %v5088_v57 }
  0xcc   : > { %1515 = vmatpush.msrb.mxu1 %v1510_v55 }
  0xce   : > { %1516 = vmatpush.msrb.mxu1 %v1509_v63 }
  0xcf   : > { %708 = vmatmul.f32.gmra.mxu0 %v5103_v14 }
  0xd0   : > { %762 = vmatmul.f32.gmra.mxu2 %v479_v32  ;;  %1517 = vmatpush.msrb.mxu1 %v1508_v1  ;;  %v1901_v32 = vld [vmem:[#allocation9 + $0x3f8] sm:$0xff]  ;;  %v5154_v44 = vld [vmem:[#allocation2 + $0xa8] sm:$0xff] }
  0xd1   : > { %1902 = vmatpush.msra.mxu3 %v1901_v32 }
  0xd2   : > { %857 = vmatmul.f32.gmra.mxu3 %v583_v8  ;;  %1518 = vmatpush.msrb.mxu1 %v1507_v5  ;;  %v5139_v8 = vmax.f32 %v432_v7, 0.0 }
  0xd3   : > { %812 = vmatmul.f32.gmra.mxu1 %v5101_v11  ;;  %1903 = vmatpush.msra.mxu3 %v1900_v59 }
  0xd4   : > { %540 = vst [vmem:[#allocation2 + $0xb1] sm:$0xff] %v5139_v8  ;;  %1519 = vmatpush.msrb.mxu1 %v1506_v15 }
  0xd5   : > { %1904 = vmatpush.msra.mxu3 %v1899_v16 }
  0xd6   : > { %1520 = vmatpush.msrb.mxu1 %v1505_v23 }
  0xd7   : > { %711 = vmatmul.f32.gmra.mxu0 %v5116_v31 }
  0xd8   : > { %765 = vmatmul.f32.gmra.mxu2 %v480_v53  ;;  %1521 = vmatpush.msrb.mxu1 %v1504_v19  ;;  %v589_v53 = vld [vmem:[#allocation2 + $0x168] sm:$0xff] }
  0xd9   : > { %v5144_v18 = vpop.f32.mrf.mxu0 }
  0xda   : > { %860 = vmatmul.f32.gmra.mxu3 %v584_v26  ;;  %1522 = vmatpush.msrb.mxu1 %v1503_v24  ;;  %v1707_v26 = vld [vmem:[#allocation9 + $0x378] sm:$0xff] }
  0xdb   : > { %815 = vmatmul.f32.gmra.mxu1 %v5114_v29  ;;  %1708 = vmatpush.msra.mxu2 %v1707_v26  ;;  %v5160_v55 = vld [vmem:[#allocation2 + $0xb0] sm:$0xff] }
  0xdc   : > { %1523 = vmatpush.msrb.mxu1 %v1502_v0  ;;  %v5163_v1 = vpop.f32.mrf.mxu1  ;;  %v1468_v26 = vld [vmem:[#allocation2 + $0x4a] sm:$0xff] }
  0xdd   : > { %1709 = vmatpush.msra.mxu2 %v1706_v56  ;;  %v1897_v56 = vld [vmem:[#allocation9 + $0x3d8] sm:$0xff] }
  0xde   : > { %1524 = vmatpush.msrb.mxu1 %v1501_v35  ;;  %v1898_v35 = vld [vmem:[#allocation9 + $0x3e0] sm:$0xff] }
  0xdf   : > { %714 = vmatmul.f32.gmra.mxu0 %v5129_v52  ;;  %1905 = vmatpush.msra.mxu3 %v1898_v35  ;;  %v1474_v35 = vld [vmem:[#allocation2 + $0x92] sm:$0xff] }
  0xe0   : > { %947 = vmatmul.f32.vlgmr.msrb.gmra.mxu2 %v882_v21  ;;  %v5148_v34 = vpop.f32.mrf.mxu2  ;;  %1525 = vmatpush.msrb.mxu1 %v1500_v38 }
  0xe1   : > { %v5152_v37 = vpop.f32.mrf.mxu0  ;;  %1906 = vmatpush.msra.mxu3 %v1897_v56 }
  0xe2   : > { %863 = vmatmul.f32.gmra.mxu3 %v585_v46  ;;  %1526 = vmatpush.msrb.mxu1 %v1499_v41  ;;  %v2095_v46 = vld [vmem:[#allocation9 + $0x478] sm:$0xff] }
  0xe3   : > { %818 = vmatmul.f32.gmra.mxu1 %v5127_v51  ;;  %2096 = vmatpush.msra.mxu0 %v2095_v46 }
  0xe4   : > { %1527 = vmatpush.msrb.mxu1 %v1498_v45  ;;  %v5169_v7 = vpop.f32.mrf.mxu1 }
  0xe7   : > { %717 = vmatmul.f32.gmra.mxu0 %v5139_v8 }
  0xe8   : > { %950 = vmatmul.f32.gmra.mxu2 %v883_v39  ;;  %v724_v49 = vpop.f32.mrf.mxu2  ;;  %v1469_v39 = vld [vmem:[#allocation2 + $0x52] sm:$0xff] }
  0xe9   : > { %v5158_v54 = vpop.f32.mrf.mxu0 }
  0xea   : > { %866 = vmatmul.f32.gmra.mxu3 %v586_v4  ;;  %v2094_v4 = vld [vmem:[#allocation9 + $0x470] sm:$0xff] }
  0xeb   : > { %821 = vmatmul.f32.gmra.mxu1 %v5136_v6  ;;  %2097 = vmatpush.msra.mxu0 %v2094_v4 }
  0xef   : > { %1335 = vmatmul.f32.vlgmr.msrb.gmra.mxu0 %v4952_v61  ;;  %v1497_v61 = vld [vmem:[#allocation9 + $0x280] sm:$0xff] }
  0xf0   : > { %1528 = vmatpush.msrb.mxu1 %v1497_v61  ;;  %953 = vmatmul.f32.gmra.mxu2 %v1464_v50  ;;  %v727_v63 = vpop.f32.mrf.mxu2 }
  0xf1   : > { %v5166_v3 = vpop.f32.mrf.mxu0 }
  0xf2   : > { %869 = vmatmul.f32.gmra.mxu3 %v587_v22 }
  0xf3   : > { %824 = vmatmul.f32.gmra.mxu1 %v5146_v25 }
  0xf7   : > { %1338 = vmatmul.f32.gmra.mxu0 %v4973_v9  ;;  %v1465_v9 = vld [vmem:[#allocation2 + $0x22] sm:$0xff] }
  0xf8   : > { %956 = vmatmul.f32.gmra.mxu2 %v1465_v9  ;;  %v730_v5 = vpop.f32.mrf.mxu2 }
  0xf9   : > { %v5171_v15 = vpop.f32.mrf.mxu0 }
  0xfa   : > { %872 = vmatmul.f32.gmra.mxu3 %v588_v40 }
  0xfb   : > { %827 = vmatmul.f32.gmra.mxu1 %v5154_v44 }
  0xff   : > { %1341 = vmatmul.f32.gmra.mxu0 %v4991_v20  ;;  %v1705_v20 = vld [vmem:[#allocation9 + $0x368] sm:$0xff] }
 0x100   : > { %959 = vmatmul.f32.gmra.mxu2 %v1466_v10  ;;  %v733_v17 = vpop.f32.mrf.mxu2 }
 0x101   : > { %1710 = vmatpush.msra.mxu2 %v1705_v20 }
 0x102   : > { %875 = vmatmul.f32.gmra.mxu3 %v589_v53  ;;  %v1703_v53 = vld [vmem:[#allocation9 + $0x358] sm:$0xff] }
 0x103   : > { %830 = vmatmul.f32.gmra.mxu1 %v5160_v55 }
 0x107   : > { %1344 = vmatmul.f32.gmra.mxu0 %v5010_v33  ;;  %v1467_v33 = vld [vmem:[#allocation2 + $0x3a] sm:$0xff] }
 0x108   : > { %962 = vmatmul.f32.gmra.mxu2 %v1467_v33  ;;  %v736_v22 = vpop.f32.mrf.mxu2 }
 0x10a   : > { %878 = vmatmul.f32.gmra.mxu3 %v590_v2 }
 0x10b   : > { %1529 = vmatmul.f32.vlgmr.msrb.gmra.mxu1 %v1464_v50 }
 0x10f   : > { %1347 = vmatmul.f32.gmra.mxu0 %v5025_v48 }
 0x110   : > { %965 = vmatmul.f32.gmra.mxu2 %v1468_v26 }
 0x112   : > { %1141 = vmatmul.f32.vlgmr.msrb.gmra.mxu3 %v5012_v36  ;;  %v2093_v36 = vld [vmem:[#allocation9 + $0x468] sm:$0xff] }
 0x113   : > { %1532 = vmatmul.f32.gmra.mxu1 %v1465_v9  ;;  %2098 = vmatpush.msra.mxu0 %v2093_v36  ;;  %v1473_v36 = vld [vmem:[#allocation2 + $0x82] sm:$0xff] }
 0x114   : > { %v5178_v19 = vpop.f32.mrf.mxu0 }
 0x115   : > { %v834_v23 = vpop.f32.mrf.mxu3 }
 0x116   : > { %v5176_v30 = vadd.f32 %v834_v23, %v5148_v34  ;;  %v1704_v34 = vld [vmem:[#allocation9 + $0x360] sm:$0xff]  ;;  %v1896_v23 = vld [vmem:[#allocation9 + $0x3d0] sm:$0xff] }
 0x117   : > { %1350 = vmatmul.f32.gmra.mxu0 %v5038_v62  ;;  %1711 = vmatpush.msra.mxu2 %v1704_v34 }
 0x118   : > { %v5180_v21 = vpop.f32.mrf.mxu1  ;;  %968 = vmatmul.f32.gmra.mxu2 %v1469_v39  ;;  %1907 = vmatpush.msra.mxu3 %v1896_v23  ;;  %v1477_v23 = vld [vmem:[#allocation2 + $0xb2] sm:$0xff] }
 0x119   : > { %1712 = vmatpush.msra.mxu2 %v1703_v53 }
 0x11a   : > { %1144 = vmatmul.f32.gmra.mxu3 %v5023_v47  ;;  %v739_v47 = vpop.f32.mrf.mxu2 }
 0x11b   : > { %1535 = vmatmul.f32.gmra.mxu1 %v1466_v10  ;;  %v1472_v10 = vld [vmem:[#allocation2 + $0x7a] sm:$0xff] }
 0x11c   : > { %v5186_v0 = vpop.f32.mrf.mxu0 }
 0x11d   : > { %v837_v48 = vpop.f32.mrf.mxu3 }
 0x11e   : > { %v5184_v24 = vadd.f32 %v837_v48, %v724_v49  ;;  %v1470_v49 = vld [vmem:[#allocation2 + $0x62] sm:$0xff] }
 0x11f   : > { %1353 = vmatmul.f32.gmra.mxu0 %v5051_v13 }
 0x120   : > { %v5188_v32 = vpop.f32.mrf.mxu1  ;;  %971 = vmatmul.f32.gmra.mxu2 %v1470_v49 }
 0x122   : > { %1147 = vmatmul.f32.gmra.mxu3 %v5036_v60  ;;  %v2092_v60 = vld [vmem:[#allocation9 + $0x460] sm:$0xff]  ;;  %v742_v45 = vpop.f32.mrf.mxu2 }
 0x123   : > { %1538 = vmatmul.f32.gmra.mxu1 %v1467_v33  ;;  %2099 = vmatpush.msra.mxu0 %v2092_v60  ;;  %v1895_v60 = vld [vmem:[#allocation9 + $0x3c8] sm:$0xff] }
 0x124   : > { %v5194_v40 = vpop.f32.mrf.mxu0  ;;  %1908 = vmatpush.msra.mxu3 %v1895_v60 }
 0x125   : > { %v840_v62 = vpop.f32.mrf.mxu3 }
 0x126   : > { %v5192_v38 = vadd.f32 %v840_v62, %v727_v63  ;;  %v1471_v63 = vld [vmem:[#allocation2 + $0x6a] sm:$0xff] }
 0x127   : > { %1356 = vmatmul.f32.gmra.mxu0 %v5064_v28 }
 0x128   : > { %v5196_v41 = vpop.f32.mrf.mxu1  ;;  %974 = vmatmul.f32.gmra.mxu2 %v1471_v63 }
 0x12a   : > { %1150 = vmatmul.f32.gmra.mxu3 %v5049_v12  ;;  %v745_v12 = vpop.f32.mrf.mxu2 }
 0x12b   : > { %1541 = vmatmul.f32.gmra.mxu1 %v1468_v26 }
 0x12c   : > { %v5202_v61 = vpop.f32.mrf.mxu0 }
 0x12d   : > { %v843_v46 = vpop.f32.mrf.mxu3 }
 0x12e   : > { %v5200_v13 = vadd.f32 %v843_v46, %v730_v5  ;;  %v1475_v46 = vld [vmem:[#allocation2 + $0x9a] sm:$0xff] }
 0x12f   : > { %1359 = vmatmul.f32.gmra.mxu0 %v5077_v43 }
 0x130   : > { %v5204_v50 = vpop.f32.mrf.mxu1  ;;  %977 = vmatmul.f32.gmra.mxu2 %v1472_v10 }
 0x132   : > { %1153 = vmatmul.f32.gmra.mxu3 %v5062_v27  ;;  %v2091_v27 = vld [vmem:[#allocation9 + $0x458] sm:$0xff]  ;;  %v748_v4 = vpop.f32.mrf.mxu2 }
 0x133   : > { %1544 = vmatmul.f32.gmra.mxu1 %v1469_v39  ;;  %2100 = vmatpush.msra.mxu0 %v2091_v27  ;;  %v1701_v39 = vld [vmem:[#allocation9 + $0x348] sm:$0xff] }
 0x134   : > { %v5210_v9 = vpop.f32.mrf.mxu0 }
 0x135   : > { %v846_v28 = vpop.f32.mrf.mxu3 }
 0x136   : > { %v5208_v59 = vadd.f32 %v846_v28, %v733_v17  ;;  %v1702_v17 = vld [vmem:[#allocation9 + $0x350] sm:$0xff] }
 0x137   : > { %1362 = vmatmul.f32.gmra.mxu0 %v5090_v58  ;;  %1713 = vmatpush.msra.mxu2 %v1702_v17 }
 0x138   : > { %v5212_v2 = vpop.f32.mrf.mxu1  ;;  %980 = vmatmul.f32.gmra.mxu2 %v1473_v36 }
 0x139   : > { %1714 = vmatpush.msra.mxu2 %v1701_v39 }
 0x13a   : > { %1156 = vmatmul.f32.gmra.mxu3 %v5075_v42  ;;  %v751_v42 = vpop.f32.mrf.mxu2 }
 0x13b   : > { %1547 = vmatmul.f32.gmra.mxu1 %v1470_v49 }
 0x13c   : > { %v5218_v20 = vpop.f32.mrf.mxu0 }
 0x13d   : > { %v849_v5 = vpop.f32.mrf.mxu3 }
 0x13e   : > { %v5216_v43 = vadd.f32 %v849_v5, %v736_v22  ;;  %v1284_v5 = vld [vmem:[#allocation2 + $0xc1] sm:$0xff] }
 0x13f   : > { %1365 = vmatmul.f32.gmra.mxu0 %v5103_v14 }
 0x140   : > { %v5220_v16 = vpop.f32.mrf.mxu1  ;;  %983 = vmatmul.f32.gmra.mxu2 %v1474_v35 }
 0x142   : > { %1159 = vmatmul.f32.gmra.mxu3 %v5088_v57  ;;  %v2090_v57 = vld [vmem:[#allocation9 + $0x450] sm:$0xff]  ;;  %v754_v26 = vpop.f32.mrf.mxu2 }
 0x143   : > { %1550 = vmatmul.f32.gmra.mxu1 %v1471_v63  ;;  %2101 = vmatpush.msra.mxu0 %v2090_v57  ;;  %v1285_v57 = vld [vmem:[#allocation2 + $0xc9] sm:$0xff] }
 0x144   : > { %v5226_v22 = vpop.f32.mrf.mxu0 }
 0x145   : > { %v852_v58 = vpop.f32.mrf.mxu3 }
 0x146   : > { %v5224_v33 = vadd.f32 %v852_v58, %v739_v47 }
 0x147   : > { %1368 = vmatmul.f32.gmra.mxu0 %v5116_v31 }
 0x148   : > { %v5228_v48 = vpop.f32.mrf.mxu1  ;;  %986 = vmatmul.f32.gmra.mxu2 %v1475_v46 }
 0x14a   : > { %1162 = vmatmul.f32.gmra.mxu3 %v5101_v11  ;;  %v5239_v11 = vpop.f32.mrf.mxu2 }
 0x14b   : > { %1553 = vmatmul.f32.gmra.mxu1 %v1472_v10  ;;  %v1894_v10 = vld [vmem:[#allocation9 + $0x3c0] sm:$0xff] }
 0x14c   : > { %v5234_v47 = vpop.f32.mrf.mxu0  ;;  %1909 = vmatpush.msra.mxu3 %v1894_v10  ;;  %v1479_v10 = vld [vmem:[#allocation2 + $0xca] sm:$0xff] }
 0x14d   : > { %v855_v34 = vpop.f32.mrf.mxu3 }
 0x14e   : > { %v5232_v14 = vadd.f32 %v855_v34, %v742_v45 }
 0x14f   : > { %1371 = vmatmul.f32.gmra.mxu0 %v5129_v52 }
 0x150   : > { %v5236_v62 = vpop.f32.mrf.mxu1 }
 0x152   : > { %1165 = vmatmul.f32.gmra.mxu3 %v5114_v29  ;;  %v2089_v29 = vld [vmem:[#allocation9 + $0x448] sm:$0xff]  ;;  %v5249_v56 = vpop.f32.mrf.mxu2 }
 0x153   : > { %1556 = vmatmul.f32.gmra.mxu1 %v1473_v36  ;;  %2102 = vmatpush.msra.mxu0 %v2089_v29  ;;  %v1286_v29 = vld [vmem:[#allocation2 + $0xd9] sm:$0xff] }
 0x154   : > { %v5244_v49 = vpop.f32.mrf.mxu0 }
 0x155   : > { %v858_v31 = vpop.f32.mrf.mxu3 }
 0x156   : > { %v5242_v45 = vadd.f32 %v858_v31, %v745_v12  ;;  %v1476_v12 = vld [vmem:[#allocation2 + $0xaa] sm:$0xff]  ;;  %v787_v31 = vadd.f32 %v5163_v1, %v5144_v18 }
 0x157   : > { %1374 = vmatmul.f32.gmra.mxu0 %v5139_v8  ;;  %989 = vmatmul.f32.gmra.mxu2 %v1476_v12 }
 0x158   : > { %v5246_v53 = vpop.f32.mrf.mxu1 }
 0x15a   : > { %1168 = vmatmul.f32.gmra.mxu3 %v5127_v51  ;;  %v1700_v51 = vld [vmem:[#allocation9 + $0x340] sm:$0xff]  ;;  %v5259_v17 = vpop.f32.mrf.mxu2 }
 0x15b   : > { %1559 = vmatmul.f32.gmra.mxu1 %v1474_v35  ;;  %1715 = vmatpush.msra.mxu2 %v1700_v51 }
 0x15c   : > { %v5256_v27 = vpop.f32.mrf.mxu0 }
 0x15d   : > { %v861_v52 = vpop.f32.mrf.mxu3 }
 0x15e   : > { %v5252_v28 = vadd.f32 %v861_v52, %v748_v4  ;;  %v1893_v52 = vld [vmem:[#allocation9 + $0x3b8] sm:$0xff] }
 0x15f   : > { %1377 = vmatmul.f32.gmra.mxu0 %v1284_v5  ;;  %992 = vmatmul.f32.gmra.mxu2 %v1477_v23 }
 0x160   : > { %v5254_v63 = vpop.f32.mrf.mxu1  ;;  %1910 = vmatpush.msra.mxu3 %v1893_v52  ;;  %v1698_v52 = vld [vmem:[#allocation9 + $0x330] sm:$0xff] }
 0x162   : > { %1171 = vmatmul.f32.gmra.mxu3 %v5136_v6  ;;  %v2088_v6 = vld [vmem:[#allocation9 + $0x440] sm:$0xff]  ;;  %v5268_v34 = vpop.f32.mrf.mxu2 }
 0x163   : > { %1562 = vmatmul.f32.gmra.mxu1 %v1475_v46  ;;  %2103 = vmatpush.msra.mxu0 %v2088_v6 }
 0x164   : > { %v5265_v36 = vpop.f32.mrf.mxu0 }
 0x165   : > { %v864_v8 = vpop.f32.mrf.mxu3 }
 0x166   : > { %v5261_v4 = vadd.f32 %v864_v8, %v751_v42  ;;  %v1478_v42 = vld [vmem:[#allocation2 + $0xc2] sm:$0xff] }
 0x167   : > { %1380 = vmatmul.f32.gmra.mxu0 %v1285_v57  ;;  %995 = vmatmul.f32.gmra.mxu2 %v1478_v42  ;;  %v1287_v8 = vld [vmem:[#allocation2 + $0xe1] sm:$0xff] }
 0x168   : > { %v5263_v58 = vpop.f32.mrf.mxu1  ;;  %v2087_v57 = vld [vmem:[#allocation9 + $0x438] sm:$0xff] }
 0x169   : > { %2104 = vmatpush.msra.mxu0 %v2087_v57 }
 0x16a   : > { %1174 = vmatmul.f32.gmra.mxu3 %v5146_v25  ;;  %v1699_v25 = vld [vmem:[#allocation9 + $0x338] sm:$0xff] }
 0x16b   : > { %1565 = vmatmul.f32.gmra.mxu1 %v1476_v12  ;;  %v948_v12 = vpop.f32.mrf.mxu2  ;;  %1716 = vmatpush.msra.mxu2 %v1699_v25  ;;  %v1288_v25 = vld [vmem:[#allocation2 + $0xf1] sm:$0xff] }
 0x16c   : > { %v5276_v46 = vpop.f32.mrf.mxu0  ;;  %v5279_v5 = vadd.f32 %v948_v12, %v787_v31  ;;  %v1892_v12 = vld [vmem:[#allocation9 + $0x3b0] sm:$0xff] }
 0x16d   : > { %v867_v35 = vpop.f32.mrf.mxu3  ;;  %1717 = vmatpush.msra.mxu2 %v1698_v52  ;;  %1911 = vmatpush.msra.mxu3 %v1892_v12  ;;  %v799_v12 = vadd.f32 %v5196_v41, %v5171_v15  ;;  %v1093_v15 = vld [vmem:[#allocation2 + $0xe0] sm:$0xff] }
 0x16e   : > { %v5270_v39 = vadd.f32 %v867_v35, %v754_v26 }
 0x16f   : > { %1383 = vmatmul.f32.gmra.mxu0 %v1286_v29  ;;  %998 = vmatmul.f32.gmra.mxu2 %v1479_v10  ;;  %v5296_v29 = vld [vmem:[#allocation2 + $0xda] sm:$0xff] }
 0x170   : > { %v5272_v60 = vpop.f32.mrf.mxu1 }
 0x172   : > { %1177 = vmatmul.f32.gmra.mxu3 %v5154_v44  ;;  %v790_v44 = vadd.f32 %v5169_v7, %v5152_v37  ;;  %v1090_v37 = vld [vmem:[#allocation2 + $0xc0] sm:$0xff] }
 0x173   : > { %1568 = vmatmul.f32.gmra.mxu1 %v1477_v23  ;;  %v2517_v23 = vld [vmem:[#allocation10 + $0xf8] sm:$0xff]  ;;  %v951_v6 = vpop.f32.mrf.mxu2 }
 0x174   : > { %v5288_v1 = vpop.f32.mrf.mxu0  ;;  %v5291_v35 = vadd.f32 %v951_v6, %v790_v44  ;;  %2518 = vmatpush.msra.mxu1 %v2517_v23  ;;  %v796_v23 = vadd.f32 %v5188_v32, %v5166_v3  ;;  %v5323_v3 = vld [vmem:[#allocation2 + $0xf2] sm:$0xff] }
 0x175   : > { %v870_v26 = vpop.f32.mrf.mxu3  ;;  %v1092_v32 = vld [vmem:[#allocation2 + $0xd8] sm:$0xff] }
 0x176   : > { %v5282_v51 = vadd.f32 %v870_v26, %v5239_v11 }
 0x177   : > { %1386 = vmatmul.f32.gmra.mxu0 %v1287_v8  ;;  %1001 = vmatmul.f32.gmra.mxu2 %v5296_v29 }
 0x178   : > { %v5284_v18 = vpop.f32.mrf.mxu1 }
 0x17a   : > { %1180 = vmatmul.f32.gmra.mxu3 %v5160_v55  ;;  %v793_v55 = vadd.f32 %v5180_v21, %v5158_v54  ;;  %v5310_v54 = vld [vmem:[#allocation2 + $0xe2] sm:$0xff] }
 0x17b   : > { %1571 = vmatmul.f32.gmra.mxu1 %v1478_v42  ;;  %v954_v26 = vpop.f32.mrf.mxu2  ;;  %v1091_v21 = vld [vmem:[#allocation2 + $0xc8] sm:$0xff] }
 0x17c   : > { %v5303_v42 = vpop.f32.mrf.mxu0 }
 0x17d   : > { %v873_v11 = vpop.f32.mrf.mxu3 }
 0x17e   : > { %v5294_v31 = vadd.f32 %v873_v11, %v5249_v56  ;;  %v5305_v56 = vadd.f32 %v954_v26, %v793_v55  ;;  %v2516_v11 = vld [vmem:[#allocation10 + $0xf0] sm:$0xff] }
 0x17f   : > { %1389 = vmatmul.f32.gmra.mxu0 %v1288_v25  ;;  %1004 = vmatmul.f32.gmra.mxu2 %v5310_v54 }
 0x180   : > { %v5301_v7 = vpop.f32.mrf.mxu1  ;;  %2519 = vmatpush.msra.mxu1 %v2516_v11 }
 0x182   : > { %1183 = vmatmul.f32.gmra.mxu3 %v1090_v37  ;;  %v2086_v37 = vld [vmem:[#allocation9 + $0x430] sm:$0xff] }
 0x183   : > { %1574 = vmatmul.f32.gmra.mxu1 %v1479_v10  ;;  %v1289_v10 = vld [vmem:[#allocation2 + $0xf9] sm:$0xff]  ;;  %v957_v55 = vpop.f32.mrf.mxu2  ;;  %2105 = vmatpush.msra.mxu0 %v2086_v37 }
 0x184   : > { %v5315_v6 = vpop.f32.mrf.mxu0 }
 0x185   : > { %v876_v44 = vpop.f32.mrf.mxu3 }
 0x186   : > { %v5308_v8 = vadd.f32 %v876_v44, %v5259_v17  ;;  %v5318_v17 = vadd.f32 %v957_v55, %v796_v23  ;;  %v1290_v44 = vld [vmem:[#allocation2 + $0x109] sm:$0xff] }
 0x187   : > { %1392 = vmatmul.f32.gmra.mxu0 %v1289_v10  ;;  %1007 = vmatmul.f32.gmra.mxu2 %v5323_v3  ;;  %v1891_v23 = vld [vmem:[#allocation9 + $0x3a8] sm:$0xff] }
 0x188   : > { %v1530_v57 = vpop.f32.mrf.mxu1  ;;  %1912 = vmatpush.msra.mxu3 %v1891_v23  ;;  %v2085_v23 = vld [vmem:[#allocation9 + $0x428] sm:$0xff] }
 0x189   : > { %2106 = vmatpush.msra.mxu0 %v2085_v23  ;;  %v1890_v23 = vld [vmem:[#allocation9 + $0x3a0] sm:$0xff] }
 0x18a   : > { %1186 = vmatmul.f32.gmra.mxu3 %v1091_v21  ;;  %v1697_v21 = vld [vmem:[#allocation9 + $0x328] sm:$0xff] }
 0x18b   : > { %1577 = vmatmul.f32.gmra.mxu1 %v5296_v29  ;;  %v960_v10 = vpop.f32.mrf.mxu2  ;;  %1718 = vmatpush.msra.mxu2 %v1697_v21  ;;  %v1291_v21 = vld [vmem:[#allocation2 + $0x111] sm:$0xff] }
 0x18c   : > { %v5328_v26 = vpop.f32.mrf.mxu0  ;;  %1913 = vmatpush.msra.mxu3 %v1890_v23  ;;  %v2084_v23 = vld [vmem:[#allocation9 + $0x420] sm:$0xff] }
 0x18d   : > { %v879_v25 = vpop.f32.mrf.mxu3  ;;  %2107 = vmatpush.msra.mxu0 %v2084_v23 }
 0x18e   : > { %v5321_v52 = vadd.f32 %v879_v25, %v5268_v34  ;;  %v5331_v34 = vadd.f32 %v960_v10, %v799_v12  ;;  %v5334_v25 = vld [vmem:[#allocation2 + $0xfa] sm:$0xff] }
 0x18f   : > { %1395 = vmatmul.f32.gmra.mxu0 %v1290_v44  ;;  %1010 = vmatmul.f32.gmra.mxu2 %v5334_v25  ;;  %v2515_v44 = vld [vmem:[#allocation10 + $0xe8] sm:$0xff] }
 0x190   : > { %6701 = vst [vmem:[#allocation17_spill] sm:$0xff] %v5321_v52  ;;  %v1533_v11 = vpop.f32.mrf.mxu1  ;;  %2520 = vmatpush.msra.mxu1 %v2515_v44  ;;  %v1696_v44 = vld [vmem:[#allocation9 + $0x320] sm:$0xff] }
 0x191   : > { %1719 = vmatpush.msra.mxu2 %v1696_v44  ;;  %v2514_v44 = vld [vmem:[#allocation10 + $0xe0] sm:$0xff] }
 0x192   : > { %1189 = vmatmul.f32.gmra.mxu3 %v1092_v32  ;;  %v802_v32 = vadd.f32 %v5204_v50, %v5178_v19  ;;  %v5348_v50 = vld [vmem:[#allocation2 + $0x10a] sm:$0xff]  ;;  %2521 = vmatpush.msra.mxu1 %v2514_v44  ;;  %v1889_v44 = vld [vmem:[#allocation9 + $0x398] sm:$0xff] }
 0x193   : > { %1580 = vmatmul.f32.gmra.mxu1 %v5310_v54  ;;  %v963_v10 = vpop.f32.mrf.mxu2  ;;  %1914 = vmatpush.msra.mxu3 %v1889_v44 }
 0x194   : > { %v5340_v52 = vpop.f32.mrf.mxu0 }
 0x195   : > { %v1142_v37 = vpop.f32.mrf.mxu3 }
 0x196   : > { %v1238_v55 = vadd.f32 %v1142_v37, %v5279_v5  ;;  %v5345_v5 = vadd.f32 %v963_v10, %v802_v32  ;;  %v1292_v32 = vld [vmem:[#allocation2 + $0x121] sm:$0xff] }
 0x197   : > { %1398 = vmatmul.f32.gmra.mxu0 %v1291_v21  ;;  %1013 = vmatmul.f32.gmra.mxu2 %v5348_v50 }
 0x198   : > { %v1432_v41 = vadd.f32 %v5276_v46, %v1238_v55  ;;  %v1536_v37 = vpop.f32.mrf.mxu1  ;;  %v1094_v55 = vld [vmem:[#allocation2 + $0xf0] sm:$0xff] }
 0x19a   : > { %1192 = vmatmul.f32.gmra.mxu3 %v1093_v15  ;;  %v5342_v12 = vadd.f32 %v1530_v57, %v1432_v41  ;;  %v805_v15 = vadd.f32 %v5212_v2, %v5186_v0  ;;  %v5362_v0 = vld [vmem:[#allocation2 + $0x112] sm:$0xff] }
 0x19b   : > { %1583 = vmatmul.f32.gmra.mxu1 %v5323_v3  ;;  %v966_v10 = vpop.f32.mrf.mxu2  ;;  %v1095_v2 = vld [vmem:[#allocation2 + $0xf8] sm:$0xff] }
 0x19c   : > { %v5354_v41 = vpop.f32.mrf.mxu0 }
 0x19d   : > { %v1145_v46 = vpop.f32.mrf.mxu3 }
 0x19e   : > { %v1239_v19 = vadd.f32 %v1145_v46, %v5291_v35  ;;  %v5359_v35 = vadd.f32 %v966_v10, %v805_v15  ;;  %v1293_v15 = vld [vmem:[#allocation2 + $0x129] sm:$0xff] }
 0x19f   : > { %1401 = vmatmul.f32.gmra.mxu0 %v1292_v32  ;;  %1016 = vmatmul.f32.gmra.mxu2 %v5362_v0 }
 0x1a0   : > { %v1433_v57 = vadd.f32 %v5288_v1, %v1239_v19  ;;  %v1539_v19 = vpop.f32.mrf.mxu1 }
 0x1a2   : > { %1195 = vmatmul.f32.gmra.mxu3 %v1094_v55  ;;  %v5356_v21 = vadd.f32 %v1533_v11, %v1433_v57  ;;  %v808_v55 = vadd.f32 %v5220_v16, %v5194_v40  ;;  %v1486_v40 = vld [vmem:[#allocation2 + $0x122] sm:$0xff] }
 0x1a3   : > { %1586 = vmatmul.f32.gmra.mxu1 %v5334_v25  ;;  %v1096_v16 = vld [vmem:[#allocation2 + $0x108] sm:$0xff] }
 0x1a4   : > { %v5368_v57 = vpop.f32.mrf.mxu0 }
 0x1a5   : > { %v1148_v1 = vpop.f32.mrf.mxu3 }
 0x1a6   : > { %v1240_v46 = vadd.f32 %v1148_v1, %v5305_v56  ;;  %v969_v56 = vpop.f32.mrf.mxu2 }
 0x1a7   : > { %v5373_v10 = vadd.f32 %v969_v56, %v808_v55  ;;  %1404 = vmatmul.f32.gmra.mxu0 %v1293_v15  ;;  %1019 = vmatmul.f32.gmra.mxu2 %v1486_v40  ;;  %v1695_v15 = vld [vmem:[#allocation9 + $0x318] sm:$0xff]  ;;  %v1097_v56 = vld [vmem:[#allocation2 + $0x110] sm:$0xff] }
 0x1a8   : > { %v1434_v11 = vadd.f32 %v5303_v42, %v1240_v46  ;;  %1720 = vmatpush.msra.mxu2 %v1695_v15 }
 0x1aa   : > { %1198 = vmatmul.f32.gmra.mxu3 %v1095_v2  ;;  %v5370_v32 = vadd.f32 %v1536_v37, %v1434_v11  ;;  %v811_v37 = vadd.f32 %v5228_v48, %v5202_v61  ;;  %v1542_v2 = vpop.f32.mrf.mxu1  ;;  %v1487_v48 = vld [vmem:[#allocation2 + $0x12a] sm:$0xff] }
 0x1ab   : > { %1589 = vmatmul.f32.gmra.mxu1 %v5348_v50 }
 0x1ac   : > { %6702 = vst [vmem:[#allocation18_spill] sm:$0xff] %v5370_v32  ;;  %v5379_v11 = vpop.f32.mrf.mxu0  ;;  %v1294_v32 = vld [vmem:[#allocation2 + $0x139] sm:$0xff] }
 0x1ad   : > { %v1151_v42 = vpop.f32.mrf.mxu3 }
 0x1ae   : > { %v1241_v1 = vadd.f32 %v1151_v42, %v5318_v17  ;;  %v972_v23 = vpop.f32.mrf.mxu2 }
 0x1af   : > { %v5384_v17 = vadd.f32 %v972_v23, %v811_v37  ;;  %1407 = vmatmul.f32.gmra.mxu0 %v1294_v32  ;;  %1022 = vmatmul.f32.gmra.mxu2 %v1487_v48  ;;  %v2513_v37 = vld [vmem:[#allocation10 + $0xd8] sm:$0xff] }
 0x1b0   : > { %v1435_v46 = vadd.f32 %v5315_v6, %v1241_v1  ;;  %v2083_v32 = vld [vmem:[#allocation9 + $0x418] sm:$0xff]  ;;  %2522 = vmatpush.msra.mxu1 %v2513_v37 }
 0x1b1   : > { %2108 = vmatpush.msra.mxu0 %v2083_v32 }
 0x1b2   : > { %1201 = vmatmul.f32.gmra.mxu3 %v1096_v16  ;;  %v5381_v55 = vadd.f32 %v1539_v19, %v1435_v46  ;;  %v814_v19 = vadd.f32 %v5236_v62, %v5210_v9  ;;  %v1295_v16 = vld [vmem:[#allocation2 + $0x141] sm:$0xff]  ;;  %v1545_v44 = vpop.f32.mrf.mxu1 }
 0x1b3   : > { %1592 = vmatmul.f32.gmra.mxu1 %v5362_v0  ;;  %v1488_v9 = vld [vmem:[#allocation2 + $0x13a] sm:$0xff] }
 0x1b4   : > { %v5390_v1 = vpop.f32.mrf.mxu0  ;;  %v1098_v62 = vld [vmem:[#allocation2 + $0x120] sm:$0xff] }
 0x1b5   : > { %v1154_v6 = vpop.f32.mrf.mxu3 }
 0x1b6   : > { %v1242_v61 = vadd.f32 %v1154_v6, %v5331_v34  ;;  %v975_v15 = vpop.f32.mrf.mxu2 }
 0x1b7   : > { %v5394_v34 = vadd.f32 %v975_v15, %v814_v19  ;;  %1410 = vmatmul.f32.gmra.mxu0 %v1295_v16  ;;  %1025 = vmatmul.f32.gmra.mxu2 %v1488_v9  ;;  %v1888_v19 = vld [vmem:[#allocation9 + $0x390] sm:$0xff] }
 0x1b8   : > { %v1436_v42 = vadd.f32 %v5328_v26, %v1242_v61  ;;  %1915 = vmatpush.msra.mxu3 %v1888_v19 }
 0x1ba   : > { %1204 = vmatmul.f32.gmra.mxu3 %v1097_v56  ;;  %v5392_v46 = vadd.f32 %v1542_v2, %v1436_v42  ;;  %v817_v2 = vadd.f32 %v5246_v53, %v5218_v20  ;;  %v1296_v56 = vld [vmem:[#allocation2 + $0x151] sm:$0xff]  ;;  %v1489_v20 = vld [vmem:[#allocation2 + $0x142] sm:$0xff] }
 0x1bb   : > { %1595 = vmatmul.f32.gmra.mxu1 %v1486_v40  ;;  %v1694_v42 = vld [vmem:[#allocation9 + $0x310] sm:$0xff]  ;;  %v1099_v53 = vld [vmem:[#allocation2 + $0x128] sm:$0xff] }
 0x1bc   : > { %v5400_v61 = vpop.f32.mrf.mxu0  ;;  %1721 = vmatpush.msra.mxu2 %v1694_v42  ;;  %v1490_v42 = vld [vmem:[#allocation2 + $0x152] sm:$0xff] }
 0x1bd   : > { %v1157_v26 = vpop.f32.mrf.mxu3 }
 0x1be   : > { %v1243_v23 = vadd.f32 %v1157_v26, %v5345_v5  ;;  %v978_v16 = vpop.f32.mrf.mxu2 }
 0x1bf   : > { %v5404_v5 = vadd.f32 %v978_v16, %v817_v2  ;;  %1413 = vmatmul.f32.gmra.mxu0 %v1296_v56  ;;  %1028 = vmatmul.f32.gmra.mxu2 %v1489_v20  ;;  %v823_v16 = vadd.f32 %v5263_v58, %v5234_v47  ;;  %v1491_v58 = vld [vmem:[#allocation2 + $0x15a] sm:$0xff] }
 0x1c0   : > { %v1437_v6 = vadd.f32 %v5340_v52, %v1243_v23  ;;  %v1548_v52 = vpop.f32.mrf.mxu1 }
 0x1c2   : > { %1207 = vmatmul.f32.gmra.mxu3 %v1098_v62  ;;  %v5402_v40 = vadd.f32 %v1545_v44, %v1437_v6  ;;  %v820_v44 = vadd.f32 %v5254_v63, %v5226_v22  ;;  %v2512_v62 = vld [vmem:[#allocation10 + $0xd0] sm:$0xff] }
 0x1c3   : > { %1598 = vmatmul.f32.gmra.mxu1 %v1487_v48  ;;  %v1297_v48 = vld [vmem:[#allocation2 + $0x159] sm:$0xff] }
 0x1c4   : > { %v5410_v26 = vpop.f32.mrf.mxu0  ;;  %v2082_v6 = vld [vmem:[#allocation9 + $0x410] sm:$0xff]  ;;  %2523 = vmatpush.msra.mxu1 %v2512_v62 }
 0x1c5   : > { %v1160_v37 = vpop.f32.mrf.mxu3  ;;  %2109 = vmatpush.msra.mxu0 %v2082_v6  ;;  %v1100_v22 = vld [vmem:[#allocation2 + $0x138] sm:$0xff]  ;;  %v4426_v6 = vld [vmem:[%s6683_s2] ss:$0 sm:$0xff] }
 0x1c6   : > { %v1244_v32 = vadd.f32 %v1160_v37, %v5359_v35  ;;  %v981_v2 = vpop.f32.mrf.mxu2 }
 0x1c7   : > { %v5414_v35 = vadd.f32 %v981_v2, %v820_v44  ;;  %1416 = vmatmul.f32.gmra.mxu0 %v1297_v48  ;;  %1031 = vmatmul.f32.gmra.mxu2 %v1490_v42  ;;  %v377_v44 = vld [vmem:[%s4831_s23 + $0xf0] sm:$0xff] }
 0x1c8   : > { %v1438_v15 = vadd.f32 %v5354_v41, %v1244_v32  ;;  %v1551_v63 = vpop.f32.mrf.mxu1  ;;  %v1693_v32 = vld [vmem:[#allocation9 + $0x308] sm:$0xff] }
 0x1c9   : > { %1722 = vmatpush.msra.mxu2 %v1693_v32 }
 0x1ca   : > { %1210 = vmatmul.f32.gmra.mxu3 %v1099_v53  ;;  %v5412_v23 = vadd.f32 %v1548_v52, %v1438_v15  ;;  %v1887_v53 = vld [vmem:[#allocation9 + $0x388] sm:$0xff] }
 0x1cb   : > { %1601 = vmatmul.f32.gmra.mxu1 %v1488_v9  ;;  %v1298_v9 = vld [vmem:[#allocation2 + $0x169] sm:$0xff]  ;;  %1916 = vmatpush.msra.mxu3 %v1887_v53  ;;  %v378_v53 = vld [vmem:[%s4831_s23 + $0xf8] sm:$0xff]  ;;  %s6545_s23 = scalar_lea.vmem [#allocation12], %s4295_s1  ;;  %s4306_s1 = sshll.u32 %s4728_s28, 8 }
 0x1cc   : > { %v5420_v37 = vpop.f32.mrf.mxu0  ;;  %s4179_s21 = scalar_lea.hbm %s6688_s7, %s4306_s1  ;;  %s4180_s10 = sshll.u32 %s6545_s23, 4  ;;  %s4181_s10 = int_to_ptr.vmem [resolvable:$true] %s4180_s10 }
 0x1cd   : > { %v1163_v56 = vpop.f32.mrf.mxu3  ;;  %s4182_s14 = sshll.u32 %s4179_s21, 4  ;;  %s4168_s28 = scalar_lea.sflag [#allocation6], %s4825_s19  ;;  %s4183_s14 = int_to_ptr.hbm [resolvable:$true] %s4182_s14 }
 0x1ce   : > { %v1245_v41 = vadd.f32 %v1163_v56, %v5373_v10  ;;  %v984_v15 = vpop.f32.mrf.mxu2  ;;  %v1101_v56 = vld [vmem:[#allocation2 + $0x140] sm:$0xff]  ;;  %s4597_s15 = sshra.s32 %s4183_s14, 4  ;;  %s4598_s15 = int_to_ptr.hbm [resolvable:$true] %s4597_s15 }
 0x1cf   : > { %v5424_v10 = vadd.f32 %v984_v15, %v823_v16  ;;  %1419 = vmatmul.f32.gmra.mxu0 %v1298_v9  ;;  %1034 = vmatmul.f32.gmra.mxu2 %v1491_v58  ;;  %v2081_v16 = vld [vmem:[#allocation9 + $0x408] sm:$0xff]  ;;  %s4599_s20 = scalar_lea.hbm %s4598_s15, 256  ;;  %p4604_p9 = scmp.lt.s32.totalorder %s4598_s15, %s6688_s7 }
 0x1d0   : > { %v1439_v19 = vadd.f32 %v5368_v57, %v1245_v41  ;;  %v4425_v57 = vld [vmem:[#allocation7] ss:$0 sm:$0xff]  ;;  %2110 = vmatpush.msra.mxu0 %v2081_v16  ;;  %p4600_p1 = scmp.ne.s32.totalorder %s4598_s15, %s4599_s20  ;;  %p4605_p10 = scmp.lt.s32.totalorder %s4603_s18, %s4599_s20 }
 0x1d1   : > { %v413_v48 = vmul.f32 %v4425_v57, %v377_v44 }
 0x1d2   : > { %1213 = vmatmul.f32.gmra.mxu3 %v1100_v22  ;;  %v5422_v52 = vadd.f32 %v1551_v63, %v1439_v19  ;;  %v826_v22 = vadd.f32 %v5272_v60, %v5244_v49  ;;  %v1299_v19 = vld [vmem:[#allocation2 + $0x171] sm:$0xff]  ;;  %p4601_p4 = pnand %p4600_p1, %p4795_p3  ;;  %p4606_p2 = por %p4605_p10, %p4604_p9 }
 0x1d3   : > { %1604 = vmatmul.f32.gmra.mxu1 %v1489_v20  ;;  %v449_v2 = vadd.f32 %v4426_v6, %v413_v48  ;;  %v1492_v49 = vld [vmem:[#allocation2 + $0x16a] sm:$0xff] }
 0x1d4   : > { %v5436_v63 = vpop.f32.mrf.mxu0  ;;  %v1102_v48 = vld [vmem:[#allocation2 + $0x150] sm:$0xff]  ;;  %p4602_p8 = pneg %p4601_p4 }
 0x1d5   : > { %v1166_v62 = vpop.f32.mrf.mxu3  ;;  %v481_v41 = vmax.f32 %v449_v2, 0.0 }
 0x1d6   : > { %v1246_v47 = vadd.f32 %v1166_v62, %v5384_v17  ;;  %v2511_v17 = vld [vmem:[#allocation10 + $0xc8] sm:$0xff]  ;;  %v987_v9 = vpop.f32.mrf.mxu2  ;;  %p4607_p11 = pnand %p4606_p2, %p4602_p8 }
 0x1d7   : > { %557 = vst [vmem:[#allocation2 + $0x181] sm:$0xff] %v481_v41  ;;  %v5438_v32 = vadd.f32 %v987_v9, %v826_v22  ;;  %1422 = vmatmul.f32.gmra.mxu0 %v1299_v19  ;;  %2524 = vmatpush.msra.mxu1 %v2511_v17  ;;  %v1886_v22 = vld [vmem:[#allocation9 + $0x380] sm:$0xff]  ;;  %v1493_v19 = vld [vmem:[#allocation2 + $0x172] sm:$0xff] }
 0x1d8   : > { %v5432_v20 = vadd.f32 %v5379_v11, %v1246_v47  ;;  %v414_v11 = vmul.f32 %v4425_v57, %v378_v53  ;;  %1037 = vmatmul.f32.gmra.mxu2 %v1492_v49  ;;  %1917 = vmatpush.msra.mxu3 %v1886_v22  ;;  %v1103_v17 = vld [vmem:[#allocation2 + $0x158] sm:$0xff]  ;;  %v2080_v9 = vld [vmem:[#allocation9 + $0x400] sm:$0xff] }
 0x1d9   : > { %2111 = vmatpush.msra.mxu0 %v2080_v9 }
 0x1da   : > { %1216 = vmatmul.f32.gmra.mxu3 %v1101_v56  ;;  %v450_v60 = vadd.f32 %v4426_v6, %v414_v11  ;;  %v1692_v56 = vld [vmem:[#allocation9 + $0x300] sm:$0xff] }
 0x1db   : > { %1607 = vmatmul.f32.gmra.mxu1 %v1490_v42  ;;  %v829_v42 = vadd.f32 %v5284_v18, %v5256_v27  ;;  %1723 = vmatpush.msra.mxu2 %v1692_v56  ;;  %v832_v18 = vadd.f32 %v5301_v7, %v5265_v36  ;;  %v2047_v7 = vld [vmem:[#allocation2 + $0x32] sm:$0xff] }
 0x1dc   : > { %v482_v47 = vmax.f32 %v450_v60, 0.0  ;;  %v5447_v2 = vpop.f32.mrf.mxu0 }
 0x1dd   : > { %v1169_v15 = vpop.f32.mrf.mxu3 }
 0x1de   : > { %v1247_v44 = vadd.f32 %v1169_v15, %v5394_v34  ;;  %v990_v57 = vpop.f32.mrf.mxu2  ;;  %558 = vst [vmem:[#allocation2 + $0x189] sm:$0xff] %v482_v47  ;;  %v1659_v15 = vld [vmem:[#allocation2 + $0x30] sm:$0xff] }
 0x1df   : > { %v5449_v34 = vadd.f32 %v990_v57, %v829_v42  ;;  %1425 = vmatmul.f32.gmra.mxu0 %v481_v41  ;;  %v1660_v42 = vld [vmem:[#allocation2 + $0x38] sm:$0xff] }
 0x1e0   : > { %v5443_v62 = vadd.f32 %v5390_v1, %v1247_v44  ;;  %1040 = vmatmul.f32.gmra.mxu2 %v1493_v19  ;;  %v2048_v57 = vld [vmem:[#allocation2 + $0x3a] sm:$0xff] }
 0x1e2   : > { %1219 = vmatmul.f32.gmra.mxu3 %v1102_v48 }
 0x1e3   : > { %1610 = vmatmul.f32.gmra.mxu1 %v1491_v58  ;;  %v2510_v58 = vld [vmem:[#allocation10 + $0xc0] sm:$0xff] }
 0x1e4   : > { %v5457_v16 = vpop.f32.mrf.mxu0  ;;  %2525 = vmatpush.msra.mxu1 %v2510_v58 }
 0x1e5   : > { %v1172_v6 = vpop.f32.mrf.mxu3  ;;  %v1495_v58 = vld [vmem:[#allocation2 + $0x18a] sm:$0xff] }
 0x1e6   : > { %v1248_v1 = vadd.f32 %v1172_v6, %v5404_v5  ;;  %v993_v53 = vpop.f32.mrf.mxu2  ;;  %v2509_v6 = vld [vmem:[#allocation10 + $0xb8] sm:$0xff] }
 0x1e7   : > { %v1059_v41 = vadd.f32 %v993_v53, %v832_v18  ;;  %1428 = vmatmul.f32.gmra.mxu0 %v482_v47  ;;  %2526 = vmatpush.msra.mxu1 %v2509_v6  ;;  %v1106_v18 = vld [vmem:[#allocation2 + $0x180] sm:$0xff]  ;;  %v2049_v53 = vld [vmem:[#allocation2 + $0x4a] sm:$0xff] }
 0x1e8   : > { %v5453_v27 = vadd.f32 %v5400_v61, %v1248_v1  ;;  %v1104_v61 = vld [vmem:[#allocation2 + $0x168] sm:$0xff]  ;;  %1724 = vmatmul.f32.vlgmr.msra.gmra.mxu2 %v1659_v15 }
 0x1e9   : > { %v2051_v6 = vld [vmem:[#allocation2 + $0x62] sm:$0xff] }
 0x1ea   : > { %1222 = vmatmul.f32.gmra.mxu3 %v1103_v17  ;;  %v1661_v17 = vld [vmem:[#allocation2 + $0x48] sm:$0xff] }
 0x1eb   : > { %1613 = vmatmul.f32.gmra.mxu1 %v1492_v49 }
 0x1ec   : > { %v5463_v36 = vpop.f32.mrf.mxu0 }
 0x1ed   : > { %v1175_v5 = vpop.f32.mrf.mxu3 }
 0x1ee   : > { %v1249_v11 = vadd.f32 %v1175_v5, %v5414_v35  ;;  %v996_v60 = vpop.f32.mrf.mxu2  ;;  %v1105_v35 = vld [vmem:[#allocation2 + $0x170] sm:$0xff] }
 0x1ef   : > { %v1060_v49 = vadd.f32 %v996_v60, %v5176_v30  ;;  %2112 = vmatmul.f32.vlgmr.msra.gmra.mxu0 %v2047_v7  ;;  %v2050_v60 = vld [vmem:[#allocation2 + $0x52] sm:$0xff] }
 0x1f0   : > { %v5461_v44 = vadd.f32 %v5410_v26, %v1249_v11  ;;  %1727 = vmatmul.f32.gmra.mxu2 %v1660_v42  ;;  %v1494_v26 = vld [vmem:[#allocation2 + $0x182] sm:$0xff] }
 0x1f2   : > { %1225 = vmatmul.f32.gmra.mxu3 %v1104_v61  ;;  %v1107_v61 = vld [vmem:[#allocation2 + $0x188] sm:$0xff] }
 0x1f3   : > { %1616 = vmatmul.f32.gmra.mxu1 %v1493_v19 }
 0x1f4   : > { %v5470_v22 = vpop.f32.mrf.mxu0 }
 0x1f5   : > { %v1178_v48 = vpop.f32.mrf.mxu3 }
 0x1f6   : > { %v1250_v47 = vadd.f32 %v1178_v48, %v5424_v10  ;;  %v999_v1 = vpop.f32.mrf.mxu2  ;;  %v2508_v48 = vld [vmem:[#allocation10 + $0xb0] sm:$0xff] }
 0x1f7   : > { %v1061_v30 = vadd.f32 %v999_v1, %v5184_v24  ;;  %2115 = vmatmul.f32.gmra.mxu0 %v2048_v57  ;;  %2527 = vmatpush.msra.mxu1 %v2508_v48  ;;  %v2053_v48 = vld [vmem:[#allocation2 + $0x7a] sm:$0xff] }
 0x1f8   : > { %v5468_v56 = vadd.f32 %v5420_v37, %v1250_v47  ;;  %1730 = vmatmul.f32.gmra.mxu2 %v1661_v17 }
 0x1fa   : > { %1228 = vmatmul.f32.gmra.mxu3 %v1105_v35 }
 0x1fb   : > { %1619 = vmatmul.f32.gmra.mxu1 %v1494_v26  ;;  %v1663_v26 = vld [vmem:[#allocation2 + $0x60] sm:$0xff] }
 0x1fc   : > { %v5477_v9 = vpop.f32.mrf.mxu0 }
 0x1fd   : > { %v1181_v19 = vpop.f32.mrf.mxu3 }
 0x1fe   : > { %v1251_v10 = vadd.f32 %v1181_v19, %v5438_v32  ;;  %v1002_v5 = vpop.f32.mrf.mxu2  ;;  %v1662_v32 = vld [vmem:[#allocation2 + $0x50] sm:$0xff] }
 0x1ff   : > { %v1062_v24 = vadd.f32 %v1002_v5, %v5192_v38  ;;  %2118 = vmatmul.f32.gmra.mxu0 %v2049_v53  ;;  %v5498_v53 = vpop.f32.mrf.mxu1  ;;  %v2507_v5 = vld [vmem:[#allocation10 + $0xa8] sm:$0xff] }
 0x200   : > { %v5475_v37 = vadd.f32 %v5436_v63, %v1251_v10  ;;  %1733 = vmatmul.f32.gmra.mxu2 %v1662_v32  ;;  %2528 = vmatpush.msra.mxu1 %v2507_v5  ;;  %v1665_v32 = vld [vmem:[#allocation2 + $0x78] sm:$0xff]  ;;  %v1857_v5 = vld [vmem:[#allocation2 + $0x61] sm:$0xff] }
 0x202   : > { %1231 = vmatmul.f32.gmra.mxu3 %v1106_v18  ;;  %v1854_v18 = vld [vmem:[#allocation2 + $0x39] sm:$0xff] }
 0x203   : > { %1622 = vmatmul.f32.gmra.mxu1 %v1495_v58 }
 0x204   : > { %v5484_v63 = vpop.f32.mrf.mxu0 }
 0x205   : > { %v1184_v11 = vpop.f32.mrf.mxu3 }
 0x206   : > { %v1252_v15 = vadd.f32 %v1184_v11, %v5449_v34  ;;  %v1005_v47 = vpop.f32.mrf.mxu2  ;;  %v1853_v34 = vld [vmem:[#allocation2 + $0x31] sm:$0xff] }
 0x207   : > { %v1063_v42 = vadd.f32 %v1005_v47, %v5200_v13  ;;  %2121 = vmatmul.f32.gmra.mxu0 %v2050_v60  ;;  %v1664_v13 = vld [vmem:[#allocation2 + $0x68] sm:$0xff] }
 0x208   : > { %v5482_v7 = vadd.f32 %v5447_v2, %v1252_v15  ;;  %1736 = vmatmul.f32.gmra.mxu2 %v1663_v26 }
 0x20a   : > { %1234 = vmatmul.f32.gmra.mxu3 %v1107_v61  ;;  %v1855_v61 = vld [vmem:[#allocation2 + $0x49] sm:$0xff] }
 0x20c   : > { %v5490_v2 = vpop.f32.mrf.mxu0 }
 0x20d   : > { %v1187_v38 = vpop.f32.mrf.mxu3 }
 0x20e   : > { %v1253_v35 = vadd.f32 %v1187_v38, %v1059_v41  ;;  %v1008_v1 = vpop.f32.mrf.mxu2 }
 0x20f   : > { %v1064_v19 = vadd.f32 %v1008_v1, %v5208_v59  ;;  %2124 = vmatmul.f32.gmra.mxu0 %v2051_v6  ;;  %v2054_v1 = vld [vmem:[#allocation2 + $0x82] sm:$0xff] }
 0x210   : > { %v5488_v57 = vadd.f32 %v5457_v16, %v1253_v35  ;;  %1739 = vmatmul.f32.gmra.mxu2 %v1664_v13  ;;  %v2052_v16 = vld [vmem:[#allocation2 + $0x6a] sm:$0xff]  ;;  %v5507_v35 = vpop.f32.mrf.mxu1 }
 0x212   : > { %1918 = vmatmul.f32.vlgmr.msra.gmra.mxu3 %v1853_v34  ;;  %v1666_v34 = vld [vmem:[#allocation2 + $0x80] sm:$0xff] }
 0x214   : > { %v5496_v58 = vpop.f32.mrf.mxu0 }
 0x215   : > { %v1190_v10 = vpop.f32.mrf.mxu3 }
 0x216   : > { %v1254_v17 = vadd.f32 %v1190_v10, %v1060_v49  ;;  %v1011_v11 = vpop.f32.mrf.mxu2  ;;  %v2506_v10 = vld [vmem:[#allocation10 + $0xa0] sm:$0xff] }
 0x217   : > { %v1065_v59 = vadd.f32 %v1011_v11, %v5216_v43  ;;  %2127 = vmatmul.f32.gmra.mxu0 %v2052_v16  ;;  %2529 = vmatpush.msra.mxu1 %v2506_v10  ;;  %v1667_v16 = vld [vmem:[#allocation2 + $0x90] sm:$0xff]  ;;  %v1669_v10 = vld [vmem:[#allocation2 + $0xa8] sm:$0xff] }
 0x218   : > { %v5494_v41 = vadd.f32 %v5463_v36, %v1254_v17  ;;  %1742 = vmatmul.f32.gmra.mxu2 %v1665_v32 }
 0x21a   : > { %1921 = vmatmul.f32.gmra.mxu3 %v1854_v18  ;;  %v5515_v18 = vpop.f32.mrf.mxu1 }
 0x21c   : > { %v5504_v60 = vpop.f32.mrf.mxu0 }
 0x21d   : > { %v1193_v15 = vpop.f32.mrf.mxu3 }
 0x21e   : > { %v1255_v49 = vadd.f32 %v1193_v15, %v1061_v30  ;;  %v1014_v47 = vpop.f32.mrf.mxu2  ;;  %v1856_v30 = vld [vmem:[#allocation2 + $0x51] sm:$0xff] }
 0x21f   : > { %v1066_v38 = vadd.f32 %v1014_v47, %v5224_v33  ;;  %2130 = vmatmul.f32.gmra.mxu0 %v2053_v48  ;;  %v2055_v15 = vld [vmem:[#allocation2 + $0x92] sm:$0xff]  ;;  %v1858_v47 = vld [vmem:[#allocation2 + $0x69] sm:$0xff] }
 0x220   : > { %v5502_v36 = vadd.f32 %v5470_v22, %v1255_v49  ;;  %1745 = vmatmul.f32.gmra.mxu2 %v1666_v34  ;;  %v1668_v48 = vld [vmem:[#allocation2 + $0x98] sm:$0xff] }
 0x221   : > { %v2505_v34 = vld [vmem:[#allocation10 + $0x98] sm:$0xff] }
 0x222   : > { %1924 = vmatmul.f32.gmra.mxu3 %v1855_v61  ;;  %2530 = vmatpush.msra.mxu1 %v2505_v34 }
 0x224   : > { %v5512_v22 = vpop.f32.mrf.mxu0 }
 0x225   : > { %v1196_v43 = vpop.f32.mrf.mxu3 }
 0x226   : > { %v1256_v26 = vadd.f32 %v1196_v43, %v1062_v24  ;;  %v1017_v17 = vpop.f32.mrf.mxu2 }
 0x227   : > { %v1067_v33 = vadd.f32 %v1017_v17, %v5232_v14  ;;  %2133 = vmatmul.f32.gmra.mxu0 %v2054_v1  ;;  %v1859_v17 = vld [vmem:[#allocation2 + $0x79] sm:$0xff] }
 0x228   : > { %v5510_v6 = vadd.f32 %v5477_v9, %v1256_v26  ;;  %1748 = vmatmul.f32.gmra.mxu2 %v1667_v16  ;;  %v2056_v26 = vld [vmem:[#allocation2 + $0x9a] sm:$0xff] }
 0x22a   : > { %1927 = vmatmul.f32.gmra.mxu3 %v1856_v30 }
 0x22c   : > { %v5520_v11 = vpop.f32.mrf.mxu0 }
 0x22d   : > { %v1199_v13 = vpop.f32.mrf.mxu3 }
 0x22e   : > { %v1257_v24 = vadd.f32 %v1199_v13, %v1063_v42  ;;  %v1020_v49 = vpop.f32.mrf.mxu2  ;;  %v5523_v42 = vpop.f32.mrf.mxu1 }
 0x22f   : > { %v1068_v32 = vadd.f32 %v1020_v49, %v5242_v45  ;;  %2136 = vmatmul.f32.gmra.mxu0 %v2055_v15 }
 0x230   : > { %v5518_v9 = vadd.f32 %v5484_v63, %v1257_v24  ;;  %1751 = vmatmul.f32.gmra.mxu2 %v1668_v48  ;;  %v2057_v24 = vld [vmem:[#allocation2 + $0xaa] sm:$0xff]  ;;  %v2058_v48 = vld [vmem:[#allocation2 + $0xb2] sm:$0xff] }
 0x232   : > { %1930 = vmatmul.f32.gmra.mxu3 %v1857_v5 }
 0x234   : > { %v5528_v63 = vpop.f32.mrf.mxu0 }
 0x235   : > { %v1202_v14 = vpop.f32.mrf.mxu3 }
 0x236   : > { %v1258_v61 = vadd.f32 %v1202_v14, %v1064_v19  ;;  %v1023_v30 = vpop.f32.mrf.mxu2  ;;  %v5536_v16 = vpop.f32.mrf.mxu1  ;;  %v1670_v14 = vld [vmem:[#allocation2 + $0xb0] sm:$0xff] }
 0x237   : > { %v1069_v45 = vadd.f32 %v1023_v30, %v5252_v28  ;;  %2139 = vmatmul.f32.gmra.mxu0 %v2056_v26 }
 0x238   : > { %v5526_v43 = vadd.f32 %v5490_v2, %v1258_v61  ;;  %1754 = vmatmul.f32.gmra.mxu2 %v1669_v10 }
 0x23a   : > { %1933 = vmatmul.f32.gmra.mxu3 %v1858_v47  ;;  %v2504_v47 = vld [vmem:[#allocation10 + $0x90] sm:$0xff] }
 0x23b   : > { %2531 = vmatpush.msra.mxu1 %v2504_v47  ;;  %v2503_v47 = vld [vmem:[#allocation10 + $0x88] sm:$0xff] }
 0x23c   : > { %v5534_v2 = vpop.f32.mrf.mxu0 }
 0x23d   : > { %v1205_v1 = vpop.f32.mrf.mxu3  ;;  %2532 = vmatpush.msra.mxu1 %v2503_v47  ;;  %v2502_v47 = vld [vmem:[#allocation10 + $0x80] sm:$0xff] }
 0x23e   : > { %v1259_v19 = vadd.f32 %v1205_v1, %v1065_v59  ;;  %v1026_v5 = vpop.f32.mrf.mxu2  ;;  %v1860_v59 = vld [vmem:[#allocation2 + $0x81] sm:$0xff]  ;;  %v5545_v30 = vpop.f32.mrf.mxu1 }
 0x23f   : > { %v1070_v15 = vadd.f32 %v1026_v5, %v5261_v4  ;;  %2142 = vmatmul.f32.gmra.mxu0 %v2057_v24  ;;  %v1671_v1 = vld [vmem:[#allocation2 + $0xc0] sm:$0xff]  ;;  %2533 = vmatpush.msra.mxu1 %v2502_v47  ;;  %v1866_v47 = vld [vmem:[#allocation2 + $0xc9] sm:$0xff] }
 0x240   : > { %v5532_v13 = vadd.f32 %v5496_v58, %v1259_v19  ;;  %1757 = vmatmul.f32.gmra.mxu2 %v1670_v14  ;;  %v1861_v19 = vld [vmem:[#allocation2 + $0x91] sm:$0xff]  ;;  %v1672_v14 = vld [vmem:[#allocation2 + $0xc8] sm:$0xff] }
 0x242   : > { %1936 = vmatmul.f32.gmra.mxu3 %v1859_v17  ;;  %v2059_v17 = vld [vmem:[#allocation2 + $0xc2] sm:$0xff] }
 0x244   : > { %v5542_v58 = vpop.f32.mrf.mxu0 }
 0x245   : > { %v1208_v28 = vpop.f32.mrf.mxu3 }
 0x246   : > { %v1260_v49 = vadd.f32 %v1208_v28, %v1066_v38  ;;  %v1029_v26 = vpop.f32.mrf.mxu2  ;;  %v5553_v28 = vpop.f32.mrf.mxu1 }
 0x247   : > { %v1071_v34 = vadd.f32 %v1029_v26, %v5270_v39  ;;  %2145 = vmatmul.f32.gmra.mxu0 %v2058_v48  ;;  %v2060_v48 = vld [vmem:[#allocation2 + $0xca] sm:$0xff] }
 0x248   : > { %v5540_v61 = vadd.f32 %v5504_v60, %v1260_v49  ;;  %1760 = vmatmul.f32.gmra.mxu2 %v1671_v1  ;;  %v1673_v1 = vld [vmem:[#allocation2 + $0xd8] sm:$0xff] }
 0x24a   : > { %1939 = vmatmul.f32.gmra.mxu3 %v1860_v59 }
 0x24c   : > { %v5550_v10 = vpop.f32.mrf.mxu0 }
 0x24d   : > { %v1211_v4 = vpop.f32.mrf.mxu3 }
 0x24e   : > { %v1261_v38 = vadd.f32 %v1211_v4, %v1067_v33  ;;  %v1032_v24 = vpop.f32.mrf.mxu2  ;;  %v1862_v33 = vld [vmem:[#allocation2 + $0x99] sm:$0xff] }
 0x24f   : > { %v1072_v5 = vadd.f32 %v1032_v24, %v5282_v51  ;;  %2148 = vmatmul.f32.gmra.mxu0 %v2059_v17 }
 0x250   : > { %v5548_v60 = vadd.f32 %v5512_v22, %v1261_v38  ;;  %1763 = vmatmul.f32.gmra.mxu2 %v1672_v14  ;;  %v1674_v14 = vld [vmem:[#allocation2 + $0xe0] sm:$0xff] }
 0x252   : > { %1942 = vmatmul.f32.gmra.mxu3 %v1861_v19  ;;  %v5561_v19 = vpop.f32.mrf.mxu1 }
 0x254   : > { %v5558_v22 = vpop.f32.mrf.mxu0 }
 0x255   : > { %v1214_v39 = vpop.f32.mrf.mxu3 }
 0x256   : > { %v1262_v49 = vadd.f32 %v1214_v39, %v1068_v32  ;;  %v1035_v26 = vpop.f32.mrf.mxu2  ;;  %v1863_v32 = vld [vmem:[#allocation2 + $0xa9] sm:$0xff] }
 0x257   : > { %v1073_v51 = vadd.f32 %v1035_v26, %v5294_v31  ;;  %2151 = vmatmul.f32.gmra.mxu0 %v2060_v48 }
 0x258   : > { %v5556_v59 = vadd.f32 %v5520_v11, %v1262_v49  ;;  %1766 = vmatmul.f32.gmra.mxu2 %v1673_v1  ;;  %v2792_v1 = vld [vmem:[#allocation10 + $0x178] sm:$0xff] }
 0x259   : > { %2793 = vmatpush.msrb.mxu3 %v2792_v1 }
 0x25a   : > { %1945 = vmatmul.f32.gmra.mxu3 %v1862_v33 }
 0x25c   : > { %v5566_v17 = vpop.f32.mrf.mxu0 }
 0x25d   : > { %v1217_v4 = vpop.f32.mrf.mxu3 }
 0x25e   : > { %v1263_v38 = vadd.f32 %v1217_v4, %v1069_v45  ;;  %v1038_v24 = vpop.f32.mrf.mxu2  ;;  %v1864_v45 = vld [vmem:[#allocation2 + $0xb1] sm:$0xff]  ;;  %v6703_v4 = vld [vmem:[#allocation17_spill] sm:$0xff] }
 0x25f   : > { %v1074_v39 = vadd.f32 %v1038_v24, %v5308_v8  ;;  %2154 = vmatmul.f32.gmra.mxu0 %v5296_v29  ;;  %v1865_v24 = vld [vmem:[#allocation2 + $0xc1] sm:$0xff] }
 0x260   : > { %v5564_v11 = vadd.f32 %v5528_v63, %v1263_v38  ;;  %1769 = vmatmul.f32.gmra.mxu2 %v1674_v14  ;;  %v5575_v63 = vpop.f32.mrf.mxu1  ;;  %v2468_v38 = vld [vmem:[#allocation10 + $0x78] sm:$0xff] }
 0x261   : > { %2631 = vmatpush.msrb.mxu2 %v2468_v38 }
 0x262   : > { %1948 = vmatmul.f32.gmra.mxu3 %v1863_v32  ;;  %v1675_v32 = vld [vmem:[#allocation2 + $0xf0] sm:$0xff] }
 0x264   : > { %v5573_v48 = vpop.f32.mrf.mxu0 }
 0x265   : > { %v1220_v31 = vpop.f32.mrf.mxu3 }
 0x266   : > { %v1264_v49 = vadd.f32 %v1220_v31, %v1070_v15  ;;  %v1041_v26 = vpop.f32.mrf.mxu2 }
 0x267   : > { %v1075_v8 = vadd.f32 %v1041_v26, %v6703_v4  ;;  %2157 = vmatmul.f32.gmra.mxu0 %v5310_v54 }
 0x268   : > { %v5571_v33 = vadd.f32 %v5534_v2, %v1264_v49  ;;  %1772 = vmatmul.f32.gmra.mxu2 %v1675_v32  ;;  %v2469_v49 = vld [vmem:[#allocation3 + $0x1] sm:$0xff]  ;;  %v1867_v32 = vld [vmem:[#allocation2 + $0xd9] sm:$0xff] }
 0x269   : > { %2534 = vmatmul.f32.vlgmr.msra.gmra.mxu1 %v2469_v49 }
 0x26a   : > { %1951 = vmatmul.f32.gmra.mxu3 %v1864_v45  ;;  %v5584_v45 = vpop.f32.mrf.mxu1 }
 0x26c   : > { %v5582_v31 = vpop.f32.mrf.mxu0 }
 0x26d   : > { %v1223_v29 = vpop.f32.mrf.mxu3 }
 0x26e   : > { %v1265_v15 = vadd.f32 %v1223_v29, %v1071_v34  ;;  %v1725_v14 = vpop.f32.mrf.mxu2  ;;  %v2470_v29 = vld [vmem:[#allocation3 + $0x9] sm:$0xff] }
 0x26f   : > { %2160 = vmatmul.f32.gmra.mxu0 %v5323_v3 }
 0x270   : > { %v5580_v2 = vadd.f32 %v5542_v58, %v1265_v15  ;;  %v1676_v58 = vld [vmem:[#allocation2 + $0xf8] sm:$0xff] }
 0x271   : > { %1775 = vmatmul.f32.gmra.mxu2 %v1676_v58  ;;  %2537 = vmatmul.f32.gmra.mxu1 %v2470_v29  ;;  %v2467_v29 = vld [vmem:[#allocation10 + $0x70] sm:$0xff] }
 0x272   : > { %6704 = vst [vmem:[#allocation17_spill] sm:$0xff] %v5580_v2  ;;  %1954 = vmatmul.f32.gmra.mxu3 %v1865_v24  ;;  %v5593_v1 = vpop.f32.mrf.mxu1  ;;  %v3180_v24 = vld [vmem:[#allocation10 + $0x278] sm:$0xff]  ;;  %2632 = vmatpush.msrb.mxu2 %v2467_v29 }
 0x273   : > { %3181 = vmatpush.msrb.mxu1 %v3180_v24  ;;  %v1869_v24 = vld [vmem:[#allocation2 + $0xf1] sm:$0xff]  ;;  %v1679_v29 = vld [vmem:[#allocation2 + $0x120] sm:$0xff] }
 0x274   : > { %v5590_v4 = vpop.f32.mrf.mxu0 }
 0x275   : > { %v1226_v54 = vpop.f32.mrf.mxu3 }
 0x276   : > { %v1266_v34 = vadd.f32 %v1226_v54, %v1072_v5  ;;  %v1728_v38 = vpop.f32.mrf.mxu2  ;;  %v1677_v54 = vld [vmem:[#allocation2 + $0x108] sm:$0xff] }
 0x277   : > { %2163 = vmatmul.f32.gmra.mxu0 %v5334_v25 }
 0x278   : > { %v5588_v26 = vadd.f32 %v5550_v10, %v1266_v34  ;;  %v2986_v10 = vld [vmem:[#allocation10 + $0x1f8] sm:$0xff] }
 0x279   : > { %2987 = vmatpush.msrb.mxu0 %v2986_v10  ;;  %1778 = vmatmul.f32.gmra.mxu2 %v1677_v54 }
 0x27a   : > { %6705 = vst [vmem:[#allocation19_spill] sm:$0xff] %v5588_v26  ;;  %1957 = vmatmul.f32.gmra.mxu3 %v1866_v47  ;;  %v5603_v58 = vpop.f32.mrf.mxu1 }
 0x27c   : > { %v5598_v49 = vpop.f32.mrf.mxu0 }
 0x27d   : > { %v1229_v15 = vpop.f32.mrf.mxu3 }
 0x27e   : > { %v1267_v3 = vadd.f32 %v1229_v15, %v1073_v51  ;;  %v5601_v34 = vpop.f32.mrf.mxu2  ;;  %v1868_v51 = vld [vmem:[#allocation2 + $0xe1] sm:$0xff]  ;;  %v2791_v15 = vld [vmem:[#allocation10 + $0x170] sm:$0xff] }
 0x27f   : > { %2166 = vmatmul.f32.gmra.mxu0 %v5348_v50  ;;  %2794 = vmatpush.msrb.mxu3 %v2791_v15  ;;  %v2067_v15 = vld [vmem:[#allocation2 + $0x122] sm:$0xff] }
 0x280   : > { %v5596_v5 = vadd.f32 %v5558_v22, %v1267_v3 }
 0x282   : > { %6706 = vst [vmem:[#allocation20_spill] sm:$0xff] %v5596_v5  ;;  %1960 = vmatmul.f32.gmra.mxu3 %v1867_v32  ;;  %v1678_v32 = vld [vmem:[#allocation2 + $0x110] sm:$0xff] }
 0x283   : > { %1781 = vmatmul.f32.gmra.mxu2 %v1678_v32  ;;  %v1871_v5 = vld [vmem:[#allocation2 + $0x109] sm:$0xff] }
 0x284   : > { %v5608_v3 = vpop.f32.mrf.mxu0 }
 0x285   : > { %v1232_v25 = vpop.f32.mrf.mxu3 }
 0x286   : > { %v1268_v47 = vadd.f32 %v1232_v25, %v1074_v39  ;;  %v5611_v10 = vpop.f32.mrf.mxu2  ;;  %v3179_v25 = vld [vmem:[#allocation10 + $0x270] sm:$0xff] }
 0x287   : > { %2169 = vmatmul.f32.gmra.mxu0 %v5362_v0  ;;  %3182 = vmatpush.msrb.mxu1 %v3179_v25  ;;  %v1821_v0 = vadd.f32 %v1725_v14, %v5342_v12  ;;  %v2466_v12 = vld [vmem:[#allocation10 + $0x68] sm:$0xff] }
 0x288   : > { %v5606_v22 = vadd.f32 %v5566_v17, %v1268_v47  ;;  %v2985_v17 = vld [vmem:[#allocation10 + $0x1f0] sm:$0xff]  ;;  %v2790_v14 = vld [vmem:[#allocation10 + $0x168] sm:$0xff]  ;;  %2633 = vmatpush.msrb.mxu2 %v2466_v12 }
 0x289   : > { %2988 = vmatpush.msrb.mxu0 %v2985_v17  ;;  %2795 = vmatpush.msrb.mxu3 %v2790_v14 }
 0x28a   : > { %6707 = vst [vmem:[#allocation21_spill] sm:$0xff] %v5606_v22  ;;  %1963 = vmatmul.f32.gmra.mxu3 %v1868_v51  ;;  %v5618_v51 = vpop.f32.mrf.mxu1 }
 0x28b   : > { %1784 = vmatmul.f32.gmra.mxu2 %v1679_v29  ;;  %v1680_v29 = vld [vmem:[#allocation2 + $0x128] sm:$0xff] }
 0x28c   : > { %v5616_v47 = vpop.f32.mrf.mxu0 }
 0x28d   : > { %v1235_v50 = vpop.f32.mrf.mxu3 }
 0x28e   : > { %v1269_v39 = vadd.f32 %v1235_v50, %v1075_v8  ;;  %v5621_v32 = vpop.f32.mrf.mxu2  ;;  %v5626_v50 = vld [vmem:[%s6685_s4] ss:$0 sm:$0xff] }
 0x28f   : > { %2172 = vmatmul.f32.gmra.mxu0 %v2067_v15  ;;  %v2068_v15 = vld [vmem:[#allocation2 + $0x12a] sm:$0xff] }
 0x290   : > { %v5614_v54 = vadd.f32 %v5573_v48, %v1269_v39  ;;  %v1870_v39 = vld [vmem:[#allocation2 + $0xf9] sm:$0xff] }
 0x292   : > { %6708 = vst [vmem:[#allocation22_spill] sm:$0xff] %v5614_v54  ;;  %1966 = vmatmul.f32.gmra.mxu3 %v1869_v24  ;;  %v5632_v24 = vld [vmem:[%s6686_s5] ss:$0 sm:$0xff] }
 0x293   : > { %1787 = vmatmul.f32.gmra.mxu2 %v1680_v29  ;;  %v2069_v29 = vld [vmem:[#allocation2 + $0x13a] sm:$0xff] }
 0x294   : > { %v5634_v25 = vpop.f32.mrf.mxu0 }
 0x295   : > { %v1919_v8 = vpop.f32.mrf.mxu3 }
 0x296   : > { %v2015_v48 = vadd.f32 %v1919_v8, %v1821_v0  ;;  %v1822_v8 = vadd.f32 %v1728_v38, %v5356_v21  ;;  %v5641_v22 = vpop.f32.mrf.mxu2  ;;  %v1681_v38 = vld [vmem:[#allocation2 + $0x138] sm:$0xff] }
 0x297   : > { %2175 = vmatmul.f32.gmra.mxu0 %v2068_v15 }
 0x298   : > { %v2209_v17 = vadd.f32 %v5582_v31, %v2015_v48  ;;  %v5638_v31 = vpop.f32.mrf.mxu1 }
 0x29a   : > { %v2245_v0 = vmul.f32 %v5626_v50, %v2209_v17  ;;  %1969 = vmatmul.f32.gmra.mxu3 %v1870_v39  ;;  %v2984_v17 = vld [vmem:[#allocation10 + $0x1e8] sm:$0xff] }
 0x29b   : > { %v3178_v39 = vld [vmem:[#allocation10 + $0x268] sm:$0xff]  ;;  %2989 = vmatpush.msrb.mxu0 %v2984_v17  ;;  %1790 = vmatmul.f32.gmra.mxu2 %v1681_v38  ;;  %v1682_v38 = vld [vmem:[#allocation2 + $0x140] sm:$0xff] }
 0x29c   : > { %v2281_v48 = vadd.f32 %v5632_v24, %v2245_v0  ;;  %3183 = vmatpush.msrb.mxu1 %v3178_v39  ;;  %v5644_v21 = vpop.f32.mrf.mxu0  ;;  %v6709_v0 = vld [vmem:[#allocation18_spill] sm:$0xff] }
 0x29d   : > { %v1922_v54 = vpop.f32.mrf.mxu3  ;;  %v1872_v39 = vld [vmem:[#allocation2 + $0x111] sm:$0xff] }
 0x29e   : > { %v2313_v12 = vmax.f32 %v2281_v48, 0.0  ;;  %v2016_v14 = vadd.f32 %v1922_v54, %v1822_v8  ;;  %v1823_v48 = vadd.f32 %v5601_v34, %v6709_v0  ;;  %v5650_v8 = vpop.f32.mrf.mxu2  ;;  %v1824_v0 = vadd.f32 %v5611_v10, %v5381_v55  ;;  %v1683_v10 = vld [vmem:[#allocation2 + $0x150] sm:$0xff] }
 0x29f   : > { %2178 = vmatmul.f32.gmra.mxu0 %v2069_v29  ;;  %v2070_v29 = vld [vmem:[#allocation2 + $0x142] sm:$0xff] }
 0x2a0   : > { %2389 = vst [vmem:[#allocation3 + $0x19] sm:$0xff] %v2313_v12  ;;  %v2210_v26 = vadd.f32 %v5590_v4, %v2016_v14  ;;  %2540 = vmatmul.f32.gmra.mxu1 %v2313_v12  ;;  %v5652_v12 = vpop.f32.mrf.mxu1 }
 0x2a2   : > { %v2246_v15 = vmul.f32 %v5626_v50, %v2210_v26  ;;  %1972 = vmatmul.f32.gmra.mxu3 %v1871_v5  ;;  %v2465_v26 = vld [vmem:[#allocation10 + $0x60] sm:$0xff] }
 0x2a3   : > { %v2789_v5 = vld [vmem:[#allocation10 + $0x160] sm:$0xff]  ;;  %2634 = vmatpush.msrb.mxu2 %v2465_v26 }
 0x2a4   : > { %v2282_v54 = vadd.f32 %v5632_v24, %v2246_v15  ;;  %2796 = vmatpush.msrb.mxu3 %v2789_v5  ;;  %v5655_v34 = vpop.f32.mrf.mxu0  ;;  %1793 = vmatmul.f32.gmra.mxu2 %v1682_v38  ;;  %v2071_v38 = vld [vmem:[#allocation2 + $0x152] sm:$0xff] }
 0x2a5   : > { %v1925_v4 = vpop.f32.mrf.mxu3 }
 0x2a6   : > { %v2314_v14 = vmax.f32 %v2282_v54, 0.0  ;;  %v2017_v17 = vadd.f32 %v1925_v4, %v1823_v48  ;;  %v5661_v54 = vpop.f32.mrf.mxu2 }
 0x2a7   : > { %2181 = vmatmul.f32.gmra.mxu0 %v2070_v29 }
 0x2a8   : > { %2390 = vst [vmem:[#allocation3 + $0x21] sm:$0xff] %v2314_v14  ;;  %v2211_v2 = vadd.f32 %v5598_v49, %v2017_v17  ;;  %2543 = vmatmul.f32.gmra.mxu1 %v2314_v14  ;;  %v1873_v17 = vld [vmem:[#allocation2 + $0x121] sm:$0xff]  ;;  %v5663_v26 = vpop.f32.mrf.mxu1 }
 0x2aa   : > { %v2247_v15 = vmul.f32 %v5626_v50, %v2211_v2  ;;  %1975 = vmatmul.f32.gmra.mxu3 %v1872_v39  ;;  %v2983_v2 = vld [vmem:[#allocation10 + $0x1e0] sm:$0xff] }
 0x2ab   : > { %v3177_v39 = vld [vmem:[#allocation10 + $0x260] sm:$0xff]  ;;  %2990 = vmatpush.msrb.mxu0 %v2983_v2 }
 0x2ac   : > { %v2283_v48 = vadd.f32 %v5632_v24, %v2247_v15  ;;  %3184 = vmatpush.msrb.mxu1 %v3177_v39  ;;  %v5666_v55 = vpop.f32.mrf.mxu0  ;;  %v1825_v15 = vadd.f32 %v5621_v32, %v5392_v46  ;;  %1796 = vmatmul.f32.gmra.mxu2 %v1683_v10  ;;  %v2464_v39 = vld [vmem:[#allocation10 + $0x58] sm:$0xff] }
 0x2ad   : > { %v1928_v49 = vpop.f32.mrf.mxu3  ;;  %2635 = vmatpush.msrb.mxu2 %v2464_v39  ;;  %v1684_v46 = vld [vmem:[#allocation2 + $0x158] sm:$0xff] }
 0x2ae   : > { %v2315_v4 = vmax.f32 %v2283_v48, 0.0  ;;  %v2018_v14 = vadd.f32 %v1928_v49, %v1824_v0  ;;  %v5672_v48 = vpop.f32.mrf.mxu2  ;;  %v2072_v32 = vld [vmem:[#allocation2 + $0x15a] sm:$0xff] }
 0x2af   : > { %2184 = vmatmul.f32.gmra.mxu0 %v2071_v38 }
 0x2b0   : > { %2391 = vst [vmem:[#allocation3 + $0x31] sm:$0xff] %v2315_v4  ;;  %v2212_v5 = vadd.f32 %v5608_v3, %v2018_v14  ;;  %2546 = vmatmul.f32.gmra.mxu1 %v2315_v4  ;;  %v1874_v14 = vld [vmem:[#allocation2 + $0x129] sm:$0xff]  ;;  %v5677_v10 = vpop.f32.mrf.mxu1 }
 0x2b2   : > { %v2248_v29 = vmul.f32 %v5626_v50, %v2212_v5  ;;  %1978 = vmatmul.f32.gmra.mxu3 %v1873_v17  ;;  %v2788_v5 = vld [vmem:[#allocation10 + $0x158] sm:$0xff] }
 0x2b3   : > { %2797 = vmatpush.msrb.mxu3 %v2788_v5  ;;  %v2982_v5 = vld [vmem:[#allocation10 + $0x1d8] sm:$0xff] }
 0x2b4   : > { %v2284_v0 = vadd.f32 %v5632_v24, %v2248_v29  ;;  %v5675_v17 = vpop.f32.mrf.mxu0  ;;  %v1826_v29 = vadd.f32 %v5641_v22, %v5402_v40  ;;  %1799 = vmatmul.f32.gmra.mxu2 %v1684_v46  ;;  %2991 = vmatpush.msrb.mxu0 %v2982_v5  ;;  %v1685_v40 = vld [vmem:[#allocation2 + $0x168] sm:$0xff] }
 0x2b5   : > { %v1931_v3 = vpop.f32.mrf.mxu3  ;;  %v2073_v22 = vld [vmem:[#allocation2 + $0x16a] sm:$0xff] }
 0x2b6   : > { %v2316_v49 = vmax.f32 %v2284_v0, 0.0  ;;  %v2019_v4 = vadd.f32 %v1931_v3, %v1825_v15  ;;  %v5683_v0 = vpop.f32.mrf.mxu2 }
 0x2b7   : > { %2187 = vmatmul.f32.gmra.mxu0 %v2072_v32  ;;  %v1827_v32 = vadd.f32 %v5650_v8, %v5412_v23  ;;  %v1686_v8 = vld [vmem:[#allocation2 + $0x170] sm:$0xff] }
 0x2b8   : > { %2392 = vst [vmem:[#allocation3 + $0x39] sm:$0xff] %v2316_v49  ;;  %v2213_v2 = vadd.f32 %v5616_v47, %v2019_v4  ;;  %2549 = vmatmul.f32.gmra.mxu1 %v2316_v49  ;;  %v1875_v4 = vld [vmem:[#allocation2 + $0x139] sm:$0xff] }
 0x2ba   : > { %v2249_v38 = vmul.f32 %v5626_v50, %v2213_v2  ;;  %1981 = vmatmul.f32.gmra.mxu3 %v1874_v14  ;;  %v3176_v2 = vld [vmem:[#allocation10 + $0x258] sm:$0xff] }
 0x2bb   : > { %3185 = vmatpush.msrb.mxu1 %v3176_v2  ;;  %v2074_v2 = vld [vmem:[#allocation2 + $0x172] sm:$0xff] }
 0x2bc   : > { %v2285_v47 = vadd.f32 %v5632_v24, %v2249_v38  ;;  %v5686_v14 = vpop.f32.mrf.mxu0  ;;  %1802 = vmatmul.f32.gmra.mxu2 %v1685_v40  ;;  %v5691_v38 = vpop.f32.mrf.mxu1 }
 0x2bd   : > { %v1934_v15 = vpop.f32.mrf.mxu3 }
 0x2be   : > { %v2317_v3 = vmax.f32 %v2285_v47, 0.0  ;;  %v2020_v49 = vadd.f32 %v1934_v15, %v1826_v29  ;;  %v5694_v47 = vpop.f32.mrf.mxu2 }
 0x2bf   : > { %2190 = vmatmul.f32.gmra.mxu0 %v2073_v22  ;;  %v1828_v22 = vadd.f32 %v5661_v54, %v5422_v52  ;;  %v2981_v52 = vld [vmem:[#allocation10 + $0x1d0] sm:$0xff] }
 0x2c0   : > { %2393 = vst [vmem:[#allocation3 + $0x49] sm:$0xff] %v2317_v3  ;;  %v2214_v39 = vadd.f32 %v5634_v25, %v2020_v49  ;;  %2552 = vmatmul.f32.gmra.mxu1 %v2317_v3  ;;  %v1876_v49 = vld [vmem:[#allocation2 + $0x141] sm:$0xff]  ;;  %v3175_v54 = vld [vmem:[#allocation10 + $0x250] sm:$0xff]  ;;  %2992 = vmatpush.msrb.mxu0 %v2981_v52 }
 0x2c1   : > { %3186 = vmatpush.msrb.mxu1 %v3175_v54  ;;  %v1688_v52 = vld [vmem:[#allocation2 + $0x188] sm:$0xff] }
 0x2c2   : > { %v2250_v46 = vmul.f32 %v5626_v50, %v2214_v39  ;;  %1984 = vmatmul.f32.gmra.mxu3 %v1875_v4  ;;  %v2463_v4 = vld [vmem:[#allocation10 + $0x50] sm:$0xff]  ;;  %v2076_v54 = vld [vmem:[#allocation2 + $0x18a] sm:$0xff] }
 0x2c3   : > { %v2787_v39 = vld [vmem:[#allocation10 + $0x150] sm:$0xff]  ;;  %2636 = vmatpush.msrb.mxu2 %v2463_v4  ;;  %v1634_v4 = vadd.f32 %v5498_v53, %v5432_v20 }
 0x2c4   : > { %v2286_v25 = vadd.f32 %v5632_v24, %v2250_v46  ;;  %2798 = vmatpush.msrb.mxu3 %v2787_v39  ;;  %v5697_v23 = vpop.f32.mrf.mxu0  ;;  %1805 = vmatmul.f32.gmra.mxu2 %v1686_v8  ;;  %v1687_v39 = vld [vmem:[#allocation2 + $0x180] sm:$0xff] }
 0x2c5   : > { %v1937_v29 = vpop.f32.mrf.mxu3  ;;  %v2075_v8 = vld [vmem:[#allocation2 + $0x182] sm:$0xff] }
 0x2c6   : > { %v2318_v15 = vmax.f32 %v2286_v25, 0.0  ;;  %v2021_v3 = vadd.f32 %v1937_v29, %v1827_v32  ;;  %v5703_v32 = vpop.f32.mrf.mxu2  ;;  %v5705_v25 = vpop.f32.mrf.mxu1 }
 0x2c7   : > { %2193 = vmatmul.f32.gmra.mxu0 %v2074_v2 }
 0x2c8   : > { %2394 = vst [vmem:[#allocation3 + $0x51] sm:$0xff] %v2318_v15  ;;  %v2215_v5 = vadd.f32 %v5644_v21, %v2021_v3  ;;  %2555 = vmatmul.f32.gmra.mxu1 %v2318_v15  ;;  %v1877_v3 = vld [vmem:[#allocation2 + $0x151] sm:$0xff] }
 0x2ca   : > { %v2251_v40 = vmul.f32 %v5626_v50, %v2215_v5  ;;  %1987 = vmatmul.f32.gmra.mxu3 %v1876_v49 }
 0x2cc   : > { %v2287_v46 = vadd.f32 %v5632_v24, %v2251_v40  ;;  %v5710_v5 = vpop.f32.mrf.mxu0  ;;  %v1829_v40 = vadd.f32 %v5672_v48, %v1634_v4  ;;  %1808 = vmatmul.f32.gmra.mxu2 %v1687_v39  ;;  %v2462_v48 = vld [vmem:[#allocation10 + $0x48] sm:$0xff] }
 0x2cd   : > { %v1940_v21 = vpop.f32.mrf.mxu3  ;;  %v2786_v4 = vld [vmem:[#allocation10 + $0x148] sm:$0xff]  ;;  %2637 = vmatpush.msrb.mxu2 %v2462_v48  ;;  %v2979_v48 = vld [vmem:[#allocation10 + $0x1c0] sm:$0xff] }
 0x2ce   : > { %v2319_v29 = vmax.f32 %v2287_v46, 0.0  ;;  %v2022_v15 = vadd.f32 %v1940_v21, %v1828_v22  ;;  %v1878_v21 = vld [vmem:[#allocation2 + $0x159] sm:$0xff]  ;;  %2799 = vmatpush.msrb.mxu3 %v2786_v4 }
 0x2cf   : > { %2196 = vmatmul.f32.gmra.mxu0 %v2075_v8  ;;  %v1689_v4 = vld [vmem:[#allocation2 + $0x198] sm:$0xff] }
 0x2d0   : > { %2395 = vst [vmem:[#allocation3 + $0x61] sm:$0xff] %v2319_v29  ;;  %v2216_v49 = vadd.f32 %v5655_v34, %v2022_v15  ;;  %2558 = vmatmul.f32.gmra.mxu1 %v2319_v29  ;;  %v5715_v34 = vpop.f32.mrf.mxu2  ;;  %v1635_v29 = vadd.f32 %v5507_v35, %v5443_v62  ;;  %v5719_v15 = vpop.f32.mrf.mxu1 }
 0x2d2   : > { %v2252_v2 = vmul.f32 %v5626_v50, %v2216_v49  ;;  %1990 = vmatmul.f32.gmra.mxu3 %v1877_v3  ;;  %v1830_v8 = vadd.f32 %v5683_v0, %v1635_v29  ;;  %v3174_v0 = vld [vmem:[#allocation10 + $0x248] sm:$0xff]  ;;  %v2785_v29 = vld [vmem:[#allocation10 + $0x140] sm:$0xff] }
 0x2d3   : > { %3187 = vmatpush.msrb.mxu1 %v3174_v0  ;;  %2800 = vmatpush.msrb.mxu3 %v2785_v29  ;;  %v2782_v0 = vld [vmem:[#allocation10 + $0x128] sm:$0xff] }
 0x2d4   : > { %v2288_v20 = vadd.f32 %v5632_v24, %v2252_v2  ;;  %v5722_v49 = vpop.f32.mrf.mxu0  ;;  %1811 = vmatmul.f32.gmra.mxu2 %v1688_v52  ;;  %v1880_v29 = vld [vmem:[#allocation2 + $0x171] sm:$0xff] }
 0x2d5   : > { %v1943_v53 = vpop.f32.mrf.mxu3 }
 0x2d6   : > { %v2320_v22 = vmax.f32 %v2288_v20, 0.0  ;;  %v2023_v46 = vadd.f32 %v1943_v53, %v1829_v40  ;;  %v2980_v20 = vld [vmem:[#allocation10 + $0x1c8] sm:$0xff] }
 0x2d7   : > { %2199 = vmatmul.f32.gmra.mxu0 %v2076_v54  ;;  %v1879_v53 = vld [vmem:[#allocation2 + $0x169] sm:$0xff] }
 0x2d8   : > { %2396 = vst [vmem:[#allocation3 + $0x69] sm:$0xff] %v2320_v22  ;;  %v2217_v3 = vadd.f32 %v5666_v55, %v2023_v46  ;;  %2561 = vmatmul.f32.gmra.mxu1 %v2320_v22  ;;  %v5727_v55 = vpop.f32.mrf.mxu2  ;;  %2993 = vmatpush.msrb.mxu0 %v2980_v20  ;;  %v1636_v22 = vadd.f32 %v5515_v18, %v5453_v27  ;;  %v5734_v52 = vpop.f32.mrf.mxu1  ;;  %v2077_v18 = vld [vmem:[#allocation2 + $0x19a] sm:$0xff] }
 0x2da   : > { %v2253_v39 = vmul.f32 %v5626_v50, %v2217_v3  ;;  %1993 = vmatmul.f32.gmra.mxu3 %v1878_v21  ;;  %v2461_v21 = vld [vmem:[#allocation10 + $0x40] sm:$0xff]  ;;  %v1831_v27 = vadd.f32 %v5694_v47, %v1636_v22  ;;  %2994 = vmatpush.msrb.mxu0 %v2979_v48  ;;  %v1637_v48 = vadd.f32 %v5523_v42, %v5461_v44  ;;  %v2456_v44 = vld [vmem:[#allocation10 + $0x18] sm:$0xff] }
 0x2db   : > { %2638 = vmatpush.msrb.mxu2 %v2461_v21  ;;  %v2976_v21 = vld [vmem:[#allocation10 + $0x1a8] sm:$0xff]  ;;  %v2780_v42 = vld [vmem:[#allocation10 + $0x118] sm:$0xff] }
 0x2dc   : > { %v2289_v62 = vadd.f32 %v5632_v24, %v2253_v39  ;;  %v5732_v3 = vpop.f32.mrf.mxu0  ;;  %v2784_v39 = vld [vmem:[#allocation10 + $0x138] sm:$0xff]  ;;  %1814 = vmatmul.f32.gmra.mxu2 %v1689_v4 }
 0x2dd   : > { %v1946_v35 = vpop.f32.mrf.mxu3  ;;  %2801 = vmatpush.msrb.mxu3 %v2784_v39 }
 0x2de   : > { %v2321_v2 = vmax.f32 %v2289_v62, 0.0  ;;  %v2024_v40 = vadd.f32 %v1946_v35, %v1830_v8  ;;  %v2978_v8 = vld [vmem:[#allocation10 + $0x1b8] sm:$0xff]  ;;  %v2459_v35 = vld [vmem:[#allocation10 + $0x30] sm:$0xff] }
 0x2df   : > { %2202 = vmatmul.f32.gmra.mxu0 %v2077_v18  ;;  %v2781_v18 = vld [vmem:[#allocation10 + $0x120] sm:$0xff] }
 0x2e0   : > { %2397 = vst [vmem:[#allocation3 + $0x79] sm:$0xff] %v2321_v2  ;;  %v2218_v46 = vadd.f32 %v5675_v17, %v2024_v40  ;;  %2564 = vmatmul.f32.gmra.mxu1 %v2321_v2  ;;  %v2460_v17 = vld [vmem:[#allocation10 + $0x38] sm:$0xff]  ;;  %v2783_v2 = vld [vmem:[#allocation10 + $0x130] sm:$0xff]  ;;  %2995 = vmatpush.msrb.mxu0 %v2978_v8 }
 0x2e1   : > { %2639 = vmatpush.msrb.mxu2 %v2460_v17  ;;  %v2977_v40 = vld [vmem:[#allocation10 + $0x1b0] sm:$0xff]  ;;  %2802 = vmatpush.msrb.mxu3 %v2783_v2  ;;  %v2975_v17 = vld [vmem:[#allocation10 + $0x1a0] sm:$0xff] }
 0x2e2   : > { %v2254_v54 = vmul.f32 %v5626_v50, %v2218_v46  ;;  %1996 = vmatmul.f32.gmra.mxu3 %v1879_v53  ;;  %v5739_v53 = vpop.f32.mrf.mxu2  ;;  %v2458_v46 = vld [vmem:[#allocation10 + $0x28] sm:$0xff]  ;;  %2996 = vmatpush.msrb.mxu0 %v2977_v40 }
 0x2e3   : > { %2640 = vmatpush.msrb.mxu2 %v2459_v35  ;;  %2803 = vmatpush.msrb.mxu3 %v2782_v0  ;;  %v5748_v35 = vpop.f32.mrf.mxu1  ;;  %v4427_v40 = vld [vmem:[#allocation2 + $0x8] sm:$0xff] }
 0x2e4   : > { %v2290_v62 = vadd.f32 %v5632_v24, %v2254_v54  ;;  %v2457_v54 = vld [vmem:[#allocation10 + $0x20] sm:$0xff]  ;;  %v5744_v39 = vpop.f32.mrf.mxu0  ;;  %2997 = vmatpush.msrb.mxu0 %v2976_v21  ;;  %1817 = vmatmul.f32.gmra.mxu2 %v4427_v40 }
 0x2e5   : > { %v1949_v20 = vpop.f32.mrf.mxu3  ;;  %2641 = vmatpush.msrb.mxu2 %v2458_v46  ;;  %2804 = vmatpush.msrb.mxu3 %v2781_v18 }
 0x2e6   : > { %v2322_v47 = vmax.f32 %v2290_v62, 0.0  ;;  %v2025_v22 = vadd.f32 %v1949_v20, %v1831_v27  ;;  %v2078_v27 = vld [vmem:[#allocation2 + $0x1a2] sm:$0xff]  ;;  %v1832_v62 = vadd.f32 %v5703_v32, %v1637_v48  ;;  %2998 = vmatpush.msrb.mxu0 %v2975_v17  ;;  %v2455_v20 = vld [vmem:[#allocation10 + $0x10] sm:$0xff] }
 0x2e7   : > { %2642 = vmatpush.msrb.mxu2 %v2457_v54  ;;  %2205 = vmatmul.f32.gmra.mxu0 %v2078_v27  ;;  %v2973_v32 = vld [vmem:[#allocation10 + $0x190] sm:$0xff]  ;;  %v1881_v48 = vld [vmem:[#allocation2 + $0x181] sm:$0xff]  ;;  %v1638_v54 = vadd.f32 %v5536_v16, %v5468_v56  ;;  %v2778_v27 = vld [vmem:[#allocation10 + $0x108] sm:$0xff] }
 0x2e8   : > { %2398 = vst [vmem:[#allocation3 + $0x81] sm:$0xff] %v2322_v47  ;;  %v2219_v4 = vadd.f32 %v5686_v14, %v2025_v22  ;;  %2567 = vmatmul.f32.gmra.mxu1 %v2322_v47  ;;  %v2974_v14 = vld [vmem:[#allocation10 + $0x198] sm:$0xff]  ;;  %v2779_v47 = vld [vmem:[#allocation10 + $0x110] sm:$0xff]  ;;  %2805 = vmatpush.msrb.mxu3 %v2780_v42  ;;  %v3173_v17 = vld [vmem:[#allocation10 + $0x240] sm:$0xff] }
 0x2e9   : > { %2643 = vmatpush.msrb.mxu2 %v2456_v44  ;;  %2999 = vmatpush.msrb.mxu0 %v2974_v14  ;;  %v2421_v42 = vld [vmem:[#allocation3] sm:$0xff]  ;;  %v2777_v56 = vld [vmem:[#allocation10 + $0x100] sm:$0xff] }
 0x2ea   : > { %v2255_v8 = vmul.f32 %v5626_v50, %v2219_v4  ;;  %1999 = vmatmul.f32.gmra.mxu3 %v1880_v29  ;;  %v5751_v46 = vpop.f32.mrf.mxu2  ;;  %v2454_v29 = vld [vmem:[#allocation10 + $0x8] sm:$0xff]  ;;  %3188 = vmatpush.msrb.mxu1 %v3173_v17 }
 0x2eb   : > { %2644 = vmatpush.msrb.mxu2 %v2455_v20  ;;  %2806 = vmatpush.msrb.mxu3 %v2779_v47  ;;  %v2972_v4 = vld [vmem:[#allocation10 + $0x188] sm:$0xff] }
 0x2ec   : > { %v2291_v2 = vadd.f32 %v5632_v24, %v2255_v8  ;;  %3000 = vmatpush.msrb.mxu0 %v2973_v32  ;;  %v2453_v8 = vld [vmem:[#allocation10] sm:$0xff]  ;;  %v5756_v44 = vpop.f32.mrf.mxu0  ;;  %v2939_v17 = vld [vmem:[#allocation3 + $0x20] sm:$0xff] }
 0x2ed   : > { %v1952_v22 = vpop.f32.mrf.mxu3  ;;  %2645 = vmatpush.msrb.mxu2 %v2454_v29  ;;  %2807 = vmatpush.msrb.mxu3 %v2778_v27 }
 0x2ee   : > { %v2323_v0 = vmax.f32 %v2291_v2, 0.0  ;;  %v2026_v21 = vadd.f32 %v1952_v22, %v1832_v62  ;;  %v2971_v62 = vld [vmem:[#allocation10 + $0x180] sm:$0xff]  ;;  %v1833_v2 = vadd.f32 %v5715_v34, %v1638_v54  ;;  %3001 = vmatpush.msrb.mxu0 %v2972_v4  ;;  %v1639_v34 = vadd.f32 %v5545_v30, %v5475_v37 }
 0x2ef   : > { %2646 = vmatpush.msrb.mxu2 %v2453_v8  ;;  %2808 = vmatpush.msrb.mxu3 %v2777_v56 }
 0x2f0   : > { %2399 = vst [vmem:[#allocation3 + $0x91] sm:$0xff] %v2323_v0  ;;  %v2220_v18 = vadd.f32 %v5697_v23, %v2026_v21  ;;  %2570 = vmatmul.f32.gmra.mxu1 %v2323_v0  ;;  %3002 = vmatpush.msrb.mxu0 %v2971_v62  ;;  %v2938_v23 = vld [vmem:[#allocation3 + $0x18] sm:$0xff]  ;;  %v5763_v0 = vpop.f32.mrf.mxu1  ;;  %v1834_v54 = vadd.f32 %v5727_v55, %v1639_v34  ;;  %v1883_v62 = vld [vmem:[#allocation2 + $0x199] sm:$0xff] }
 0x2f1   : > { %2647 = vmatmul.f32.vlgmr.msrb.gmra.mxu2 %v2421_v42  ;;  %3003 = vmatmul.f32.vlgmr.msrb.gmra.mxu0 %v2938_v23  ;;  %v1882_v21 = vld [vmem:[#allocation2 + $0x189] sm:$0xff] }
 0x2f2   : > { %v2256_v14 = vmul.f32 %v5626_v50, %v2220_v18  ;;  %2002 = vmatmul.f32.gmra.mxu3 %v1881_v48  ;;  %v5761_v47 = vpop.f32.mrf.mxu2 }
 0x2f4   : > { %v2292_v16 = vadd.f32 %v5632_v24, %v2256_v14  ;;  %v5768_v48 = vpop.f32.mrf.mxu0  ;;  %v3172_v14 = vld [vmem:[#allocation10 + $0x238] sm:$0xff] }
 0x2f5   : > { %v1955_v20 = vpop.f32.mrf.mxu3  ;;  %3189 = vmatpush.msrb.mxu1 %v3172_v14 }
 0x2f6   : > { %v2324_v22 = vmax.f32 %v2292_v16, 0.0  ;;  %v2027_v32 = vadd.f32 %v1955_v20, %v1833_v2  ;;  %v2940_v20 = vld [vmem:[#allocation3 + $0x30] sm:$0xff] }
 0x2f8   : > { %2400 = vst [vmem:[#allocation3 + $0x99] sm:$0xff] %v2324_v22  ;;  %v2221_v29 = vadd.f32 %v5710_v5, %v2027_v32  ;;  %2573 = vmatmul.f32.gmra.mxu1 %v2324_v22  ;;  %v1640_v5 = vadd.f32 %v5553_v28, %v5482_v7  ;;  %v5778_v55 = vpop.f32.mrf.mxu1  ;;  %v1884_v32 = vld [vmem:[#allocation2 + $0x1a1] sm:$0xff] }
 0x2f9   : > { %2650 = vmatmul.f32.gmra.mxu2 %v4427_v40  ;;  %3006 = vmatmul.f32.gmra.mxu0 %v2939_v17 }
 0x2fa   : > { %v2257_v4 = vmul.f32 %v5626_v50, %v2221_v29  ;;  %2005 = vmatmul.f32.gmra.mxu3 %v1882_v21  ;;  %v5773_v8 = vpop.f32.mrf.mxu2  ;;  %v1835_v56 = vadd.f32 %v5739_v53, %v1640_v5  ;;  %v1641_v21 = vadd.f32 %v5561_v19, %v5488_v57  ;;  %v3171_v5 = vld [vmem:[#allocation10 + $0x230] sm:$0xff] }
 0x2fb   : > { %3190 = vmatpush.msrb.mxu1 %v3171_v5 }
 0x2fc   : > { %v2293_v18 = vadd.f32 %v5632_v24, %v2257_v4  ;;  %v5780_v40 = vpop.f32.mrf.mxu0  ;;  %v1836_v4 = vadd.f32 %v5751_v46, %v1641_v21 }
 0x2fd   : > { %v1958_v27 = vpop.f32.mrf.mxu3 }
 0x2fe   : > { %v2325_v37 = vmax.f32 %v2293_v18, 0.0  ;;  %v2028_v30 = vadd.f32 %v1958_v27, %v1834_v54  ;;  %v2941_v18 = vld [vmem:[#allocation3 + $0x38] sm:$0xff] }
 0x300   : > { %2401 = vst [vmem:[#allocation3 + $0xa9] sm:$0xff] %v2325_v37  ;;  %v2222_v42 = vadd.f32 %v5722_v49, %v2028_v30  ;;  %2576 = vmatmul.f32.gmra.mxu1 %v2325_v37  ;;  %v5790_v29 = vpop.f32.mrf.mxu1  ;;  %v2744_v37 = vld [vmem:[#allocation3 + $0x2] sm:$0xff]  ;;  %v1642_v30 = vadd.f32 %v5575_v63, %v5494_v41 }
 0x301   : > { %2653 = vmatmul.f32.gmra.mxu2 %v2938_v23  ;;  %3009 = vmatmul.f32.gmra.mxu0 %v2940_v20 }
 0x302   : > { %v2258_v2 = vmul.f32 %v5626_v50, %v2222_v42  ;;  %2008 = vmatmul.f32.gmra.mxu3 %v1883_v62  ;;  %v5785_v28 = vpop.f32.mrf.mxu2  ;;  %v1837_v42 = vadd.f32 %v5761_v47, %v1642_v30 }
 0x304   : > { %v2294_v16 = vadd.f32 %v5632_v24, %v2258_v2  ;;  %v5792_v53 = vpop.f32.mrf.mxu0 }
 0x305   : > { %v1961_v7 = vpop.f32.mrf.mxu3 }
 0x306   : > { %v2326_v49 = vmax.f32 %v2294_v16, 0.0  ;;  %v2029_v22 = vadd.f32 %v1961_v7, %v1835_v56  ;;  %v2942_v56 = vld [vmem:[#allocation3 + $0x48] sm:$0xff] }
 0x307   : > { %v2745_v7 = vld [vmem:[#allocation3 + $0xa] sm:$0xff] }
 0x308   : > { %2402 = vst [vmem:[#allocation3 + $0xb1] sm:$0xff] %v2326_v49  ;;  %v2223_v34 = vadd.f32 %v5732_v3, %v2029_v22  ;;  %2579 = vmatmul.f32.gmra.mxu1 %v2326_v49  ;;  %v5806_v14 = vpop.f32.mrf.mxu1  ;;  %v1643_v49 = vadd.f32 %v5584_v45, %v5502_v36 }
 0x309   : > { %2656 = vmatmul.f32.gmra.mxu2 %v2939_v17  ;;  %3012 = vmatmul.f32.gmra.mxu0 %v2941_v18 }
 0x30a   : > { %v2259_v23 = vmul.f32 %v5626_v50, %v2223_v34  ;;  %2011 = vmatmul.f32.gmra.mxu3 %v1884_v32  ;;  %v5797_v57 = vpop.f32.mrf.mxu2  ;;  %v2943_v34 = vld [vmem:[#allocation3 + $0x50] sm:$0xff] }
 0x30c   : > { %v2295_v54 = vadd.f32 %v5632_v24, %v2259_v23  ;;  %v5802_v46 = vpop.f32.mrf.mxu0 }
 0x30d   : > { %v1964_v27 = vpop.f32.mrf.mxu3 }
 0x30e   : > { %v2327_v19 = vmax.f32 %v2295_v54, 0.0  ;;  %v2030_v3 = vadd.f32 %v1964_v27, %v1836_v4 }
 0x310   : > { %2403 = vst [vmem:[#allocation3 + $0xc1] sm:$0xff] %v2327_v19  ;;  %v2224_v62 = vadd.f32 %v5744_v39, %v2030_v3  ;;  %2582 = vmatmul.f32.gmra.mxu1 %v2327_v19  ;;  %v2746_v19 = vld [vmem:[#allocation3 + $0x1a] sm:$0xff] }
 0x311   : > { %2659 = vmatmul.f32.gmra.mxu2 %v2940_v20  ;;  %3015 = vmatmul.f32.gmra.mxu0 %v2942_v56  ;;  %v1838_v20 = vadd.f32 %v5773_v8, %v1643_v49  ;;  %v3170_v8 = vld [vmem:[#allocation10 + $0x228] sm:$0xff] }
 0x312   : > { %v2260_v17 = vmul.f32 %v5626_v50, %v2224_v62  ;;  %2809 = vmatmul.f32.vlgmr.msrb.gmra.mxu3 %v2744_v37  ;;  %v5809_v63 = vpop.f32.mrf.mxu2  ;;  %3191 = vmatpush.msrb.mxu1 %v3170_v8  ;;  %v2944_v62 = vld [vmem:[#allocation3 + $0x60] sm:$0xff] }
 0x314   : > { %v2296_v2 = vadd.f32 %v5632_v24, %v2260_v17  ;;  %v5814_v47 = vpop.f32.mrf.mxu0 }
 0x315   : > { %v1967_v41 = vpop.f32.mrf.mxu3 }
 0x316   : > { %v2328_v39 = vmax.f32 %v2296_v2, 0.0  ;;  %v2031_v16 = vadd.f32 %v1967_v41, %v1837_v42  ;;  %v1645_v42 = vadd.f32 %v5603_v58, %v5518_v9 }
 0x318   : > { %2404 = vst [vmem:[#allocation3 + $0xc9] sm:$0xff] %v2328_v39  ;;  %v2225_v22 = vadd.f32 %v5756_v44, %v2031_v16  ;;  %2585 = vmatmul.f32.gmra.mxu1 %v2328_v39  ;;  %v1644_v44 = vadd.f32 %v5593_v1, %v5510_v6  ;;  %v1840_v39 = vadd.f32 %v5797_v57, %v1645_v42  ;;  %v3169_v57 = vld [vmem:[#allocation10 + $0x220] sm:$0xff] }
 0x319   : > { %2662 = vmatmul.f32.gmra.mxu2 %v2941_v18  ;;  %3018 = vmatmul.f32.gmra.mxu0 %v2943_v34 }
 0x31a   : > { %v2261_v32 = vmul.f32 %v5626_v50, %v2225_v22  ;;  %2812 = vmatmul.f32.gmra.mxu3 %v2745_v7  ;;  %v5821_v54 = vpop.f32.mrf.mxu2  ;;  %v1839_v37 = vadd.f32 %v5785_v28, %v1644_v44  ;;  %v2747_v28 = vld [vmem:[#allocation3 + $0x22] sm:$0xff]  ;;  %3192 = vmatpush.msrb.mxu1 %v3169_v57  ;;  %v2946_v44 = vld [vmem:[#allocation3 + $0x78] sm:$0xff] }
 0x31b   : > { %v2945_v7 = vld [vmem:[#allocation3 + $0x68] sm:$0xff] }
 0x31c   : > { %v2297_v21 = vadd.f32 %v5632_v24, %v2261_v32  ;;  %v5826_v18 = vpop.f32.mrf.mxu0  ;;  %v1646_v32 = vadd.f32 %v5618_v51, %v5526_v43 }
 0x31d   : > { %v1970_v23 = vpop.f32.mrf.mxu3  ;;  %v5819_v4 = vpop.f32.mrf.mxu1 }
 0x31e   : > { %v2329_v36 = vmax.f32 %v2297_v21, 0.0  ;;  %v2032_v45 = vadd.f32 %v1970_v23, %v1838_v20  ;;  %v2748_v21 = vld [vmem:[#allocation3 + $0x32] sm:$0xff] }
 0x320   : > { %2405 = vst [vmem:[#allocation3 + $0xd9] sm:$0xff] %v2329_v36  ;;  %v2226_v27 = vadd.f32 %v5768_v48, %v2032_v45  ;;  %2588 = vmatmul.f32.gmra.mxu1 %v2329_v36  ;;  %v1841_v36 = vadd.f32 %v5809_v63, %v1646_v32  ;;  %v2749_v63 = vld [vmem:[#allocation3 + $0x3a] sm:$0xff] }
 0x321   : > { %2665 = vmatmul.f32.gmra.mxu2 %v2942_v56  ;;  %3021 = vmatmul.f32.gmra.mxu0 %v2944_v62 }
 0x322   : > { %v2262_v3 = vmul.f32 %v5626_v50, %v2226_v27  ;;  %2815 = vmatmul.f32.gmra.mxu3 %v2746_v19  ;;  %v5833_v17 = vpop.f32.mrf.mxu2  ;;  %v1647_v19 = vadd.f32 %v5638_v31, %v5532_v13 }
 0x324   : > { %v2298_v30 = vadd.f32 %v5632_v24, %v2262_v3  ;;  %v5838_v41 = vpop.f32.mrf.mxu0 }
 0x325   : > { %v1973_v5 = vpop.f32.mrf.mxu3  ;;  %v5831_v6 = vpop.f32.mrf.mxu1 }
 0x326   : > { %v2330_v1 = vmax.f32 %v2298_v30, 0.0  ;;  %v2033_v48 = vadd.f32 %v1973_v5, %v1839_v37 }
 0x328   : > { %2406 = vst [vmem:[#allocation3 + $0xe1] sm:$0xff] %v2330_v1  ;;  %v2227_v2 = vadd.f32 %v5780_v40, %v2033_v48  ;;  %2591 = vmatmul.f32.gmra.mxu1 %v2330_v1  ;;  %v2947_v1 = vld [vmem:[#allocation3 + $0x80] sm:$0xff] }
 0x329   : > { %2668 = vmatmul.f32.gmra.mxu2 %v2943_v34  ;;  %3024 = vmatmul.f32.gmra.mxu0 %v2945_v7 }
 0x32a   : > { %v2263_v56 = vmul.f32 %v5626_v50, %v2227_v2  ;;  %2818 = vmatmul.f32.gmra.mxu3 %v2747_v28  ;;  %v5845_v40 = vpop.f32.mrf.mxu2  ;;  %v1648_v2 = vadd.f32 %v5652_v12, %v5540_v61 }
 0x32c   : > { %v2299_v16 = vadd.f32 %v5632_v24, %v2263_v56  ;;  %v5850_v34 = vpop.f32.mrf.mxu0  ;;  %v2750_v56 = vld [vmem:[#allocation3 + $0x4a] sm:$0xff] }
 0x32d   : > { %v1976_v49 = vpop.f32.mrf.mxu3  ;;  %v5843_v22 = vpop.f32.mrf.mxu1 }
 0x32e   : > { %v2331_v9 = vmax.f32 %v2299_v16, 0.0  ;;  %v2034_v58 = vadd.f32 %v1976_v49, %v1840_v39 }
 0x330   : > { %2407 = vst [vmem:[#allocation3 + $0xf1] sm:$0xff] %v2331_v9  ;;  %v2228_v20 = vadd.f32 %v5792_v53, %v2034_v58  ;;  %2594 = vmatmul.f32.gmra.mxu1 %v2331_v9  ;;  %v2948_v9 = vld [vmem:[#allocation3 + $0x90] sm:$0xff] }
 0x331   : > { %2671 = vmatmul.f32.gmra.mxu2 %v2944_v62  ;;  %3027 = vmatmul.f32.gmra.mxu0 %v2946_v44  ;;  %v1842_v62 = vadd.f32 %v5821_v54, %v1647_v19  ;;  %v3168_v54 = vld [vmem:[#allocation10 + $0x218] sm:$0xff]  ;;  %v2752_v19 = vld [vmem:[#allocation3 + $0x62] sm:$0xff] }
 0x332   : > { %v2264_v23 = vmul.f32 %v5626_v50, %v2228_v20  ;;  %2821 = vmatmul.f32.gmra.mxu3 %v2748_v21  ;;  %v5857_v8 = vpop.f32.mrf.mxu2  ;;  %3193 = vmatpush.msrb.mxu1 %v3168_v54  ;;  %v1649_v20 = vadd.f32 %v5663_v26, %v5548_v60 }
 0x334   : > { %v2300_v45 = vadd.f32 %v5632_v24, %v2264_v23  ;;  %v5862_v37 = vpop.f32.mrf.mxu0 }
 0x335   : > { %v1979_v27 = vpop.f32.mrf.mxu3  ;;  %v5855_v43 = vpop.f32.mrf.mxu1 }
 0x336   : > { %v2332_v51 = vmax.f32 %v2300_v45, 0.0  ;;  %v2035_v53 = vadd.f32 %v1979_v27, %v1841_v36  ;;  %v1844_v36 = vadd.f32 %v5845_v40, %v1649_v20  ;;  %v3167_v40 = vld [vmem:[#allocation10 + $0x210] sm:$0xff] }
 0x337   : > { %3194 = vmatpush.msrb.mxu1 %v3167_v40 }
 0x338   : > { %2408 = vst [vmem:[#allocation3 + $0xf9] sm:$0xff] %v2332_v51  ;;  %v2229_v3 = vadd.f32 %v5802_v46, %v2035_v53  ;;  %2597 = vmatmul.f32.gmra.mxu1 %v2332_v51  ;;  %v1650_v53 = vadd.f32 %v5677_v10, %v5556_v59  ;;  %v5910_v59 = vld [vmem:[%s6686_s5] ss:$0 sm:$0xff] }
 0x339   : > { %2674 = vmatmul.f32.gmra.mxu2 %v2945_v7  ;;  %3030 = vmatmul.f32.gmra.mxu0 %v2947_v1  ;;  %v1843_v7 = vadd.f32 %v5833_v17, %v1648_v2  ;;  %v2751_v17 = vld [vmem:[#allocation3 + $0x52] sm:$0xff]  ;;  %v2753_v2 = vld [vmem:[#allocation3 + $0x6a] sm:$0xff] }
 0x33a   : > { %v2265_v30 = vmul.f32 %v5626_v50, %v2229_v3  ;;  %2824 = vmatmul.f32.gmra.mxu3 %v2749_v63  ;;  %v5869_v46 = vpop.f32.mrf.mxu2  ;;  %v5903_v3 = vld [vmem:[%s6685_s4] ss:$0 sm:$0xff] }
 0x33c   : > { %v2301_v5 = vadd.f32 %v5632_v24, %v2265_v30  ;;  %v5874_v39 = vpop.f32.mrf.mxu0  ;;  %v1845_v30 = vadd.f32 %v5857_v8, %v1650_v53  ;;  %v1651_v8 = vadd.f32 %v5691_v38, %v5564_v11 }
 0x33d   : > { %v1982_v48 = vpop.f32.mrf.mxu3  ;;  %v5867_v42 = vpop.f32.mrf.mxu1 }
 0x33e   : > { %v2333_v13 = vmax.f32 %v2301_v5, 0.0  ;;  %v2036_v31 = vadd.f32 %v1982_v48, %v1842_v62 }
 0x340   : > { %2409 = vst [vmem:[#allocation3 + $0x109] sm:$0xff] %v2333_v13  ;;  %v2230_v28 = vadd.f32 %v5814_v47, %v2036_v31  ;;  %2600 = vmatmul.f32.gmra.mxu1 %v2333_v13 }
 0x341   : > { %2677 = vmatmul.f32.gmra.mxu2 %v2946_v44  ;;  %3033 = vmatmul.f32.gmra.mxu0 %v2948_v9  ;;  %v2949_v44 = vld [vmem:[#allocation3 + $0x98] sm:$0xff] }
 0x342   : > { %v2266_v16 = vmul.f32 %v5626_v50, %v2230_v28  ;;  %2827 = vmatmul.f32.gmra.mxu3 %v2750_v56  ;;  %v5881_v32 = vpop.f32.mrf.mxu2  ;;  %v1846_v56 = vadd.f32 %v5869_v46, %v1651_v8  ;;  %v3166_v46 = vld [vmem:[#allocation10 + $0x208] sm:$0xff]  ;;  %v2756_v8 = vld [vmem:[#allocation3 + $0x92] sm:$0xff] }
 0x343   : > { %3195 = vmatpush.msrb.mxu1 %v3166_v46  ;;  %v3569_v46 = vld [vmem:[#allocation10 + $0x378] sm:$0xff] }
 0x344   : > { %v2302_v49 = vadd.f32 %v5632_v24, %v2266_v16  ;;  %v5886_v21 = vpop.f32.mrf.mxu0  ;;  %3570 = vmatpush.msra.mxu3 %v3569_v46 }
 0x345   : > { %v1985_v58 = vpop.f32.mrf.mxu3  ;;  %v5879_v61 = vpop.f32.mrf.mxu1 }
 0x346   : > { %v2334_v12 = vmax.f32 %v2302_v49, 0.0  ;;  %v2037_v47 = vadd.f32 %v1985_v58, %v1843_v7  ;;  %v2951_v7 = vld [vmem:[#allocation3 + $0xb0] sm:$0xff]  ;;  %v1652_v58 = vadd.f32 %v5705_v25, %v5571_v33 }
 0x348   : > { %2410 = vst [vmem:[#allocation3 + $0x111] sm:$0xff] %v2334_v12  ;;  %v2231_v57 = vadd.f32 %v5826_v18, %v2037_v47  ;;  %2603 = vmatmul.f32.gmra.mxu1 %v2334_v12  ;;  %v2754_v47 = vld [vmem:[#allocation3 + $0x7a] sm:$0xff] }
 0x349   : > { %2680 = vmatmul.f32.gmra.mxu2 %v2947_v1  ;;  %3036 = vmatmul.f32.gmra.mxu0 %v2949_v44 }
 0x34a   : > { %v2267_v23 = vmul.f32 %v5626_v50, %v2231_v57  ;;  %2830 = vmatmul.f32.gmra.mxu3 %v2751_v17  ;;  %v5893_v18 = vpop.f32.mrf.mxu2  ;;  %v1847_v17 = vadd.f32 %v5881_v32, %v1652_v58  ;;  %v2755_v32 = vld [vmem:[#allocation3 + $0x82] sm:$0xff] }
 0x34c   : > { %v2303_v45 = vadd.f32 %v5632_v24, %v2267_v23  ;;  %v5898_v24 = vpop.f32.mrf.mxu0 }
 0x34d   : > { %v1988_v27 = vpop.f32.mrf.mxu3  ;;  %v5891_v51 = vpop.f32.mrf.mxu1 }
 0x34e   : > { %v2335_v60 = vmax.f32 %v2303_v45, 0.0  ;;  %v2038_v26 = vadd.f32 %v1988_v27, %v1844_v36  ;;  %v2952_v36 = vld [vmem:[#allocation3 + $0xc0] sm:$0xff]  ;;  %v6710_v27 = vld [vmem:[#allocation17_spill] sm:$0xff] }
 0x350   : > { %2411 = vst [vmem:[#allocation3 + $0x121] sm:$0xff] %v2335_v60  ;;  %v2232_v50 = vadd.f32 %v5838_v41, %v2038_v26  ;;  %2606 = vmatmul.f32.gmra.mxu1 %v2335_v60  ;;  %v2950_v41 = vld [vmem:[#allocation3 + $0xa8] sm:$0xff]  ;;  %v1653_v60 = vadd.f32 %v5719_v15, %v6710_v27 }
 0x351   : > { %2683 = vmatmul.f32.gmra.mxu2 %v2948_v9  ;;  %3039 = vmatmul.f32.gmra.mxu0 %v2950_v41 }
 0x352   : > { %v2268_v63 = vmul.f32 %v5903_v3, %v2232_v50  ;;  %2833 = vmatmul.f32.gmra.mxu3 %v2752_v19  ;;  %v5915_v13 = vpop.f32.mrf.mxu2  ;;  %v1848_v40 = vadd.f32 %v5893_v18, %v1653_v60  ;;  %v3165_v18 = vld [vmem:[#allocation10 + $0x200] sm:$0xff] }
 0x353   : > { %3196 = vmatpush.msrb.mxu1 %v3165_v18 }
 0x354   : > { %v2304_v10 = vadd.f32 %v5910_v59, %v2268_v63  ;;  %v5920_v28 = vpop.f32.mrf.mxu0  ;;  %v2953_v63 = vld [vmem:[#allocation3 + $0xc8] sm:$0xff] }
 0x355   : > { %v1991_v62 = vpop.f32.mrf.mxu3  ;;  %v5913_v5 = vpop.f32.mrf.mxu1 }
 0x356   : > { %v2336_v1 = vmax.f32 %v2304_v10, 0.0  ;;  %v2039_v48 = vadd.f32 %v1991_v62, %v1845_v30  ;;  %v6711_v62 = vld [vmem:[#allocation19_spill] sm:$0xff] }
 0x358   : > { %2412 = vst [vmem:[#allocation3 + $0x129] sm:$0xff] %v2336_v1  ;;  %v2233_v31 = vadd.f32 %v5850_v34, %v2039_v48  ;;  %2609 = vmatmul.f32.gmra.mxu1 %v2336_v1  ;;  %v1654_v1 = vadd.f32 %v5734_v52, %v6711_v62 }
 0x359   : > { %2686 = vmatmul.f32.gmra.mxu2 %v2949_v44  ;;  %3042 = vmatmul.f32.gmra.mxu0 %v2951_v7 }
 0x35a   : > { %v2269_v54 = vmul.f32 %v5903_v3, %v2233_v31  ;;  %2836 = vmatmul.f32.gmra.mxu3 %v2753_v2  ;;  %v5927_v34 = vpop.f32.mrf.mxu2  ;;  %v1849_v2 = vadd.f32 %v5915_v13, %v1654_v1  ;;  %v2956_v1 = vld [vmem:[#allocation3 + $0xf0] sm:$0xff] }
 0x35c   : > { %v2305_v16 = vadd.f32 %v5910_v59, %v2269_v54  ;;  %v5932_v20 = vpop.f32.mrf.mxu0 }
 0x35d   : > { %v1994_v49 = vpop.f32.mrf.mxu3  ;;  %v5925_v9 = vpop.f32.mrf.mxu1 }
 0x35e   : > { %v2337_v11 = vmax.f32 %v2305_v16, 0.0  ;;  %v2040_v38 = vadd.f32 %v1994_v49, %v1846_v56  ;;  %v2954_v16 = vld [vmem:[#allocation3 + $0xd8] sm:$0xff] }
 0x360   : > { %2413 = vst [vmem:[#allocation3 + $0x139] sm:$0xff] %v2337_v11  ;;  %v2234_v12 = vadd.f32 %v5862_v37, %v2040_v38  ;;  %2612 = vmatmul.f32.gmra.mxu1 %v2337_v11  ;;  %v6712_v38 = vld [vmem:[#allocation20_spill] sm:$0xff] }
 0x361   : > { %2689 = vmatmul.f32.gmra.mxu2 %v2950_v41  ;;  %3045 = vmatmul.f32.gmra.mxu0 %v2952_v36  ;;  %v1655_v58 = vadd.f32 %v5748_v35, %v6712_v38  ;;  %v3956_v38 = vld [vmem:[#allocation10 + $0x470] sm:$0xff] }
 0x362   : > { %v2270_v57 = vmul.f32 %v5903_v3, %v2234_v12  ;;  %2839 = vmatmul.f32.gmra.mxu3 %v2754_v47  ;;  %v5939_v44 = vpop.f32.mrf.mxu2  ;;  %v3374_v12 = vld [vmem:[#allocation10 + $0x2f8] sm:$0xff] }
 0x363   : > { %v3763_v47 = vld [vmem:[#allocation10 + $0x3f8] sm:$0xff]  ;;  %3375 = vmatpush.msra.mxu2 %v3374_v12 }
 0x364   : > { %v2306_v23 = vadd.f32 %v5910_v59, %v2270_v57  ;;  %v5944_v53 = vpop.f32.mrf.mxu0  ;;  %v2757_v57 = vld [vmem:[#allocation3 + $0x9a] sm:$0xff]  ;;  %3764 = vmatpush.msra.mxu0 %v3763_v47 }
 0x365   : > { %v1997_v45 = vpop.f32.mrf.mxu3  ;;  %v5937_v33 = vpop.f32.mrf.mxu1  ;;  %v3372_v47 = vld [vmem:[#allocation10 + $0x2e8] sm:$0xff] }
 0x366   : > { %v2338_v25 = vmax.f32 %v2306_v23, 0.0  ;;  %v2041_v37 = vadd.f32 %v1997_v45, %v1847_v17  ;;  %v1850_v23 = vadd.f32 %v5927_v34, %v1655_v58  ;;  %v3957_v45 = vld [vmem:[#allocation10 + $0x478] sm:$0xff]  ;;  %v6713_v34 = vld [vmem:[#allocation21_spill] sm:$0xff] }
 0x367   : > { %3958 = vmatpush.msra.mxu1 %v3957_v45  ;;  %v2760_v45 = vld [vmem:[#allocation3 + $0xc2] sm:$0xff] }
 0x368   : > { %2414 = vst [vmem:[#allocation3 + $0x141] sm:$0xff] %v2338_v25  ;;  %v2235_v26 = vadd.f32 %v5874_v39, %v2041_v37  ;;  %2615 = vmatmul.f32.gmra.mxu1 %v2338_v25 }
 0x369   : > { %2692 = vmatmul.f32.gmra.mxu2 %v2951_v7  ;;  %3048 = vmatmul.f32.gmra.mxu0 %v2953_v63 }
 0x36a   : > { %v2271_v50 = vmul.f32 %v5903_v3, %v2235_v26  ;;  %2842 = vmatmul.f32.gmra.mxu3 %v2755_v32  ;;  %v5951_v39 = vpop.f32.mrf.mxu2  ;;  %v3373_v26 = vld [vmem:[#allocation10 + $0x2f0] sm:$0xff]  ;;  %3959 = vmatpush.msra.mxu1 %v3956_v38  ;;  %v3760_v38 = vld [vmem:[#allocation10 + $0x3e0] sm:$0xff] }
 0x36b   : > { %v3568_v32 = vld [vmem:[#allocation10 + $0x370] sm:$0xff]  ;;  %3376 = vmatpush.msra.mxu2 %v3373_v26 }
 0x36c   : > { %v2307_v19 = vadd.f32 %v5910_v59, %v2271_v50  ;;  %3571 = vmatpush.msra.mxu3 %v3568_v32 }
 0x36d   : > { %v2000_v30 = vpop.f32.mrf.mxu3  ;;  %v5949_v10 = vpop.f32.mrf.mxu1  ;;  %3377 = vmatpush.msra.mxu2 %v3372_v47 }
 0x36e   : > { %v2339_v15 = vmax.f32 %v2307_v19, 0.0  ;;  %v2042_v41 = vadd.f32 %v2000_v30, %v1848_v40  ;;  %v5958_v54 = vpop.f32.mrf.mxu0  ;;  %v1656_v40 = vadd.f32 %v5763_v0, %v6713_v34 }
 0x370   : > { %2415 = vst [vmem:[#allocation3 + $0x151] sm:$0xff] %v2339_v15  ;;  %v2236_v48 = vadd.f32 %v5886_v21, %v2042_v41  ;;  %2618 = vmatmul.f32.gmra.mxu1 %v2339_v15  ;;  %v1851_v15 = vadd.f32 %v5939_v44, %v1656_v40  ;;  %v3761_v40 = vld [vmem:[#allocation10 + $0x3e8] sm:$0xff] }
 0x371   : > { %2695 = vmatmul.f32.gmra.mxu2 %v2952_v36  ;;  %3051 = vmatmul.f32.gmra.mxu0 %v2954_v16 }
 0x372   : > { %v2272_v31 = vmul.f32 %v5903_v3, %v2236_v48  ;;  %2845 = vmatmul.f32.gmra.mxu3 %v2756_v8 }
 0x374   : > { %v2308_v56 = vadd.f32 %v5910_v59, %v2272_v31  ;;  %v5963_v11 = vpop.f32.mrf.mxu2 }
 0x375   : > { %v2003_v7 = vpop.f32.mrf.mxu3  ;;  %v5961_v52 = vpop.f32.mrf.mxu1 }
 0x376   : > { %v2340_v21 = vmax.f32 %v2308_v56, 0.0  ;;  %v2043_v49 = vadd.f32 %v2003_v7, %v1849_v2  ;;  %v5970_v36 = vpop.f32.mrf.mxu0  ;;  %v6714_v2 = vld [vmem:[#allocation22_spill] sm:$0xff]  ;;  %v2759_v7 = vld [vmem:[#allocation3 + $0xb2] sm:$0xff] }
 0x377   : > { %v1657_v56 = vadd.f32 %v5778_v55, %v6714_v2 }
 0x378   : > { %2416 = vst [vmem:[#allocation3 + $0x159] sm:$0xff] %v2340_v21  ;;  %v2237_v13 = vadd.f32 %v5898_v24, %v2043_v49  ;;  %2621 = vmatmul.f32.gmra.mxu1 %v2340_v21  ;;  %v2955_v24 = vld [vmem:[#allocation3 + $0xe0] sm:$0xff] }
 0x379   : > { %2698 = vmatmul.f32.gmra.mxu2 %v2953_v63  ;;  %3054 = vmatmul.f32.gmra.mxu0 %v2955_v24  ;;  %v2758_v63 = vld [vmem:[#allocation3 + $0xaa] sm:$0xff]  ;;  %v1852_v21 = vadd.f32 %v5951_v39, %v1657_v56 }
 0x37a   : > { %v2273_v17 = vmul.f32 %v5903_v3, %v2237_v13  ;;  %2848 = vmatmul.f32.gmra.mxu3 %v2757_v57  ;;  %v2957_v13 = vld [vmem:[#allocation3 + $0xf8] sm:$0xff] }
 0x37b   : > { %v3567_v57 = vld [vmem:[#allocation10 + $0x368] sm:$0xff] }
 0x37c   : > { %v2309_v35 = vadd.f32 %v5910_v59, %v2273_v17  ;;  %v5975_v50 = vpop.f32.mrf.mxu2  ;;  %v3132_v17 = vld [vmem:[#allocation3 + $0x19] sm:$0xff]  ;;  %3572 = vmatpush.msra.mxu3 %v3567_v57 }
 0x37d   : > { %v2006_v25 = vpop.f32.mrf.mxu3  ;;  %v5973_v37 = vpop.f32.mrf.mxu1 }
 0x37e   : > { %v2341_v27 = vmax.f32 %v2309_v35, 0.0  ;;  %v2044_v60 = vadd.f32 %v2006_v25, %v1850_v23  ;;  %v5982_v41 = vpop.f32.mrf.mxu0 }
 0x380   : > { %2417 = vst [vmem:[#allocation3 + $0x169] sm:$0xff] %v2341_v27  ;;  %v2238_v19 = vadd.f32 %v5920_v28, %v2044_v60  ;;  %2624 = vmatmul.f32.gmra.mxu1 %v2341_v27  ;;  %v3762_v28 = vld [vmem:[#allocation10 + $0x3f0] sm:$0xff] }
 0x381   : > { %2701 = vmatmul.f32.gmra.mxu2 %v2954_v16  ;;  %3057 = vmatmul.f32.gmra.mxu0 %v2956_v1  ;;  %v2958_v60 = vld [vmem:[#allocation3 + $0x108] sm:$0xff] }
 0x382   : > { %v2274_v30 = vmul.f32 %v5903_v3, %v2238_v19  ;;  %2851 = vmatmul.f32.gmra.mxu3 %v2758_v63  ;;  %3765 = vmatpush.msra.mxu0 %v3762_v28  ;;  %v3133_v19 = vld [vmem:[#allocation3 + $0x21] sm:$0xff] }
 0x384   : > { %v2310_v62 = vadd.f32 %v5910_v59, %v2274_v30  ;;  %v5987_v31 = vpop.f32.mrf.mxu2  ;;  %3766 = vmatpush.msra.mxu0 %v3761_v40  ;;  %v3955_v30 = vld [vmem:[#allocation10 + $0x468] sm:$0xff]  ;;  %v3759_v40 = vld [vmem:[#allocation10 + $0x3d8] sm:$0xff] }
 0x385   : > { %v2009_v48 = vpop.f32.mrf.mxu3  ;;  %v5985_v18 = vpop.f32.mrf.mxu1  ;;  %3960 = vmatpush.msra.mxu1 %v3955_v30  ;;  %v2655_v2 = vadd.f32 %v5987_v31, %v5819_v4  ;;  %v2763_v4 = vld [vmem:[#allocation3 + $0xe2] sm:$0xff]  ;;  %v3953_v30 = vld [vmem:[#allocation10 + $0x458] sm:$0xff] }
 0x386   : > { %v2342_v0 = vmax.f32 %v2310_v62, 0.0  ;;  %v2045_v8 = vadd.f32 %v2009_v48, %v1851_v15  ;;  %v5994_v49 = vpop.f32.mrf.mxu0  ;;  %v2959_v15 = vld [vmem:[#allocation3 + $0x110] sm:$0xff]  ;;  %3767 = vmatpush.msra.mxu0 %v3760_v38 }
 0x388   : > { %2418 = vst [vmem:[#allocation3 + $0x171] sm:$0xff] %v2342_v0  ;;  %v2239_v44 = vadd.f32 %v5932_v20, %v2045_v8  ;;  %2627 = vmatmul.f32.gmra.mxu1 %v2342_v0  ;;  %v3371_v0 = vld [vmem:[#allocation10 + $0x2e0] sm:$0xff]  ;;  %3768 = vmatpush.msra.mxu0 %v3759_v40 }
 0x389   : > { %2704 = vmatmul.f32.gmra.mxu2 %v2955_v24  ;;  %3060 = vmatmul.f32.gmra.mxu0 %v2957_v13  ;;  %v2649_v24 = vadd.f32 %v5963_v11, %v5790_v29  ;;  %v3566_v8 = vld [vmem:[#allocation10 + $0x360] sm:$0xff] }
 0x38a   : > { %v2275_v16 = vmul.f32 %v5903_v3, %v2239_v44  ;;  %2854 = vmatmul.f32.gmra.mxu3 %v2759_v7  ;;  %3378 = vmatpush.msra.mxu2 %v3371_v0  ;;  %v2960_v44 = vld [vmem:[#allocation3 + $0x120] sm:$0xff] }
 0x38b   : > { %3573 = vmatpush.msra.mxu3 %v3566_v8  ;;  %v3369_v8 = vld [vmem:[#allocation10 + $0x2d0] sm:$0xff]  ;;  %v6092_v40 = vld [vmem:[#allocation3 + $0x79] sm:$0xff] }
 0x38c   : > { %v2311_v58 = vadd.f32 %v5910_v59, %v2275_v16  ;;  %v5999_v23 = vpop.f32.mrf.mxu2 }
 0x38d   : > { %v2012_v12 = vpop.f32.mrf.mxu3  ;;  %v5997_v55 = vpop.f32.mrf.mxu1  ;;  %v2658_v31 = vadd.f32 %v5999_v23, %v5831_v6  ;;  %v2764_v23 = vld [vmem:[#allocation3 + $0xf2] sm:$0xff] }
 0x38e   : > { %v2343_v20 = vmax.f32 %v2311_v58, 0.0  ;;  %v2046_v46 = vadd.f32 %v2012_v12, %v1852_v21  ;;  %v6005_v25 = vpop.f32.mrf.mxu0  ;;  %v6033_v58 = vld [vmem:[#allocation3 + $0x39] sm:$0xff] }
 0x390   : > { %2419 = vst [vmem:[#allocation3 + $0x181] sm:$0xff] %v2343_v20  ;;  %v2240_v39 = vadd.f32 %v5944_v53, %v2046_v46  ;;  %3197 = vmatmul.f32.vlgmr.msrb.gmra.mxu1 %v3132_v17  ;;  %v3954_v20 = vld [vmem:[#allocation10 + $0x460] sm:$0xff]  ;;  %v2961_v46 = vld [vmem:[#allocation3 + $0x128] sm:$0xff] }
 0x391   : > { %2707 = vmatmul.f32.gmra.mxu2 %v2956_v1  ;;  %3063 = vmatmul.f32.gmra.mxu0 %v2958_v60 }
 0x392   : > { %v2276_v35 = vmul.f32 %v5903_v3, %v2240_v39  ;;  %2857 = vmatmul.f32.gmra.mxu3 %v2760_v45  ;;  %v2761_v3 = vld [vmem:[#allocation3 + $0xca] sm:$0xff]  ;;  %3961 = vmatpush.msra.mxu1 %v3954_v20  ;;  %v3758_v20 = vld [vmem:[#allocation10 + $0x3d0] sm:$0xff] }
 0x393   : > { %v3370_v39 = vld [vmem:[#allocation10 + $0x2d8] sm:$0xff]  ;;  %3769 = vmatpush.msra.mxu0 %v3758_v20 }
 0x394   : > { %v2312_v27 = vadd.f32 %v5910_v59, %v2276_v35  ;;  %v6010_v63 = vpop.f32.mrf.mxu2  ;;  %v2652_v59 = vadd.f32 %v5975_v50, %v5806_v14  ;;  %v2762_v50 = vld [vmem:[#allocation3 + $0xda] sm:$0xff]  ;;  %v3565_v45 = vld [vmem:[#allocation10 + $0x358] sm:$0xff]  ;;  %3379 = vmatpush.msra.mxu2 %v3370_v39  ;;  %3962 = vmatpush.msra.mxu1 %v3953_v30  ;;  %v3952_v39 = vld [vmem:[#allocation10 + $0x450] sm:$0xff] }
 0x395   : > { %v2810_v26 = vpop.f32.mrf.mxu3  ;;  %v6008_v32 = vpop.f32.mrf.mxu1  ;;  %3574 = vmatpush.msra.mxu3 %v3565_v45  ;;  %v2965_v45 = vld [vmem:[#allocation3 + $0x158] sm:$0xff]  ;;  %v2966_v30 = vld [vmem:[#allocation3 + $0x168] sm:$0xff] }
 0x396   : > { %v2344_v34 = vmax.f32 %v2312_v27, 0.0  ;;  %v2906_v53 = vadd.f32 %v2810_v26, %v2649_v24  ;;  %v6017_v11 = vpop.f32.mrf.mxu0  ;;  %v2661_v24 = vadd.f32 %v6010_v63, %v5843_v22  ;;  %v2765_v22 = vld [vmem:[#allocation3 + $0xfa] sm:$0xff]  ;;  %3380 = vmatpush.msra.mxu2 %v3369_v8  ;;  %3963 = vmatpush.msra.mxu1 %v3952_v39  ;;  %v3562_v39 = vld [vmem:[#allocation10 + $0x340] sm:$0xff] }
 0x397   : > { %v3757_v8 = vld [vmem:[#allocation10 + $0x3c8] sm:$0xff] }
 0x398   : > { %2420 = vst [vmem:[#allocation3 + $0x189] sm:$0xff] %v2344_v34  ;;  %3200 = vmatmul.f32.gmra.mxu1 %v3133_v19  ;;  %v6013_v29 = vadd.f32 %v5958_v54, %v2906_v53  ;;  %v6021_v54 = vld [vmem:[#allocation3 + $0x31] sm:$0xff]  ;;  %3770 = vmatpush.msra.mxu0 %v3757_v8 }
 0x399   : > { %2710 = vmatmul.f32.gmra.mxu2 %v2957_v13  ;;  %3066 = vmatmul.f32.gmra.mxu0 %v2959_v15  ;;  %v6057_v19 = vld [vmem:[#allocation3 + $0x51] sm:$0xff] }
 0x39a   : > { %2860 = vmatmul.f32.gmra.mxu3 %v2761_v3 }
 0x39c   : > { %v2663_v28 = vpop.f32.mrf.mxu2 }
 0x39d   : > { %v2813_v62 = vpop.f32.mrf.mxu3  ;;  %v6019_v1 = vpop.f32.mrf.mxu1  ;;  %v2664_v63 = vadd.f32 %v2663_v28, %v5855_v43  ;;  %v2766_v28 = vld [vmem:[#allocation3 + $0x10a] sm:$0xff] }
 0x39e   : > { %v2907_v48 = vadd.f32 %v2813_v62, %v2652_v59  ;;  %v6029_v56 = vpop.f32.mrf.mxu0 }
 0x3a0   : > { %3203 = vmatmul.f32.gmra.mxu1 %v6021_v54  ;;  %v6025_v14 = vadd.f32 %v5970_v36, %v2907_v48 }
 0x3a1   : > { %2713 = vmatmul.f32.gmra.mxu2 %v2958_v60  ;;  %3069 = vmatmul.f32.gmra.mxu0 %v2960_v44  ;;  %v2962_v60 = vld [vmem:[#allocation3 + $0x138] sm:$0xff] }
 0x3a2   : > { %2863 = vmatmul.f32.gmra.mxu3 %v2762_v50  ;;  %v3564_v50 = vld [vmem:[#allocation10 + $0x350] sm:$0xff] }
 0x3a3   : > { %3575 = vmatpush.msra.mxu3 %v3564_v50  ;;  %v6105_v50 = vld [vmem:[#allocation3 + $0x81] sm:$0xff] }
 0x3a4   : > { %v2666_v13 = vpop.f32.mrf.mxu2 }
 0x3a5   : > { %v2816_v7 = vpop.f32.mrf.mxu3  ;;  %v6031_v16 = vpop.f32.mrf.mxu1 }
 0x3a6   : > { %v2908_v21 = vadd.f32 %v2816_v7, %v2655_v2  ;;  %v6041_v12 = vpop.f32.mrf.mxu0  ;;  %v6068_v2 = vld [vmem:[#allocation3 + $0x61] sm:$0xff] }
 0x3a8   : > { %3206 = vmatmul.f32.gmra.mxu1 %v6033_v58  ;;  %v6037_v36 = vadd.f32 %v5982_v41, %v2908_v21  ;;  %v6045_v41 = vld [vmem:[#allocation3 + $0x49] sm:$0xff] }
 0x3a9   : > { %2716 = vmatmul.f32.gmra.mxu2 %v2959_v15  ;;  %3072 = vmatmul.f32.gmra.mxu0 %v2961_v46  ;;  %v2963_v15 = vld [vmem:[#allocation3 + $0x140] sm:$0xff]  ;;  %v2964_v21 = vld [vmem:[#allocation3 + $0x150] sm:$0xff] }
 0x3aa   : > { %2866 = vmatmul.f32.gmra.mxu3 %v2763_v4 }
 0x3ac   : > { %v2669_v35 = vpop.f32.mrf.mxu2 }
 0x3ad   : > { %v2819_v47 = vpop.f32.mrf.mxu3  ;;  %v6043_v57 = vpop.f32.mrf.mxu1 }
 0x3ae   : > { %v2909_v17 = vadd.f32 %v2819_v47, %v2658_v31  ;;  %v6053_v27 = vpop.f32.mrf.mxu0 }
 0x3b0   : > { %3209 = vmatmul.f32.gmra.mxu1 %v6045_v41  ;;  %v6049_v6 = vadd.f32 %v5994_v49, %v2909_v17 }
 0x3b1   : > { %2719 = vmatmul.f32.gmra.mxu2 %v2960_v44  ;;  %3075 = vmatmul.f32.gmra.mxu0 %v2962_v60  ;;  %v2667_v44 = vadd.f32 %v2666_v13, %v5867_v42  ;;  %v2767_v42 = vld [vmem:[#allocation3 + $0x112] sm:$0xff]  ;;  %v2670_v13 = vadd.f32 %v2669_v35, %v5879_v61  ;;  %v2768_v35 = vld [vmem:[#allocation3 + $0x122] sm:$0xff] }
 0x3b2   : > { %2869 = vmatmul.f32.gmra.mxu3 %v2764_v23 }
 0x3b4   : > { %v2672_v3 = vpop.f32.mrf.mxu2 }
 0x3b5   : > { %v2822_v26 = vpop.f32.mrf.mxu3  ;;  %v6055_v34 = vpop.f32.mrf.mxu1 }
 0x3b6   : > { %v2910_v53 = vadd.f32 %v2822_v26, %v2661_v24  ;;  %v6064_v59 = vpop.f32.mrf.mxu0  ;;  %v3368_v26 = vld [vmem:[#allocation10 + $0x2c8] sm:$0xff] }
 0x3b7   : > { %3381 = vmatpush.msra.mxu2 %v3368_v26 }
 0x3b8   : > { %3212 = vmatmul.f32.gmra.mxu1 %v6057_v19  ;;  %v6061_v49 = vadd.f32 %v6005_v25, %v2910_v53  ;;  %v3563_v53 = vld [vmem:[#allocation10 + $0x348] sm:$0xff] }
 0x3b9   : > { %2722 = vmatmul.f32.gmra.mxu2 %v2961_v46  ;;  %3078 = vmatmul.f32.gmra.mxu0 %v2963_v15  ;;  %v6079_v46 = vld [vmem:[#allocation3 + $0x69] sm:$0xff] }
 0x3ba   : > { %2872 = vmatmul.f32.gmra.mxu3 %v2765_v22  ;;  %v2673_v22 = vadd.f32 %v2672_v3, %v5891_v51  ;;  %v2769_v51 = vld [vmem:[#allocation3 + $0x12a] sm:$0xff] }
 0x3bb   : > { %3576 = vmatpush.msra.mxu3 %v3563_v53  ;;  %v3366_v53 = vld [vmem:[#allocation10 + $0x2b8] sm:$0xff] }
 0x3bc   : > { %v2675_v25 = vpop.f32.mrf.mxu2 }
 0x3bd   : > { %v2825_v62 = vpop.f32.mrf.mxu3  ;;  %v6066_v48 = vpop.f32.mrf.mxu1  ;;  %v2676_v3 = vadd.f32 %v2675_v25, %v5913_v5  ;;  %3577 = vmatpush.msra.mxu3 %v3562_v39  ;;  %v2770_v25 = vld [vmem:[#allocation3 + $0x13a] sm:$0xff]  ;;  %v3558_v39 = vld [vmem:[#allocation10 + $0x320] sm:$0xff] }
 0x3be   : > { %v2911_v0 = vadd.f32 %v2825_v62, %v2664_v63  ;;  %v6075_v7 = vpop.f32.mrf.mxu0 }
 0x3c0   : > { %3215 = vmatmul.f32.gmra.mxu1 %v6068_v2  ;;  %v6072_v43 = vadd.f32 %v6017_v11, %v2911_v0 }
 0x3c1   : > { %2725 = vmatmul.f32.gmra.mxu2 %v2962_v60  ;;  %3081 = vmatmul.f32.gmra.mxu0 %v2964_v21 }
 0x3c2   : > { %2875 = vmatmul.f32.gmra.mxu3 %v2766_v28 }
 0x3c4   : > { %v6081_v47 = vpop.f32.mrf.mxu2 }
 0x3c5   : > { %v2828_v38 = vpop.f32.mrf.mxu3  ;;  %v6077_v4 = vpop.f32.mrf.mxu1 }
 0x3c6   : > { %v2912_v31 = vadd.f32 %v2828_v38, %v2667_v44  ;;  %v6088_v17 = vpop.f32.mrf.mxu0  ;;  %v2967_v38 = vld [vmem:[#allocation3 + $0x170] sm:$0xff] }
 0x3c8   : > { %3218 = vmatmul.f32.gmra.mxu1 %v6079_v46  ;;  %v6085_v11 = vadd.f32 %v6029_v56, %v2912_v31 }
 0x3c9   : > { %2728 = vmatmul.f32.gmra.mxu2 %v2963_v15  ;;  %3084 = vmatmul.f32.gmra.mxu0 %v2965_v45 }
 0x3ca   : > { %2878 = vmatmul.f32.gmra.mxu3 %v2767_v42 }
 0x3cc   : > { %v6094_v56 = vpop.f32.mrf.mxu2 }
 0x3cd   : > { %v2831_v23 = vpop.f32.mrf.mxu3  ;;  %v6090_v24 = vpop.f32.mrf.mxu1 }
 0x3ce   : > { %v2913_v60 = vadd.f32 %v2831_v23, %v2670_v13  ;;  %v6101_v63 = vpop.f32.mrf.mxu0  ;;  %v3367_v13 = vld [vmem:[#allocation10 + $0x2c0] sm:$0xff] }
 0x3cf   : > { %v3756_v23 = vld [vmem:[#allocation10 + $0x3c0] sm:$0xff]  ;;  %3382 = vmatpush.msra.mxu2 %v3367_v13  ;;  %v3753_v13 = vld [vmem:[#allocation10 + $0x3a8] sm:$0xff] }
 0x3d0   : > { %3221 = vmatmul.f32.gmra.mxu1 %v6092_v40  ;;  %v6098_v61 = vadd.f32 %v6041_v12, %v2913_v60  ;;  %3771 = vmatpush.msra.mxu0 %v3756_v23 }
 0x3d1   : > { %2731 = vmatmul.f32.gmra.mxu2 %v2964_v21  ;;  %3087 = vmatmul.f32.gmra.mxu0 %v2966_v30  ;;  %v3951_v21 = vld [vmem:[#allocation10 + $0x448] sm:$0xff] }
 0x3d2   : > { %2881 = vmatmul.f32.gmra.mxu3 %v2768_v35  ;;  %3964 = vmatpush.msra.mxu1 %v3951_v21  ;;  %v3561_v35 = vld [vmem:[#allocation10 + $0x338] sm:$0xff]  ;;  %v3560_v21 = vld [vmem:[#allocation10 + $0x330] sm:$0xff] }
 0x3d3   : > { %3383 = vmatpush.msra.mxu2 %v3366_v53  ;;  %3578 = vmatpush.msra.mxu3 %v3561_v35  ;;  %v2682_v53 = vadd.f32 %v6094_v56, %v5937_v33  ;;  %v3361_v33 = vld [vmem:[#allocation10 + $0x290] sm:$0xff] }
 0x3d4   : > { %v6107_v28 = vpop.f32.mrf.mxu2  ;;  %v3556_v56 = vld [vmem:[#allocation10 + $0x310] sm:$0xff] }
 0x3d5   : > { %v2834_v15 = vpop.f32.mrf.mxu3  ;;  %v6103_v62 = vpop.f32.mrf.mxu1  ;;  %3579 = vmatpush.msra.mxu3 %v3560_v21 }
 0x3d6   : > { %v2914_v0 = vadd.f32 %v2834_v15, %v2673_v22  ;;  %v6114_v44 = vpop.f32.mrf.mxu0  ;;  %v3755_v22 = vld [vmem:[#allocation10 + $0x3b8] sm:$0xff]  ;;  %v2968_v15 = vld [vmem:[#allocation3 + $0x180] sm:$0xff] }
 0x3d7   : > { %3772 = vmatpush.msra.mxu0 %v3755_v22  ;;  %v3950_v22 = vld [vmem:[#allocation10 + $0x440] sm:$0xff] }
 0x3d8   : > { %3224 = vmatmul.f32.gmra.mxu1 %v6105_v50  ;;  %v6111_v12 = vadd.f32 %v6053_v27, %v2914_v0  ;;  %v6118_v27 = vld [vmem:[#allocation3 + $0x91] sm:$0xff] }
 0x3d9   : > { %2734 = vmatmul.f32.gmra.mxu2 %v2965_v45  ;;  %3090 = vmatmul.f32.gmra.mxu0 %v2967_v38  ;;  %v2679_v45 = vadd.f32 %v6081_v47, %v5925_v9  ;;  %v3754_v9 = vld [vmem:[#allocation10 + $0x3b0] sm:$0xff] }
 0x3da   : > { %6715 = vst [vmem:[#allocation18_spill] sm:$0xff] %v6111_v12  ;;  %2884 = vmatmul.f32.gmra.mxu3 %v2769_v51  ;;  %3773 = vmatpush.msra.mxu0 %v3754_v9  ;;  %v6318_v12 = vld [vmem:[#allocation3 + $0x139] sm:$0xff] }
 0x3db   : > { %3965 = vmatpush.msra.mxu1 %v3950_v22  ;;  %v2685_v22 = vadd.f32 %v6107_v28, %v5949_v10 }
 0x3dc   : > { %v6120_v60 = vpop.f32.mrf.mxu2  ;;  %3774 = vmatpush.msra.mxu0 %v3753_v13 }
 0x3dd   : > { %v2837_v31 = vpop.f32.mrf.mxu3  ;;  %v6116_v20 = vpop.f32.mrf.mxu1 }
 0x3de   : > { %v2915_v42 = vadd.f32 %v2837_v31, %v2676_v3  ;;  %v6128_v26 = vpop.f32.mrf.mxu0  ;;  %v3365_v3 = vld [vmem:[#allocation10 + $0x2b0] sm:$0xff]  ;;  %v3364_v31 = vld [vmem:[#allocation10 + $0x2a8] sm:$0xff] }
 0x3df   : > { %3384 = vmatpush.msra.mxu2 %v3365_v3 }
 0x3e0   : > { %3227 = vmatmul.f32.gmra.mxu1 %v6118_v27  ;;  %v6124_v5 = vadd.f32 %v6064_v59, %v2915_v42  ;;  %v6132_v59 = vld [vmem:[#allocation3 + $0x99] sm:$0xff] }
 0x3e1   : > { %2737 = vmatmul.f32.gmra.mxu2 %v2966_v30  ;;  %3093 = vmatmul.f32.gmra.mxu0 %v2968_v15  ;;  %v3559_v42 = vld [vmem:[#allocation10 + $0x328] sm:$0xff]  ;;  %v3363_v30 = vld [vmem:[#allocation10 + $0x2a0] sm:$0xff]  ;;  %v3362_v15 = vld [vmem:[#allocation10 + $0x298] sm:$0xff] }
 0x3e2   : > { %6716 = vst [vmem:[#allocation17_spill] sm:$0xff] %v6124_v5  ;;  %2887 = vmatmul.f32.gmra.mxu3 %v2770_v25  ;;  %v2771_v25 = vld [vmem:[#allocation3 + $0x142] sm:$0xff]  ;;  %3385 = vmatpush.msra.mxu2 %v3364_v31 }
 0x3e3   : > { %3580 = vmatpush.msra.mxu3 %v3559_v42  ;;  %v3750_v31 = vld [vmem:[#allocation10 + $0x390] sm:$0xff] }
 0x3e4   : > { %v6134_v47 = vpop.f32.mrf.mxu2  ;;  %3386 = vmatpush.msra.mxu2 %v3363_v30  ;;  %v6146_v42 = vld [vmem:[#allocation3 + $0xa9] sm:$0xff]  ;;  %v3360_v30 = vld [vmem:[#allocation10 + $0x288] sm:$0xff] }
 0x3e5   : > { %v2840_v0 = vpop.f32.mrf.mxu3  ;;  %v6130_v8 = vpop.f32.mrf.mxu1  ;;  %3581 = vmatpush.msra.mxu3 %v3558_v39  ;;  %v3749_v39 = vld [vmem:[#allocation10 + $0x388] sm:$0xff] }
 0x3e6   : > { %v2916_v51 = vadd.f32 %v2840_v0, %v2679_v45  ;;  %v3752_v45 = vld [vmem:[#allocation10 + $0x3a0] sm:$0xff]  ;;  %v6142_v35 = vpop.f32.mrf.mxu0  ;;  %v3557_v0 = vld [vmem:[#allocation10 + $0x318] sm:$0xff]  ;;  %3387 = vmatpush.msra.mxu2 %v3362_v15 }
 0x3e7   : > { %3775 = vmatpush.msra.mxu0 %v3752_v45  ;;  %3582 = vmatpush.msra.mxu3 %v3557_v0  ;;  %v2772_v45 = vld [vmem:[#allocation3 + $0x152] sm:$0xff] }
 0x3e8   : > { %3230 = vmatmul.f32.gmra.mxu1 %v6132_v59  ;;  %v6138_v23 = vadd.f32 %v6075_v7, %v2916_v51  ;;  %v2969_v7 = vld [vmem:[#allocation3 + $0x188] sm:$0xff]  ;;  %3388 = vmatpush.msra.mxu2 %v3361_v33  ;;  %v3554_v0 = vld [vmem:[#allocation10 + $0x300] sm:$0xff] }
 0x3e9   : > { %2740 = vmatmul.f32.gmra.mxu2 %v2967_v38  ;;  %v3751_v51 = vld [vmem:[#allocation10 + $0x398] sm:$0xff]  ;;  %3096 = vmatmul.f32.gmra.mxu0 %v2969_v7  ;;  %v3555_v38 = vld [vmem:[#allocation10 + $0x308] sm:$0xff]  ;;  %v3748_v7 = vld [vmem:[#allocation10 + $0x380] sm:$0xff] }
 0x3ea   : > { %6717 = vst [vmem:[#allocation19_spill] sm:$0xff] %v6138_v23  ;;  %2890 = vmatmul.f32.gmra.mxu3 %v2771_v25  ;;  %3776 = vmatpush.msra.mxu0 %v3751_v51  ;;  %v6161_v33 = vld [vmem:[#allocation3 + $0xb1] sm:$0xff]  ;;  %v6292_v23 = vld [vmem:[#allocation3 + $0x121] sm:$0xff] }
 0x3eb   : > { %3583 = vmatpush.msra.mxu3 %v3556_v56  ;;  %3389 = vmatpush.msra.mxu2 %v3360_v30  ;;  %v2773_v56 = vld [vmem:[#allocation3 + $0x15a] sm:$0xff] }
 0x3ec   : > { %v6148_v13 = vpop.f32.mrf.mxu2  ;;  %3777 = vmatpush.msra.mxu0 %v3750_v31  ;;  %v2688_v31 = vadd.f32 %v6120_v60, %v5961_v52  ;;  %v2774_v52 = vld [vmem:[#allocation3 + $0x16a] sm:$0xff]  ;;  %v2691_v60 = vadd.f32 %v6134_v47, %v5973_v37  ;;  %v2775_v37 = vld [vmem:[#allocation3 + $0x172] sm:$0xff] }
 0x3ed   : > { %v2843_v3 = vpop.f32.mrf.mxu3  ;;  %v6144_v21 = vpop.f32.mrf.mxu1  ;;  %3584 = vmatpush.msra.mxu3 %v3555_v38  ;;  %v3949_v38 = vld [vmem:[#allocation10 + $0x438] sm:$0xff]  ;;  %v2694_v47 = vadd.f32 %v6148_v13, %v5985_v18 }
 0x3ee   : > { %v2917_v9 = vadd.f32 %v2843_v3, %v2682_v53  ;;  %v3359_v53 = vld [vmem:[#allocation10 + $0x280] sm:$0xff]  ;;  %v6156_v15 = vpop.f32.mrf.mxu0  ;;  %3778 = vmatpush.msra.mxu0 %v3749_v39  ;;  %3966 = vmatpush.msra.mxu1 %v3949_v38 }
 0x3ef   : > { %3390 = vmatpush.msra.mxu2 %v3359_v53  ;;  %3585 = vmatpush.msra.mxu3 %v3554_v0  ;;  %v3521_v13 = vld [vmem:[#allocation3 + $0x30] sm:$0xff] }
 0x3f0   : > { %3233 = vmatmul.f32.gmra.mxu1 %v6146_v42  ;;  %v6152_v25 = vadd.f32 %v6088_v17, %v2917_v9  ;;  %3779 = vmatpush.msra.mxu0 %v3748_v7  ;;  %v3326_v17 = vld [vmem:[#allocation3 + $0x1a] sm:$0xff] }
 0x3f1   : > { %3391 = vmatmul.f32.vlgmr.msra.gmra.mxu2 %v3326_v17  ;;  %3780 = vmatmul.f32.vlgmr.msra.gmra.mxu0 %v6021_v54  ;;  %v3327_v54 = vld [vmem:[#allocation3 + $0x22] sm:$0xff] }
 0x3f2   : > { %6718 = vst [vmem:[#allocation20_spill] sm:$0xff] %v6152_v25  ;;  %2893 = vmatmul.f32.gmra.mxu3 %v2772_v45 }
 0x3f4   : > { %v2696_v10 = vpop.f32.mrf.mxu2 }
 0x3f5   : > { %v2846_v51 = vpop.f32.mrf.mxu3  ;;  %v6158_v3 = vpop.f32.mrf.mxu1 }
 0x3f6   : > { %v2918_v9 = vadd.f32 %v2846_v51, %v2685_v22  ;;  %v6169_v30 = vpop.f32.mrf.mxu0  ;;  %v6174_v22 = vld [vmem:[#allocation3 + $0xc1] sm:$0xff] }
 0x3f8   : > { %3236 = vmatmul.f32.gmra.mxu1 %v6161_v33  ;;  %v6165_v28 = vadd.f32 %v6101_v63, %v2918_v9  ;;  %v6186_v9 = vld [vmem:[#allocation3 + $0x32] sm:$0xff] }
 0x3f9   : > { %3394 = vmatmul.f32.gmra.mxu2 %v3327_v54  ;;  %3783 = vmatmul.f32.gmra.mxu0 %v6033_v58 }
 0x3fa   : > { %6719 = vst [vmem:[#allocation21_spill] sm:$0xff] %v6165_v28  ;;  %2896 = vmatmul.f32.gmra.mxu3 %v2773_v56  ;;  %v6190_v56 = vld [vmem:[#allocation3 + $0xc9] sm:$0xff] }
 0x3fc   : > { %v2699_v63 = vpop.f32.mrf.mxu2 }
 0x3fd   : > { %v2849_v39 = vpop.f32.mrf.mxu3  ;;  %v6171_v45 = vpop.f32.mrf.mxu1 }
 0x3fe   : > { %v2919_v53 = vadd.f32 %v2849_v39, %v2688_v31  ;;  %v6182_v7 = vpop.f32.mrf.mxu0  ;;  %v3948_v39 = vld [vmem:[#allocation10 + $0x430] sm:$0xff] }
 0x3ff   : > { %3967 = vmatpush.msra.mxu1 %v3948_v39  ;;  %v6217_v39 = vld [vmem:[#allocation3 + $0x4a] sm:$0xff] }
 0x400   : > { %3239 = vmatmul.f32.gmra.mxu1 %v6174_v22  ;;  %v6178_v0 = vadd.f32 %v6114_v44, %v2919_v53 }
 0x401   : > { %3397 = vmatmul.f32.gmra.mxu2 %v6186_v9  ;;  %3786 = vmatmul.f32.gmra.mxu0 %v6045_v41  ;;  %v6202_v41 = vld [vmem:[#allocation3 + $0x3a] sm:$0xff] }
 0x402   : > { %6720 = vst [vmem:[#allocation22_spill] sm:$0xff] %v6178_v0  ;;  %2899 = vmatmul.f32.gmra.mxu3 %v2774_v52  ;;  %v6251_v0 = vld [vmem:[#allocation3 + $0xf9] sm:$0xff] }
 0x404   : > { %v2702_v44 = vpop.f32.mrf.mxu2 }
 0x405   : > { %v2852_v51 = vpop.f32.mrf.mxu3  ;;  %v6184_v17 = vpop.f32.mrf.mxu1 }
 0x406   : > { %v2920_v58 = vadd.f32 %v2852_v51, %v2691_v60  ;;  %v6198_v38 = vpop.f32.mrf.mxu0  ;;  %v2697_v51 = vadd.f32 %v2696_v10, %v5997_v55  ;;  %v3522_v55 = vld [vmem:[#allocation3 + $0x38] sm:$0xff]  ;;  %v2700_v10 = vadd.f32 %v2699_v63, %v6008_v32  ;;  %v3523_v63 = vld [vmem:[#allocation3 + $0x48] sm:$0xff] }
 0x408   : > { %3242 = vmatmul.f32.gmra.mxu1 %v6190_v56  ;;  %v6194_v31 = vadd.f32 %v6128_v26, %v2920_v58  ;;  %v6206_v26 = vld [vmem:[#allocation3 + $0xd9] sm:$0xff] }
 0x409   : > { %3400 = vmatmul.f32.gmra.mxu2 %v6202_v41  ;;  %3789 = vmatmul.f32.gmra.mxu0 %v6057_v19 }
 0x40a   : > { %6721 = vst [vmem:[#allocation23_spill] sm:$0xff] %v6194_v31  ;;  %2902 = vmatmul.f32.gmra.mxu3 %v2775_v37 }
 0x40c   : > { %v2705_v60 = vpop.f32.mrf.mxu2 }
 0x40d   : > { %v2855_v54 = vpop.f32.mrf.mxu3  ;;  %v6200_v53 = vpop.f32.mrf.mxu1 }
 0x40e   : > { %v2921_v52 = vadd.f32 %v2855_v54, %v2694_v47  ;;  %v6213_v58 = vpop.f32.mrf.mxu0  ;;  %v6221_v54 = vld [vmem:[#allocation3 + $0xe1] sm:$0xff] }
 0x410   : > { %3245 = vmatmul.f32.gmra.mxu1 %v6206_v26  ;;  %v6210_v18 = vadd.f32 %v6142_v35, %v2921_v52 }
 0x411   : > { %3403 = vmatmul.f32.gmra.mxu2 %v6217_v39  ;;  %3792 = vmatmul.f32.gmra.mxu0 %v6068_v2  ;;  %v6232_v2 = vld [vmem:[#allocation3 + $0x52] sm:$0xff] }
 0x412   : > { %6722 = vst [vmem:[#allocation24_spill] sm:$0xff] %v6210_v18  ;;  %3586 = vmatmul.f32.vlgmr.msra.gmra.mxu3 %v3521_v13  ;;  %v3947_v18 = vld [vmem:[#allocation10 + $0x428] sm:$0xff] }
 0x413   : > { %3968 = vmatpush.msra.mxu1 %v3947_v18  ;;  %v2703_v18 = vadd.f32 %v2702_v44, %v6019_v1  ;;  %v3524_v1 = vld [vmem:[#allocation3 + $0x50] sm:$0xff]  ;;  %v2706_v44 = vadd.f32 %v2705_v60, %v6031_v16  ;;  %v3525_v60 = vld [vmem:[#allocation3 + $0x60] sm:$0xff] }
 0x414   : > { %v2708_v35 = vpop.f32.mrf.mxu2 }
 0x415   : > { %v2858_v37 = vpop.f32.mrf.mxu3  ;;  %v6215_v47 = vpop.f32.mrf.mxu1 }
 0x416   : > { %v2922_v19 = vadd.f32 %v2858_v37, %v2697_v51  ;;  %v6228_v13 = vpop.f32.mrf.mxu0 }
 0x418   : > { %3248 = vmatmul.f32.gmra.mxu1 %v6221_v54  ;;  %v6225_v52 = vadd.f32 %v6156_v15, %v2922_v19  ;;  %v6236_v15 = vld [vmem:[#allocation3 + $0xf1] sm:$0xff] }
 0x419   : > { %3406 = vmatmul.f32.gmra.mxu2 %v6232_v2  ;;  %3795 = vmatmul.f32.gmra.mxu0 %v6079_v46 }
 0x41a   : > { %6723 = vst [vmem:[#allocation25_spill] sm:$0xff] %v6225_v52  ;;  %3589 = vmatmul.f32.gmra.mxu3 %v3522_v55 }
 0x41c   : > { %v2711_v19 = vpop.f32.mrf.mxu2 }
 0x41d   : > { %v2861_v51 = vpop.f32.mrf.mxu3  ;;  %v6230_v37 = vpop.f32.mrf.mxu1 }
 0x41e   : > { %v2923_v31 = vadd.f32 %v2861_v51, %v2700_v10  ;;  %v6243_v55 = vpop.f32.mrf.mxu0  ;;  %v6247_v51 = vld [vmem:[#allocation3 + $0x62] sm:$0xff] }
 0x420   : > { %3251 = vmatmul.f32.gmra.mxu1 %v6236_v15  ;;  %v6240_v32 = vadd.f32 %v6169_v30, %v2923_v31 }
 0x421   : > { %3409 = vmatmul.f32.gmra.mxu2 %v6247_v51  ;;  %3798 = vmatmul.f32.gmra.mxu0 %v6092_v40 }
 0x422   : > { %6724 = vst [vmem:[#allocation26_spill] sm:$0xff] %v6240_v32  ;;  %3592 = vmatmul.f32.gmra.mxu3 %v3523_v63  ;;  %v3946_v63 = vld [vmem:[#allocation10 + $0x420] sm:$0xff] }
 0x423   : > { %3969 = vmatpush.msra.mxu1 %v3946_v63 }
 0x424   : > { %v2714_v30 = vpop.f32.mrf.mxu2 }
 0x425   : > { %v2864_v52 = vpop.f32.mrf.mxu3  ;;  %v6245_v10 = vpop.f32.mrf.mxu1 }
 0x426   : > { %v2924_v46 = vadd.f32 %v2864_v52, %v2703_v18  ;;  %v6260_v18 = vld [vmem:[#allocation3 + $0x6a] sm:$0xff]  ;;  %v6262_v28 = vpop.f32.mrf.mxu0 }
 0x428   : > { %3254 = vmatmul.f32.gmra.mxu1 %v6251_v0  ;;  %v6255_v31 = vadd.f32 %v6182_v7, %v2924_v46  ;;  %v6266_v7 = vld [vmem:[#allocation3 + $0x109] sm:$0xff] }
 0x429   : > { %3412 = vmatmul.f32.gmra.mxu2 %v6260_v18  ;;  %3801 = vmatmul.f32.gmra.mxu0 %v6105_v50  ;;  %v6279_v50 = vld [vmem:[#allocation3 + $0x111] sm:$0xff] }
 0x42a   : > { %6725 = vst [vmem:[#allocation27_spill] sm:$0xff] %v6255_v31  ;;  %3595 = vmatmul.f32.gmra.mxu3 %v3524_v1  ;;  %v2709_v1 = vadd.f32 %v2708_v35, %v6043_v57  ;;  %v3526_v57 = vld [vmem:[#allocation3 + $0x68] sm:$0xff]  ;;  %v2712_v35 = vadd.f32 %v2711_v19, %v6055_v34  ;;  %v3527_v34 = vld [vmem:[#allocation3 + $0x78] sm:$0xff]  ;;  %v2715_v19 = vadd.f32 %v2714_v30, %v6066_v48  ;;  %v3528_v48 = vld [vmem:[#allocation3 + $0x80] sm:$0xff] }
 0x42c   : > { %v2717_v46 = vpop.f32.mrf.mxu2 }
 0x42d   : > { %v2867_v32 = vpop.f32.mrf.mxu3  ;;  %v6258_v52 = vpop.f32.mrf.mxu1  ;;  %v2718_v30 = vadd.f32 %v2717_v46, %v6077_v4  ;;  %v3529_v46 = vld [vmem:[#allocation3 + $0x90] sm:$0xff] }
 0x42e   : > { %v2925_v40 = vadd.f32 %v2867_v32, %v2706_v44  ;;  %v6275_v44 = vld [vmem:[#allocation3 + $0x7a] sm:$0xff] }
 0x430   : > { %3257 = vmatmul.f32.gmra.mxu1 %v6266_v7  ;;  %v6270_v16 = vadd.f32 %v6198_v38, %v2925_v40  ;;  %v3076_v38 = vpop.f32.mrf.mxu0 }
 0x431   : > { %3415 = vmatmul.f32.gmra.mxu2 %v6275_v44  ;;  %3804 = vmatmul.f32.gmra.mxu0 %v6118_v27 }
 0x432   : > { %6726 = vst [vmem:[#allocation28_spill] sm:$0xff] %v6270_v16  ;;  %3598 = vmatmul.f32.gmra.mxu3 %v3525_v60  ;;  %v3945_v60 = vld [vmem:[#allocation10 + $0x418] sm:$0xff]  ;;  %v6288_v16 = vld [vmem:[#allocation3 + $0x82] sm:$0xff] }
 0x433   : > { %3970 = vmatpush.msra.mxu1 %v3945_v60 }
 0x434   : > { %v2720_v25 = vpop.f32.mrf.mxu2 }
 0x435   : > { %v2870_v63 = vpop.f32.mrf.mxu3  ;;  %v6273_v32 = vpop.f32.mrf.mxu1 }
 0x436   : > { %v2926_v31 = vadd.f32 %v2870_v63, %v2709_v1 }
 0x438   : > { %3260 = vmatmul.f32.gmra.mxu1 %v6279_v50  ;;  %v6283_v40 = vadd.f32 %v6213_v58, %v2926_v31 }
 0x439   : > { %3418 = vmatmul.f32.gmra.mxu2 %v6288_v16  ;;  %3807 = vmatmul.f32.gmra.mxu0 %v6132_v59  ;;  %v6305_v59 = vld [vmem:[#allocation3 + $0x129] sm:$0xff] }
 0x43a   : > { %6727 = vst [vmem:[#allocation29_spill] sm:$0xff] %v6283_v40  ;;  %3601 = vmatmul.f32.gmra.mxu3 %v3526_v57  ;;  %v3079_v57 = vpop.f32.mrf.mxu0 }
 0x43c   : > { %v2723_v58 = vpop.f32.mrf.mxu2 }
 0x43d   : > { %v2873_v1 = vpop.f32.mrf.mxu3  ;;  %v6286_v63 = vpop.f32.mrf.mxu1 }
 0x43e   : > { %v2927_v27 = vadd.f32 %v2873_v1, %v2712_v35  ;;  %v6301_v35 = vld [vmem:[#allocation3 + $0x92] sm:$0xff] }
 0x440   : > { %3263 = vmatmul.f32.gmra.mxu1 %v6292_v23  ;;  %v6296_v31 = vadd.f32 %v6228_v13, %v2927_v27  ;;  %v3944_v27 = vld [vmem:[#allocation10 + $0x410] sm:$0xff] }
 0x441   : > { %3421 = vmatmul.f32.gmra.mxu2 %v6301_v35  ;;  %3810 = vmatmul.f32.gmra.mxu0 %v6146_v42 }
 0x442   : > { %6728 = vst [vmem:[#allocation30_spill] sm:$0xff] %v6296_v31  ;;  %3604 = vmatmul.f32.gmra.mxu3 %v3527_v34  ;;  %3971 = vmatpush.msra.mxu1 %v3944_v27  ;;  %v3082_v34 = vpop.f32.mrf.mxu0  ;;  %v6314_v31 = vld [vmem:[#allocation3 + $0x9a] sm:$0xff] }
 0x444   : > { %v2726_v5 = vpop.f32.mrf.mxu2 }
 0x445   : > { %v2876_v60 = vpop.f32.mrf.mxu3  ;;  %v6299_v40 = vpop.f32.mrf.mxu1 }
 0x446   : > { %v2928_v1 = vadd.f32 %v2876_v60, %v2715_v19 }
 0x448   : > { %3266 = vmatmul.f32.gmra.mxu1 %v6305_v59  ;;  %v6309_v13 = vadd.f32 %v6243_v55, %v2928_v1  ;;  %v2721_v1 = vadd.f32 %v2720_v25, %v6090_v24  ;;  %v2724_v24 = vadd.f32 %v2723_v58, %v6103_v62  ;;  %v3943_v25 = vld [vmem:[#allocation10 + $0x408] sm:$0xff]  ;;  %v3531_v62 = vld [vmem:[#allocation3 + $0xa8] sm:$0xff]  ;;  %v2727_v58 = vadd.f32 %v2726_v5, %v6116_v20 }
 0x449   : > { %3424 = vmatmul.f32.gmra.mxu2 %v6314_v31  ;;  %3813 = vmatmul.f32.gmra.mxu0 %v6161_v33  ;;  %v6331_v33 = vld [vmem:[#allocation3 + $0x141] sm:$0xff] }
 0x44a   : > { %6729 = vst [vmem:[#allocation31_spill] sm:$0xff] %v6309_v13  ;;  %3607 = vmatmul.f32.gmra.mxu3 %v3528_v48  ;;  %v3085_v13 = vpop.f32.mrf.mxu0  ;;  %3972 = vmatpush.msra.mxu1 %v3943_v25 }
 0x44c   : > { %v2729_v55 = vpop.f32.mrf.mxu2 }
 0x44d   : > { %v2879_v19 = vpop.f32.mrf.mxu3  ;;  %v6312_v60 = vpop.f32.mrf.mxu1  ;;  %v2730_v20 = vadd.f32 %v2729_v55, %v6130_v8  ;;  %v3533_v8 = vld [vmem:[#allocation3 + $0xc0] sm:$0xff] }
 0x44e   : > { %6730 = vst [vmem:[#allocation32_spill] sm:$0xff] %v6312_v60  ;;  %v2929_v42 = vadd.f32 %v2879_v19, %v2718_v30  ;;  %v6327_v30 = vld [vmem:[#allocation3 + $0xaa] sm:$0xff] }
 0x450   : > { %3269 = vmatmul.f32.gmra.mxu1 %v6318_v12  ;;  %v6322_v4 = vadd.f32 %v6262_v28, %v2929_v42  ;;  %v3530_v42 = vld [vmem:[#allocation3 + $0x98] sm:$0xff] }
 0x451   : > { %3427 = vmatmul.f32.gmra.mxu2 %v6327_v30  ;;  %3816 = vmatmul.f32.gmra.mxu0 %v6174_v22  ;;  %v6343_v22 = vld [vmem:[#allocation3 + $0x151] sm:$0xff] }
 0x452   : > { %6731 = vst [vmem:[#allocation33_spill] sm:$0xff] %v6322_v4  ;;  %3610 = vmatmul.f32.gmra.mxu3 %v3529_v46 }
 0x454   : > { %v2732_v60 = vpop.f32.mrf.mxu2 }
 0x455   : > { %v2882_v48 = vpop.f32.mrf.mxu3  ;;  %v6325_v27 = vpop.f32.mrf.mxu1  ;;  %v2733_v55 = vadd.f32 %v2732_v60, %v6144_v21  ;;  %v3534_v21 = vld [vmem:[#allocation3 + $0xc8] sm:$0xff] }
 0x456   : > { %v2930_v19 = vadd.f32 %v2882_v48, %v2721_v1  ;;  %v6339_v48 = vld [vmem:[#allocation3 + $0xb2] sm:$0xff] }
 0x458   : > { %3272 = vmatmul.f32.gmra.mxu1 %v6331_v33  ;;  %v6334_v28 = vadd.f32 %v3076_v38, %v2930_v19  ;;  %v3088_v19 = vpop.f32.mrf.mxu0 }
 0x459   : > { %3430 = vmatmul.f32.gmra.mxu2 %v6339_v48  ;;  %3819 = vmatmul.f32.gmra.mxu0 %v6190_v56  ;;  %v6355_v56 = vld [vmem:[#allocation3 + $0x159] sm:$0xff] }
 0x45a   : > { %6732 = vst [vmem:[#allocation34_spill] sm:$0xff] %v6334_v28  ;;  %3613 = vmatmul.f32.gmra.mxu3 %v3530_v42 }
 0x45c   : > { %v2735_v38 = vpop.f32.mrf.mxu2 }
 0x45d   : > { %v2885_v46 = vpop.f32.mrf.mxu3  ;;  %v6337_v1 = vpop.f32.mrf.mxu1 }
 0x45e   : > { %6733 = vst [vmem:[#allocation35_spill] sm:$0xff] %v6337_v1  ;;  %v2931_v4 = vadd.f32 %v2885_v46, %v2724_v24  ;;  %v6351_v24 = vld [vmem:[#allocation3 + $0xc2] sm:$0xff] }
 0x460   : > { %3275 = vmatmul.f32.gmra.mxu1 %v6343_v22  ;;  %v6346_v42 = vadd.f32 %v3079_v57, %v2931_v4  ;;  %v3532_v4 = vld [vmem:[#allocation3 + $0xb0] sm:$0xff]  ;;  %v3091_v5 = vpop.f32.mrf.mxu0 }
 0x461   : > { %3433 = vmatmul.f32.gmra.mxu2 %v6351_v24  ;;  %3822 = vmatmul.f32.gmra.mxu0 %v6206_v26 }
 0x462   : > { %6734 = vst [vmem:[#allocation36_spill] sm:$0xff] %v6346_v42  ;;  %3616 = vmatmul.f32.gmra.mxu3 %v3531_v62  ;;  %v3942_v62 = vld [vmem:[#allocation10 + $0x400] sm:$0xff] }
 0x463   : > { %3973 = vmatpush.msra.mxu1 %v3942_v62 }
 0x464   : > { %v2738_v1 = vpop.f32.mrf.mxu2 }
 0x465   : > { %v2888_v25 = vpop.f32.mrf.mxu3  ;;  %v6349_v28 = vpop.f32.mrf.mxu1 }
 0x466   : > { %6735 = vst [vmem:[#allocation37_spill] sm:$0xff] %v6349_v28  ;;  %v2932_v46 = vadd.f32 %v2888_v25, %v2727_v58  ;;  %v6363_v25 = vld [vmem:[#allocation3 + $0xca] sm:$0xff] }
 0x467   : > { %v6367_v28 = vld [vmem:[#allocation3 + $0x169] sm:$0xff] }
 0x468   : > { %3278 = vmatmul.f32.gmra.mxu1 %v6355_v56  ;;  %v6358_v57 = vadd.f32 %v3082_v34, %v2932_v46 }
 0x469   : > { %3436 = vmatmul.f32.gmra.mxu2 %v6363_v25  ;;  %3825 = vmatmul.f32.gmra.mxu0 %v6221_v54  ;;  %v6379_v54 = vld [vmem:[#allocation3 + $0x171] sm:$0xff] }
 0x46a   : > { %6736 = vst [vmem:[#allocation38_spill] sm:$0xff] %v6358_v57  ;;  %3619 = vmatmul.f32.gmra.mxu3 %v3532_v4  ;;  %v3094_v4 = vpop.f32.mrf.mxu0 }
 0x46c   : > { %v2741_v34 = vpop.f32.mrf.mxu2 }
 0x46d   : > { %v2891_v42 = vpop.f32.mrf.mxu3  ;;  %v6361_v58 = vpop.f32.mrf.mxu1 }
 0x46e   : > { %6737 = vst [vmem:[#allocation39_spill] sm:$0xff] %v6361_v58  ;;  %v2933_v26 = vadd.f32 %v2891_v42, %v2730_v20  ;;  %v6375_v42 = vld [vmem:[#allocation3 + $0xda] sm:$0xff] }
 0x470   : > { %3281 = vmatmul.f32.gmra.mxu1 %v6367_v28  ;;  %v6370_v46 = vadd.f32 %v3085_v13, %v2933_v26  ;;  %v3294_v13 = vadd.f32 %v6200_v53, %v6013_v29  ;;  %v6393_v29 = vld [vmem:[#allocation3 + $0x181] sm:$0xff]  ;;  %v3295_v53 = vadd.f32 %v6215_v47, %v6025_v14  ;;  %v6407_v14 = vld [vmem:[#allocation3 + $0x189] sm:$0xff]  ;;  %v3296_v47 = vadd.f32 %v6230_v37, %v6037_v36 }
 0x471   : > { %3439 = vmatmul.f32.gmra.mxu2 %v6375_v42  ;;  %3828 = vmatmul.f32.gmra.mxu0 %v6236_v15  ;;  %v3297_v36 = vadd.f32 %v6245_v10, %v6049_v6  ;;  %v3298_v6 = vadd.f32 %v6258_v52, %v6061_v49  ;;  %v3538_v10 = vld [vmem:[#allocation3 + $0xf8] sm:$0xff]  ;;  %v3299_v49 = vadd.f32 %v6273_v32, %v6072_v43  ;;  %v3540_v32 = vld [vmem:[#allocation3 + $0x110] sm:$0xff] }
 0x472   : > { %6738 = vst [vmem:[#allocation40_spill] sm:$0xff] %v6370_v46  ;;  %3622 = vmatmul.f32.gmra.mxu3 %v3533_v8  ;;  %v2736_v8 = vadd.f32 %v2735_v38, %v6158_v3  ;;  %v3097_v58 = vpop.f32.mrf.mxu0  ;;  %v3535_v38 = vld [vmem:[#allocation3 + $0xd8] sm:$0xff]  ;;  %v3300_v43 = vadd.f32 %v6286_v63, %v6085_v11  ;;  %v3301_v11 = vadd.f32 %v6299_v40, %v6098_v61  ;;  %v3541_v63 = vld [vmem:[#allocation3 + $0x120] sm:$0xff] }
 0x474   : > { %v3392_v60 = vpop.f32.mrf.mxu2 }
 0x475   : > { %v2894_v62 = vpop.f32.mrf.mxu3  ;;  %v6373_v57 = vpop.f32.mrf.mxu1  ;;  %v3488_v46 = vadd.f32 %v3392_v60, %v3294_v13 }
 0x476   : > { %6739 = vst [vmem:[#allocation41_spill] sm:$0xff] %v6373_v57  ;;  %v2934_v20 = vadd.f32 %v2894_v62, %v2733_v55  ;;  %v6389_v57 = vld [vmem:[#allocation3 + $0xe2] sm:$0xff] }
 0x478   : > { %3284 = vmatmul.f32.gmra.mxu1 %v6379_v54  ;;  %v6384_v26 = vadd.f32 %v3088_v19, %v2934_v20  ;;  %v2739_v20 = vadd.f32 %v2738_v1, %v6171_v45  ;;  %v3536_v1 = vld [vmem:[#allocation3 + $0xe0] sm:$0xff] }
 0x479   : > { %3442 = vmatmul.f32.gmra.mxu2 %v6389_v57  ;;  %3831 = vmatmul.f32.gmra.mxu0 %v6251_v0 }
 0x47a   : > { %3625 = vmatmul.f32.gmra.mxu3 %v3534_v21 }
 0x47c   : > { %v3395_v19 = vpop.f32.mrf.mxu2 }
 0x47d   : > { %v2897_v55 = vpop.f32.mrf.mxu3  ;;  %v6387_v62 = vpop.f32.mrf.mxu1  ;;  %v3489_v13 = vadd.f32 %v3395_v19, %v3295_v53 }
 0x47e   : > { %v2935_v15 = vadd.f32 %v2897_v55, %v2736_v8  ;;  %v6403_v8 = vld [vmem:[#allocation3 + $0xf2] sm:$0xff] }
 0x480   : > { %3287 = vmatmul.f32.gmra.mxu1 %v6393_v29  ;;  %v6398_v3 = vadd.f32 %v3091_v5, %v2935_v15  ;;  %v3781_v5 = vpop.f32.mrf.mxu0  ;;  %v2742_v15 = vadd.f32 %v2741_v34, %v6184_v17 }
 0x481   : > { %3445 = vmatmul.f32.gmra.mxu2 %v6403_v8  ;;  %3834 = vmatmul.f32.gmra.mxu0 %v6266_v7  ;;  %v6417_v7 = vld [vmem:[#allocation3 + $0xfa] sm:$0xff] }
 0x482   : > { %3628 = vmatmul.f32.gmra.mxu3 %v3535_v38 }
 0x484   : > { %v3398_v55 = vpop.f32.mrf.mxu2 }
 0x485   : > { %v2900_v21 = vpop.f32.mrf.mxu3  ;;  %v6401_v60 = vpop.f32.mrf.mxu1  ;;  %v3490_v53 = vadd.f32 %v3398_v55, %v3296_v47 }
 0x486   : > { %v2936_v0 = vadd.f32 %v2900_v21, %v2739_v20 }
 0x488   : > { %3290 = vmatmul.f32.gmra.mxu1 %v6407_v14  ;;  %v6412_v45 = vadd.f32 %v3094_v4, %v2936_v0  ;;  %v3537_v4 = vld [vmem:[#allocation3 + $0xf0] sm:$0xff]  ;;  %v3784_v34 = vpop.f32.mrf.mxu0 }
 0x489   : > { %3448 = vmatmul.f32.gmra.mxu2 %v6417_v7  ;;  %3837 = vmatmul.f32.gmra.mxu0 %v6279_v50 }
 0x48a   : > { %3631 = vmatmul.f32.gmra.mxu3 %v3536_v1  ;;  %v6428_v1 = vld [vmem:[#allocation3 + $0x10a] sm:$0xff] }
 0x48c   : > { %v3401_v17 = vpop.f32.mrf.mxu2 }
 0x48d   : > { %v2903_v38 = vpop.f32.mrf.mxu3  ;;  %v6415_v19 = vpop.f32.mrf.mxu1  ;;  %v3491_v21 = vadd.f32 %v3401_v17, %v3297_v36 }
 0x48e   : > { %v2937_v20 = vadd.f32 %v2903_v38, %v2742_v15 }
 0x490   : > { %3974 = vmatmul.f32.vlgmr.msra.gmra.mxu1 %v6186_v9  ;;  %v6424_v37 = vadd.f32 %v3097_v58, %v2937_v20  ;;  %v3787_v15 = vpop.f32.mrf.mxu0 }
 0x491   : > { %3451 = vmatmul.f32.gmra.mxu2 %v6428_v1  ;;  %3840 = vmatmul.f32.gmra.mxu0 %v6292_v23 }
 0x492   : > { %3634 = vmatmul.f32.gmra.mxu3 %v3537_v4 }
 0x494   : > { %v3404_v50 = vpop.f32.mrf.mxu2 }
 0x495   : > { %v3587_v0 = vpop.f32.mrf.mxu3  ;;  %v6426_v47 = vpop.f32.mrf.mxu1  ;;  %v3492_v58 = vadd.f32 %v3404_v50, %v3298_v6 }
 0x496   : > { %v3683_v55 = vadd.f32 %v3587_v0, %v3488_v46  ;;  %v6439_v46 = vld [vmem:[#allocation3 + $0x112] sm:$0xff]  ;;  %v6450_v0 = vld [vmem:[#allocation3 + $0x122] sm:$0xff] }
 0x498   : > { %3977 = vmatmul.f32.gmra.mxu1 %v6202_v41  ;;  %v6435_v9 = vadd.f32 %v3781_v5, %v3683_v55  ;;  %v3539_v41 = vld [vmem:[#allocation3 + $0x108] sm:$0xff]  ;;  %v3790_v55 = vpop.f32.mrf.mxu0 }
 0x499   : > { %3454 = vmatmul.f32.gmra.mxu2 %v6439_v46  ;;  %3843 = vmatmul.f32.gmra.mxu0 %v6305_v59 }
 0x49a   : > { %3637 = vmatmul.f32.gmra.mxu3 %v3538_v10 }
 0x49c   : > { %v3407_v52 = vpop.f32.mrf.mxu2 }
 0x49d   : > { %v3590_v38 = vpop.f32.mrf.mxu3  ;;  %v6437_v20 = vpop.f32.mrf.mxu1  ;;  %v3493_v5 = vadd.f32 %v3407_v52, %v3299_v49 }
 0x49e   : > { %v3684_v36 = vadd.f32 %v3590_v38, %v3489_v13 }
 0x4a0   : > { %3980 = vmatmul.f32.gmra.mxu1 %v6217_v39  ;;  %v6446_v23 = vadd.f32 %v3784_v34, %v3684_v36 }
 0x4a1   : > { %3457 = vmatmul.f32.gmra.mxu2 %v6450_v0  ;;  %3846 = vmatmul.f32.gmra.mxu0 %v6318_v12  ;;  %v3793_v12 = vpop.f32.mrf.mxu0 }
 0x4a2   : > { %3640 = vmatmul.f32.gmra.mxu3 %v3539_v41 }
 0x4a4   : > { %v3410_v59 = vpop.f32.mrf.mxu2 }
 0x4a5   : > { %v3593_v4 = vpop.f32.mrf.mxu3  ;;  %v6448_v17 = vpop.f32.mrf.mxu1  ;;  %v3494_v34 = vadd.f32 %v3410_v59, %v3300_v43 }
 0x4a6   : > { %v3685_v13 = vadd.f32 %v3593_v4, %v3490_v53  ;;  %v6461_v53 = vld [vmem:[#allocation3 + $0x12a] sm:$0xff]  ;;  %v6481_v4 = vld [vmem:[#allocation3 + $0x142] sm:$0xff] }
 0x4a8   : > { %3983 = vmatmul.f32.gmra.mxu1 %v6232_v2  ;;  %v6457_v39 = vadd.f32 %v3787_v15, %v3685_v13 }
 0x4a9   : > { %3460 = vmatmul.f32.gmra.mxu2 %v6461_v53  ;;  %3849 = vmatmul.f32.gmra.mxu0 %v6331_v33  ;;  %v3796_v40 = vpop.f32.mrf.mxu0 }
 0x4aa   : > { %3643 = vmatmul.f32.gmra.mxu3 %v3540_v32  ;;  %v6490_v32 = vld [vmem:[#allocation3 + $0x152] sm:$0xff] }
 0x4ac   : > { %v3413_v15 = vpop.f32.mrf.mxu2 }
 0x4ad   : > { %v3596_v6 = vpop.f32.mrf.mxu3  ;;  %v6459_v10 = vpop.f32.mrf.mxu1  ;;  %v3495_v38 = vadd.f32 %v3413_v15, %v3301_v11  ;;  %v3546_v15 = vld [vmem:[#allocation3 + $0x158] sm:$0xff] }
 0x4ae   : > { %v3686_v50 = vadd.f32 %v3596_v6, %v3491_v21  ;;  %v6472_v21 = vld [vmem:[#allocation3 + $0x13a] sm:$0xff] }
 0x4b0   : > { %3986 = vmatmul.f32.gmra.mxu1 %v6247_v51  ;;  %v6468_v2 = vadd.f32 %v3790_v55, %v3686_v50  ;;  %v3542_v51 = vld [vmem:[#allocation3 + $0x128] sm:$0xff]  ;;  %v6499_v50 = vld [vmem:[#allocation3 + $0x15a] sm:$0xff] }
 0x4b1   : > { %3463 = vmatmul.f32.gmra.mxu2 %v6472_v21  ;;  %3852 = vmatmul.f32.gmra.mxu0 %v6343_v22 }
 0x4b2   : > { %3646 = vmatmul.f32.gmra.mxu3 %v3541_v63  ;;  %v6508_v63 = vld [vmem:[#allocation3 + $0x16a] sm:$0xff] }
 0x4b5   : > { %v3599_v36 = vpop.f32.mrf.mxu3  ;;  %v6470_v49 = vpop.f32.mrf.mxu1 }
 0x4b6   : > { %v3687_v41 = vadd.f32 %v3599_v36, %v3492_v58  ;;  %v3799_v58 = vpop.f32.mrf.mxu0 }
 0x4b8   : > { %3989 = vmatmul.f32.gmra.mxu1 %v6260_v18  ;;  %v6477_v61 = vadd.f32 %v3793_v12, %v3687_v41  ;;  %v3543_v18 = vld [vmem:[#allocation3 + $0x138] sm:$0xff]  ;;  %v6522_v41 = vld [vmem:[#allocation3 + $0x182] sm:$0xff] }
 0x4b9   : > { %3466 = vmatmul.f32.gmra.mxu2 %v6481_v4  ;;  %3855 = vmatmul.f32.gmra.mxu0 %v6355_v56 }
 0x4ba   : > { %3649 = vmatmul.f32.gmra.mxu3 %v3542_v51 }
 0x4bd   : > { %v3602_v33 = vpop.f32.mrf.mxu3  ;;  %v6479_v52 = vpop.f32.mrf.mxu1 }
 0x4be   : > { %v3688_v13 = vadd.f32 %v3602_v33, %v3493_v5 }
 0x4c0   : > { %3992 = vmatmul.f32.gmra.mxu1 %v6275_v44  ;;  %v6486_v22 = vadd.f32 %v3796_v40, %v3688_v13  ;;  %v3544_v44 = vld [vmem:[#allocation3 + $0x140] sm:$0xff]  ;;  %v6528_v40 = vld [vmem:[#allocation3 + $0x18a] sm:$0xff] }
 0x4c1   : > { %3469 = vmatmul.f32.gmra.mxu2 %v6490_v32  ;;  %3858 = vmatmul.f32.gmra.mxu0 %v6367_v28 }
 0x4c2   : > { %3652 = vmatmul.f32.gmra.mxu3 %v3543_v18  ;;  %v3551_v18 = vld [vmem:[#allocation3 + $0x198] sm:$0xff] }
 0x4c5   : > { %v3605_v55 = vpop.f32.mrf.mxu3  ;;  %v6488_v43 = vpop.f32.mrf.mxu1 }
 0x4c6   : > { %v3689_v59 = vadd.f32 %v3605_v55, %v3494_v34  ;;  %v3802_v34 = vpop.f32.mrf.mxu0 }
 0x4c8   : > { %3995 = vmatmul.f32.gmra.mxu1 %v6288_v16  ;;  %v6495_v56 = vadd.f32 %v3799_v58, %v3689_v59  ;;  %v3545_v16 = vld [vmem:[#allocation3 + $0x150] sm:$0xff] }
 0x4c9   : > { %3472 = vmatmul.f32.gmra.mxu2 %v6499_v50  ;;  %3861 = vmatmul.f32.gmra.mxu0 %v6379_v54 }
 0x4ca   : > { %3655 = vmatmul.f32.gmra.mxu3 %v3544_v44  ;;  %v4431_v44 = vld [vmem:[#allocation2 + $0x19] sm:$0xff] }
 0x4cd   : > { %v3608_v5 = vpop.f32.mrf.mxu3  ;;  %v6497_v6 = vpop.f32.mrf.mxu1 }
 0x4ce   : > { %v3690_v11 = vadd.f32 %v3608_v5, %v3495_v38  ;;  %v6515_v38 = vld [vmem:[#allocation3 + $0x172] sm:$0xff] }
 0x4d0   : > { %3998 = vmatmul.f32.gmra.mxu1 %v6301_v35  ;;  %v6504_v28 = vadd.f32 %v3802_v34, %v3690_v11  ;;  %v3547_v35 = vld [vmem:[#allocation3 + $0x168] sm:$0xff]  ;;  %v4432_v11 = vld [vmem:[#allocation2 + $0x21] sm:$0xff] }
 0x4d1   : > { %3475 = vmatmul.f32.gmra.mxu2 %v6508_v63  ;;  %3864 = vmatmul.f32.gmra.mxu0 %v6393_v29  ;;  %v3745_v29 = vld [vmem:[#allocation3 + $0x199] sm:$0xff] }
 0x4d2   : > { %3658 = vmatmul.f32.gmra.mxu3 %v3545_v16  ;;  %v3805_v16 = vpop.f32.mrf.mxu0 }
 0x4d5   : > { %v6506_v12 = vpop.f32.mrf.mxu1 }
 0x4d8   : > { %4001 = vmatmul.f32.gmra.mxu1 %v6314_v31  ;;  %v3548_v31 = vld [vmem:[#allocation3 + $0x170] sm:$0xff] }
 0x4d9   : > { %3478 = vmatmul.f32.gmra.mxu2 %v6515_v38  ;;  %3867 = vmatmul.f32.gmra.mxu0 %v6407_v14  ;;  %v3549_v14 = vld [vmem:[#allocation3 + $0x180] sm:$0xff] }
 0x4da   : > { %3661 = vmatmul.f32.gmra.mxu3 %v3546_v15 }
 0x4dd   : > { %v6513_v54 = vpop.f32.mrf.mxu1 }
 0x4e0   : > { %4004 = vmatmul.f32.gmra.mxu1 %v6327_v30  ;;  %v3746_v30 = vld [vmem:[#allocation3 + $0x1a1] sm:$0xff] }
 0x4e1   : > { %3481 = vmatmul.f32.gmra.mxu2 %v6522_v41  ;;  %3870 = vmatmul.f32.gmra.mxu0 %v3745_v29 }
 0x4e2   : > { %3664 = vmatmul.f32.gmra.mxu3 %v3547_v35 }
 0x4e5   : > { %v6520_v36 = vpop.f32.mrf.mxu1 }
 0x4e8   : > { %4007 = vmatmul.f32.gmra.mxu1 %v6339_v48  ;;  %v3550_v48 = vld [vmem:[#allocation3 + $0x188] sm:$0xff] }
 0x4e9   : > { %3484 = vmatmul.f32.gmra.mxu2 %v6528_v40  ;;  %3873 = vmatmul.f32.gmra.mxu0 %v3746_v30 }
 0x4ea   : > { %3667 = vmatmul.f32.gmra.mxu3 %v3548_v31  ;;  %v4433_v31 = vld [vmem:[#allocation2 + $0x31] sm:$0xff] }
 0x4ed   : > { %v6526_v51 = vpop.f32.mrf.mxu1 }
 0x4f0   : > { %4010 = vmatmul.f32.gmra.mxu1 %v6351_v24  ;;  %v4430_v24 = vld [vmem:[#allocation2 + $0x8] sm:$0xff] }
 0x4f2   : > { %3670 = vmatmul.f32.gmra.mxu3 %v3549_v14 }
 0x4f5   : > { %v6532_v33 = vpop.f32.mrf.mxu1 }
 0x4f8   : > { %4013 = vmatmul.f32.gmra.mxu1 %v6363_v25 }
 0x4fa   : > { %3673 = vmatmul.f32.gmra.mxu3 %v3550_v48 }
 0x4fd   : > { %v6535_v13 = vpop.f32.mrf.mxu1 }
 0x500   : > { %4016 = vmatmul.f32.gmra.mxu1 %v6375_v42  ;;  %v3416_v42 = vpop.f32.mrf.mxu2 }
 0x502   : > { %3676 = vmatmul.f32.gmra.mxu3 %v3551_v18  ;;  %v4434_v18 = vld [vmem:[#allocation2 + $0x39] sm:$0xff] }
 0x505   : > { %v6538_v58 = vpop.f32.mrf.mxu1 }
 0x508   : > { %4019 = vmatmul.f32.gmra.mxu1 %v6389_v57 }
 0x50a   : > { %3679 = vmatmul.f32.gmra.mxu3 %v4430_v24 }
 0x50d   : > { %v3975_v55 = vpop.f32.mrf.mxu1 }
 0x50e   : > { %v4071_v59 = vadd.f32 %v3975_v55, %v6435_v9  ;;  %v3611_v9 = vpop.f32.mrf.mxu3 }
 0x510   : > { %v4103_v25 = vadd.f32 %v4431_v44, %v4071_v59  ;;  %4022 = vmatmul.f32.gmra.mxu1 %v6403_v8  ;;  %v3419_v8 = vpop.f32.mrf.mxu2 }
 0x512   : > { %4135 = vst [vmem:[%s6545_s23] sm:$0xff] %v4103_v25 }
 0x515   : > { %v3978_v5 = vpop.f32.mrf.mxu1 }
 0x516   : > { %v4072_v57 = vadd.f32 %v3978_v5, %v6446_v23  ;;  %v3614_v30 = vpop.f32.mrf.mxu3  ;;  %v3808_v23 = vpop.f32.mrf.mxu0 }
 0x518   : > { %v4104_v34 = vadd.f32 %v4432_v11, %v4072_v57  ;;  %4025 = vmatmul.f32.gmra.mxu1 %v6417_v7  ;;  %v3422_v7 = vpop.f32.mrf.mxu2 }
 0x51a   : > { %4136 = vst [vmem:[%s6545_s23 + $0x8] sm:$0xff] %v4104_v34  ;;  %v4436_v34 = vld [vmem:[#allocation2 + $0x51] sm:$0xff] }
 0x51d   : > { %v3981_v15 = vpop.f32.mrf.mxu1 }
 0x51e   : > { %v4073_v35 = vadd.f32 %v3981_v15, %v6457_v39  ;;  %v3617_v55 = vpop.f32.mrf.mxu3  ;;  %v3811_v44 = vpop.f32.mrf.mxu0 }
 0x520   : > { %v4105_v29 = vadd.f32 %v4433_v31, %v4073_v35  ;;  %4028 = vmatmul.f32.gmra.mxu1 %v6428_v1  ;;  %v4435_v1 = vld [vmem:[#allocation2 + $0x49] sm:$0xff]  ;;  %v3425_v5 = vpop.f32.mrf.mxu2 }
 0x522   : > { %4137 = vst [vmem:[%s6545_s23 + $0x10] sm:$0xff] %v4105_v29  ;;  %v4437_v29 = vld [vmem:[#allocation2 + $0x61] sm:$0xff] }
 0x525   : > { %v3984_v14 = vpop.f32.mrf.mxu1 }
 0x526   : > { %v4074_v48 = vadd.f32 %v3984_v14, %v6468_v2  ;;  %v3620_v11 = vpop.f32.mrf.mxu3  ;;  %v3814_v15 = vpop.f32.mrf.mxu0 }
 0x528   : > { %v4106_v24 = vadd.f32 %v4434_v18, %v4074_v48  ;;  %4031 = vmatmul.f32.gmra.mxu1 %v6439_v46  ;;  %v3428_v35 = vpop.f32.mrf.mxu2  ;;  %v6740_v48 = vld [vmem:[#allocation18_spill] sm:$0xff]  ;;  %v6741_v18 = vld [vmem:[#allocation32_spill] sm:$0xff] }
 0x52a   : > { %4138 = vst [vmem:[%s6545_s23 + $0x18] sm:$0xff] %v4106_v24 }
 0x52d   : > { %v3987_v39 = vpop.f32.mrf.mxu1 }
 0x52e   : > { %v4075_v59 = vadd.f32 %v3987_v39, %v6477_v61  ;;  %v3623_v14 = vpop.f32.mrf.mxu3  ;;  %v3817_v39 = vpop.f32.mrf.mxu0 }
 0x530   : > { %v4107_v25 = vadd.f32 %v4435_v1, %v4075_v59  ;;  %4034 = vmatmul.f32.gmra.mxu1 %v6450_v0  ;;  %v3431_v59 = vpop.f32.mrf.mxu2 }
 0x532   : > { %4139 = vst [vmem:[%s6545_s23 + $0x20] sm:$0xff] %v4107_v25 }
 0x535   : > { %v3990_v57 = vpop.f32.mrf.mxu1 }
 0x536   : > { %v4076_v2 = vadd.f32 %v3990_v57, %v6486_v22  ;;  %v3302_v22 = vadd.f32 %v6741_v18, %v6740_v48  ;;  %v4438_v57 = vld [vmem:[#allocation2 + $0x69] sm:$0xff]  ;;  %v4439_v18 = vld [vmem:[#allocation2 + $0x79] sm:$0xff] }
 0x538   : > { %v4108_v46 = vadd.f32 %v4436_v34, %v4076_v2  ;;  %4037 = vmatmul.f32.gmra.mxu1 %v6461_v53  ;;  %v3496_v24 = vadd.f32 %v3416_v42, %v3302_v22  ;;  %v3626_v34 = vpop.f32.mrf.mxu3  ;;  %v3820_v42 = vpop.f32.mrf.mxu0  ;;  %v6744_v22 = vld [vmem:[#allocation35_spill] sm:$0xff] }
 0x53a   : > { %4140 = vst [vmem:[%s6545_s23 + $0x28] sm:$0xff] %v4108_v46  ;;  %v3691_v25 = vadd.f32 %v3611_v9, %v3496_v24  ;;  %v6743_v9 = vld [vmem:[#allocation19_spill] sm:$0xff] }
 0x53d   : > { %v3993_v61 = vpop.f32.mrf.mxu1 }
 0x53e   : > { %v4077_v31 = vadd.f32 %v3993_v61, %v6495_v56  ;;  %v6742_v56 = vld [vmem:[#allocation17_spill] sm:$0xff]  ;;  %v3885_v61 = vadd.f32 %v3805_v16, %v3691_v25 }
 0x540   : > { %v4109_v0 = vadd.f32 %v4437_v29, %v4077_v31  ;;  %4040 = vmatmul.f32.gmra.mxu1 %v6472_v21  ;;  %v3303_v21 = vadd.f32 %v6325_v27, %v6742_v56  ;;  %v3823_v25 = vpop.f32.mrf.mxu0  ;;  %v6745_v56 = vld [vmem:[#allocation20_spill] sm:$0xff] }
 0x542   : > { %4141 = vst [vmem:[%s6545_s23 + $0x30] sm:$0xff] %v4109_v0  ;;  %v3497_v46 = vadd.f32 %v3419_v8, %v3303_v21  ;;  %v3434_v0 = vpop.f32.mrf.mxu2  ;;  %v6746_v21 = vld [vmem:[#allocation37_spill] sm:$0xff] }
 0x544   : > { %v3692_v48 = vadd.f32 %v3614_v30, %v3497_v46 }
 0x545   : > { %v3996_v53 = vpop.f32.mrf.mxu1 }
 0x546   : > { %v4078_v1 = vadd.f32 %v3996_v53, %v6504_v28  ;;  %v3886_v27 = vadd.f32 %v3808_v23, %v3692_v48  ;;  %v3629_v53 = vpop.f32.mrf.mxu3  ;;  %v4441_v48 = vld [vmem:[#allocation2 + $0x91] sm:$0xff] }
 0x548   : > { %v4110_v2 = vadd.f32 %v4438_v57, %v4078_v1  ;;  %4043 = vmatmul.f32.gmra.mxu1 %v6481_v4  ;;  %v3304_v4 = vadd.f32 %v6744_v22, %v6743_v9  ;;  %v4440_v57 = vld [vmem:[#allocation2 + $0x81] sm:$0xff] }
 0x54a   : > { %4142 = vst [vmem:[%s6545_s23 + $0x38] sm:$0xff] %v4110_v2  ;;  %v3498_v24 = vadd.f32 %v3422_v7, %v3304_v4  ;;  %v3437_v30 = vpop.f32.mrf.mxu2 }
 0x54c   : > { %v3693_v16 = vadd.f32 %v3617_v55, %v3498_v24  ;;  %v6747_v55 = vld [vmem:[#allocation21_spill] sm:$0xff] }
 0x54d   : > { %v3999_v31 = vpop.f32.mrf.mxu1 }
 0x54e   : > { %v4079_v29 = vadd.f32 %v3999_v31, %v3885_v61  ;;  %v3887_v61 = vadd.f32 %v3811_v44, %v3693_v16  ;;  %v3632_v23 = vpop.f32.mrf.mxu3  ;;  %v6749_v16 = vld [vmem:[#allocation22_spill] sm:$0xff] }
 0x550   : > { %v4111_v28 = vadd.f32 %v4439_v18, %v4079_v29  ;;  %4046 = vmatmul.f32.gmra.mxu1 %v6490_v32  ;;  %v3305_v32 = vadd.f32 %v6746_v21, %v6745_v56 }
 0x552   : > { %4143 = vst [vmem:[%s6545_s23 + $0x40] sm:$0xff] %v4111_v28  ;;  %v3499_v46 = vadd.f32 %v3425_v5, %v3305_v32  ;;  %v6748_v28 = vld [vmem:[#allocation39_spill] sm:$0xff]  ;;  %v3440_v22 = vpop.f32.mrf.mxu2 }
 0x553   : > { %v3306_v9 = vadd.f32 %v6748_v28, %v6747_v55 }
 0x554   : > { %v3694_v29 = vadd.f32 %v3620_v11, %v3499_v46 }
 0x555   : > { %v4002_v1 = vpop.f32.mrf.mxu1  ;;  %v3500_v4 = vadd.f32 %v3428_v35, %v3306_v9  ;;  %v4444_v9 = vld [vmem:[#allocation2 + $0xb1] sm:$0xff] }
 0x556   : > { %v4080_v8 = vadd.f32 %v4002_v1, %v3886_v27  ;;  %v3888_v24 = vadd.f32 %v3814_v15, %v3694_v29  ;;  %v4442_v1 = vld [vmem:[#allocation2 + $0x99] sm:$0xff]  ;;  %v3635_v11 = vpop.f32.mrf.mxu3 }
 0x557   : > { %v3695_v44 = vadd.f32 %v3623_v14, %v3500_v4  ;;  %v6751_v14 = vld [vmem:[#allocation23_spill] sm:$0xff] }
 0x558   : > { %v4112_v2 = vadd.f32 %v4440_v57, %v4080_v8  ;;  %4049 = vmatmul.f32.gmra.mxu1 %v6499_v50  ;;  %v3826_v50 = vpop.f32.mrf.mxu0  ;;  %v6750_v57 = vld [vmem:[#allocation41_spill] sm:$0xff] }
 0x559   : > { %v3889_v21 = vadd.f32 %v3817_v39, %v3695_v44 }
 0x55a   : > { %4144 = vst [vmem:[%s6545_s23 + $0x48] sm:$0xff] %v4112_v2  ;;  %v3443_v32 = vpop.f32.mrf.mxu2 }
 0x55d   : > { %v4005_v31 = vpop.f32.mrf.mxu1 }
 0x55e   : > { %v4081_v7 = vadd.f32 %v4005_v31, %v3887_v61  ;;  %v4443_v61 = vld [vmem:[#allocation2 + $0xa9] sm:$0xff] }
 0x560   : > { %v4113_v18 = vadd.f32 %v4441_v48, %v4081_v7  ;;  %4052 = vmatmul.f32.gmra.mxu1 %v6508_v63  ;;  %v3307_v63 = vadd.f32 %v6750_v57, %v6749_v16  ;;  %v3829_v56 = vpop.f32.mrf.mxu0  ;;  %v3638_v7 = vpop.f32.mrf.mxu3  ;;  %v6753_v57 = vld [vmem:[#allocation25_spill] sm:$0xff] }
 0x562   : > { %4145 = vst [vmem:[%s6545_s23 + $0x50] sm:$0xff] %v4113_v18  ;;  %v3501_v2 = vadd.f32 %v3431_v59, %v3307_v63  ;;  %v3446_v39 = vpop.f32.mrf.mxu2 }
 0x564   : > { %v3696_v15 = vadd.f32 %v3626_v34, %v3501_v2  ;;  %v6752_v34 = vld [vmem:[#allocation24_spill] sm:$0xff] }
 0x565   : > { %v4008_v27 = vpop.f32.mrf.mxu1 }
 0x566   : > { %v4082_v5 = vadd.f32 %v4008_v27, %v3888_v24  ;;  %v3890_v48 = vadd.f32 %v3820_v42, %v3696_v15  ;;  %v6754_v15 = vld [vmem:[#allocation26_spill] sm:$0xff] }
 0x568   : > { %v4114_v8 = vadd.f32 %v4442_v1, %v4082_v5  ;;  %4055 = vmatmul.f32.gmra.mxu1 %v6515_v38  ;;  %v3308_v38 = vadd.f32 %v6387_v62, %v6751_v14  ;;  %v3832_v59 = vpop.f32.mrf.mxu0  ;;  %v3641_v27 = vpop.f32.mrf.mxu3 }
 0x56a   : > { %4146 = vst [vmem:[%s6545_s23 + $0x58] sm:$0xff] %v4114_v8  ;;  %v3502_v29 = vadd.f32 %v3434_v0, %v3308_v38  ;;  %v3939_v0 = vld [vmem:[#allocation3 + $0x19a] sm:$0xff]  ;;  %v4445_v8 = vld [vmem:[#allocation2 + $0xc1] sm:$0xff] }
 0x56c   : > { %v3697_v28 = vadd.f32 %v3629_v53, %v3502_v29  ;;  %v3449_v53 = vpop.f32.mrf.mxu2 }
 0x56d   : > { %v4011_v46 = vpop.f32.mrf.mxu1 }
 0x56e   : > { %v4083_v35 = vadd.f32 %v4011_v46, %v3889_v21  ;;  %v3891_v62 = vadd.f32 %v3823_v25, %v3697_v28 }
 0x570   : > { %v4115_v31 = vadd.f32 %v4443_v61, %v4083_v35  ;;  %4058 = vmatmul.f32.gmra.mxu1 %v6522_v41  ;;  %v3309_v41 = vadd.f32 %v6401_v60, %v6752_v34  ;;  %v3835_v1 = vpop.f32.mrf.mxu0  ;;  %v3644_v21 = vpop.f32.mrf.mxu3  ;;  %v4446_v35 = vld [vmem:[#allocation2 + $0xc9] sm:$0xff]  ;;  %v3311_v61 = vadd.f32 %v6426_v47, %v6754_v15 }
 0x571   : > { %v6758_v15 = vld [vmem:[#allocation30_spill] sm:$0xff] }
 0x572   : > { %4147 = vst [vmem:[%s6545_s23 + $0x60] sm:$0xff] %v4115_v31  ;;  %v3503_v24 = vadd.f32 %v3437_v30, %v3309_v41  ;;  %v3940_v30 = vld [vmem:[#allocation3 + $0x1a2] sm:$0xff]  ;;  %v3505_v38 = vadd.f32 %v3443_v32, %v3311_v61 }
 0x574   : > { %v3698_v44 = vadd.f32 %v3632_v23, %v3503_v24  ;;  %v3452_v14 = vpop.f32.mrf.mxu2 }
 0x575   : > { %v4014_v18 = vpop.f32.mrf.mxu1 }
 0x576   : > { %v4084_v55 = vadd.f32 %v4014_v18, %v3890_v48  ;;  %v3892_v60 = vadd.f32 %v3826_v50, %v3698_v44  ;;  %v3700_v50 = vadd.f32 %v3638_v7, %v3505_v38  ;;  %v4447_v48 = vld [vmem:[#allocation2 + $0xd9] sm:$0xff] }
 0x578   : > { %v4116_v4 = vadd.f32 %v4444_v9, %v4084_v55  ;;  %4061 = vmatmul.f32.gmra.mxu1 %v6528_v40  ;;  %v3310_v40 = vadd.f32 %v6415_v19, %v6753_v57  ;;  %v3838_v31 = vpop.f32.mrf.mxu0  ;;  %v3647_v55 = vpop.f32.mrf.mxu3  ;;  %v3894_v34 = vadd.f32 %v3832_v59, %v3700_v50  ;;  %v4449_v59 = vld [vmem:[#allocation2 + $0xf1] sm:$0xff] }
 0x579   : > { %v6759_v50 = vld [vmem:[#allocation31_spill] sm:$0xff] }
 0x57a   : > { %4148 = vst [vmem:[%s6545_s23 + $0x68] sm:$0xff] %v4116_v4  ;;  %v3504_v63 = vadd.f32 %v3440_v22, %v3310_v40 }
 0x57c   : > { %v3699_v46 = vadd.f32 %v3635_v11, %v3504_v63  ;;  %v6755_v11 = vld [vmem:[#allocation27_spill] sm:$0xff]  ;;  %v3455_v47 = vpop.f32.mrf.mxu2  ;;  %v6757_v63 = vld [vmem:[#allocation29_spill] sm:$0xff] }
 0x57d   : > { %v4017_v5 = vpop.f32.mrf.mxu1  ;;  %v3312_v28 = vadd.f32 %v6437_v20, %v6755_v11 }
 0x57e   : > { %v4085_v42 = vadd.f32 %v4017_v5, %v3891_v62  ;;  %v3893_v19 = vadd.f32 %v3829_v56, %v3699_v46  ;;  %v4448_v56 = vld [vmem:[#allocation2 + $0xe1] sm:$0xff] }
 0x57f   : > { %v3506_v9 = vadd.f32 %v3446_v39, %v3312_v28  ;;  %v6756_v5 = vld [vmem:[#allocation28_spill] sm:$0xff] }
 0x580   : > { %v4117_v16 = vadd.f32 %v4445_v8, %v4085_v42  ;;  %4064 = vmatmul.f32.gmra.mxu1 %v3939_v0  ;;  %v3841_v4 = vpop.f32.mrf.mxu0  ;;  %v3313_v7 = vadd.f32 %v6448_v17, %v6756_v5  ;;  %v3650_v0 = vpop.f32.mrf.mxu3 }
 0x581   : > { %v3701_v62 = vadd.f32 %v3641_v27, %v3506_v9  ;;  %v3314_v27 = vadd.f32 %v6459_v10, %v6757_v63 }
 0x582   : > { %4149 = vst [vmem:[%s6545_s23 + $0x70] sm:$0xff] %v4117_v16  ;;  %v3507_v42 = vadd.f32 %v3449_v53, %v3313_v7 }
 0x583   : > { %v3895_v44 = vadd.f32 %v3835_v1, %v3701_v62  ;;  %v4450_v1 = vld [vmem:[#allocation2 + $0xf9] sm:$0xff] }
 0x584   : > { %v3458_v39 = vpop.f32.mrf.mxu2  ;;  %v3702_v57 = vadd.f32 %v3644_v21, %v3507_v42  ;;  %v3315_v21 = vadd.f32 %v6470_v49, %v6758_v15 }
 0x585   : > { %v4020_v2 = vpop.f32.mrf.mxu1 }
 0x586   : > { %v4086_v25 = vadd.f32 %v4020_v2, %v3892_v60  ;;  %v3508_v60 = vadd.f32 %v3452_v14, %v3314_v27  ;;  %v3896_v2 = vadd.f32 %v3838_v31, %v3702_v57  ;;  %v3509_v61 = vadd.f32 %v3455_v47, %v3315_v21  ;;  %v4451_v31 = vld [vmem:[#allocation2 + $0x109] sm:$0xff]  ;;  %v4455_v21 = vld [vmem:[#allocation2 + $0x139] sm:$0xff] }
 0x588   : > { %v4118_v23 = vadd.f32 %v4446_v35, %v4086_v25  ;;  %4067 = vmatmul.f32.gmra.mxu1 %v3940_v30  ;;  %v3844_v20 = vpop.f32.mrf.mxu0  ;;  %v3653_v30 = vpop.f32.mrf.mxu3  ;;  %v3703_v46 = vadd.f32 %v3647_v55, %v3508_v60  ;;  %v3704_v14 = vadd.f32 %v3650_v0, %v3509_v61 }
 0x58a   : > { %4150 = vst [vmem:[%s6545_s23 + $0x78] sm:$0xff] %v4118_v23  ;;  %v3897_v38 = vadd.f32 %v3841_v4, %v3703_v46  ;;  %v3898_v28 = vadd.f32 %v3844_v20, %v3704_v14  ;;  %v4452_v4 = vld [vmem:[#allocation2 + $0x111] sm:$0xff] }
 0x58b   : > { %v6761_v20 = vld [vmem:[#allocation34_spill] sm:$0xff] }
 0x58c   : > { %v3461_v23 = vpop.f32.mrf.mxu2 }
 0x58d   : > { %v4023_v29 = vpop.f32.mrf.mxu1 }
 0x58e   : > { %v4087_v22 = vadd.f32 %v4023_v29, %v3893_v19 }
 0x590   : > { %v4119_v18 = vadd.f32 %v4447_v48, %v4087_v22  ;;  %v3847_v53 = vpop.f32.mrf.mxu0  ;;  %v3656_v29 = vpop.f32.mrf.mxu3  ;;  %v3316_v48 = vadd.f32 %v6479_v52, %v6759_v50 }
 0x592   : > { %4151 = vst [vmem:[%s6545_s23 + $0x80] sm:$0xff] %v4119_v18  ;;  %v3510_v11 = vadd.f32 %v3458_v39, %v3316_v48  ;;  %v4456_v48 = vld [vmem:[#allocation2 + $0x141] sm:$0xff] }
 0x594   : > { %v3464_v55 = vpop.f32.mrf.mxu2 }
 0x595   : > { %v4026_v41 = vpop.f32.mrf.mxu1 }
 0x596   : > { %v4088_v24 = vadd.f32 %v4026_v41, %v3894_v34  ;;  %v3705_v34 = vadd.f32 %v3653_v30, %v3510_v11 }
 0x598   : > { %v4120_v32 = vadd.f32 %v4448_v56, %v4088_v24  ;;  %v3850_v18 = vpop.f32.mrf.mxu0  ;;  %v3659_v41 = vpop.f32.mrf.mxu3  ;;  %v6760_v24 = vld [vmem:[#allocation33_spill] sm:$0xff]  ;;  %v3899_v5 = vadd.f32 %v3847_v53, %v3705_v34 }
 0x599   : > { %v3317_v62 = vadd.f32 %v6488_v43, %v6760_v24 }
 0x59a   : > { %4152 = vst [vmem:[%s6545_s23 + $0x88] sm:$0xff] %v4120_v32 }
 0x59b   : > { %v3511_v56 = vadd.f32 %v3461_v23, %v3317_v62 }
 0x59c   : > { %v3467_v52 = vpop.f32.mrf.mxu2 }
 0x59d   : > { %v4029_v8 = vpop.f32.mrf.mxu1  ;;  %v3706_v42 = vadd.f32 %v3656_v29, %v3511_v56  ;;  %v3322_v56 = vadd.f32 %v6526_v51, %v6384_v26 }
 0x59e   : > { %v4089_v16 = vadd.f32 %v4029_v8, %v3895_v44  ;;  %v4453_v44 = vld [vmem:[#allocation2 + $0x121] sm:$0xff] }
 0x5a0   : > { %v4121_v40 = vadd.f32 %v4449_v59, %v4089_v16  ;;  %v3853_v32 = vpop.f32.mrf.mxu0  ;;  %v3318_v16 = vadd.f32 %v6497_v6, %v6761_v20  ;;  %v3662_v39 = vpop.f32.mrf.mxu3  ;;  %v3900_v59 = vadd.f32 %v3850_v18, %v3706_v42  ;;  %v3323_v20 = vadd.f32 %v6532_v33, %v6398_v3 }
 0x5a2   : > { %4153 = vst [vmem:[%s6545_s23 + $0x90] sm:$0xff] %v4121_v40  ;;  %v3512_v57 = vadd.f32 %v3464_v55, %v3318_v16  ;;  %v6764_v55 = vld [vmem:[#allocation40_spill] sm:$0xff] }
 0x5a3   : > { %v3321_v11 = vadd.f32 %v6520_v36, %v6764_v55 }
 0x5a4   : > { %v3470_v27 = vpop.f32.mrf.mxu2  ;;  %v3707_v60 = vadd.f32 %v3659_v41, %v3512_v57  ;;  %v4457_v41 = vld [vmem:[#allocation2 + $0x151] sm:$0xff] }
 0x5a5   : > { %v4032_v17 = vpop.f32.mrf.mxu1 }
 0x5a6   : > { %v4090_v25 = vadd.f32 %v4032_v17, %v3896_v2  ;;  %v4454_v2 = vld [vmem:[#allocation2 + $0x129] sm:$0xff]  ;;  %v6762_v17 = vld [vmem:[#allocation36_spill] sm:$0xff]  ;;  %v3901_v53 = vadd.f32 %v3853_v32, %v3707_v60  ;;  %v3324_v60 = vadd.f32 %v6535_v13, %v6412_v45 }
 0x5a8   : > { %v4122_v35 = vadd.f32 %v4450_v1, %v4090_v25  ;;  %v3856_v43 = vpop.f32.mrf.mxu0  ;;  %v3319_v25 = vadd.f32 %v6506_v12, %v6762_v17  ;;  %v3665_v1 = vpop.f32.mrf.mxu3 }
 0x5aa   : > { %4154 = vst [vmem:[%s6545_s23 + $0x98] sm:$0xff] %v4122_v35  ;;  %v3513_v46 = vadd.f32 %v3467_v52, %v3319_v25 }
 0x5ac   : > { %v3708_v23 = vadd.f32 %v3662_v39, %v3513_v46 }
 0x5ad   : > { %v4035_v19 = vpop.f32.mrf.mxu1 }
 0x5ae   : > { %v4091_v10 = vadd.f32 %v4035_v19, %v3897_v38  ;;  %v3473_v38 = vpop.f32.mrf.mxu2  ;;  %v6763_v19 = vld [vmem:[#allocation38_spill] sm:$0xff]  ;;  %v3902_v14 = vadd.f32 %v3856_v43, %v3708_v23 }
 0x5b0   : > { %v4123_v22 = vadd.f32 %v4451_v31, %v4091_v10  ;;  %v3859_v15 = vpop.f32.mrf.mxu0  ;;  %v3320_v10 = vadd.f32 %v6513_v54, %v6763_v19 }
 0x5b2   : > { %4155 = vst [vmem:[%s6545_s23 + $0xa0] sm:$0xff] %v4123_v22  ;;  %v3514_v29 = vadd.f32 %v3470_v27, %v3320_v10  ;;  %v3668_v22 = vpop.f32.mrf.mxu3 }
 0x5b4   : > { %v3709_v50 = vadd.f32 %v3665_v1, %v3514_v29 }
 0x5b5   : > { %v4038_v9 = vpop.f32.mrf.mxu1 }
 0x5b6   : > { %v4092_v49 = vadd.f32 %v4038_v9, %v3898_v28  ;;  %v3476_v9 = vpop.f32.mrf.mxu2  ;;  %v3903_v34 = vadd.f32 %v3859_v15, %v3709_v50 }
 0x5b8   : > { %v4124_v47 = vadd.f32 %v4452_v4, %v4092_v49  ;;  %v3862_v28 = vpop.f32.mrf.mxu0  ;;  %v3515_v49 = vadd.f32 %v3473_v38, %v3321_v11  ;;  %v4461_v38 = vld [vmem:[#allocation2 + $0x181] sm:$0xff] }
 0x5ba   : > { %4156 = vst [vmem:[%s6545_s23 + $0xa8] sm:$0xff] %v4124_v47  ;;  %v3710_v47 = vadd.f32 %v3668_v22, %v3515_v49  ;;  %v3671_v62 = vpop.f32.mrf.mxu3 }
 0x5bc   : > { %v3904_v52 = vadd.f32 %v3862_v28, %v3710_v47 }
 0x5bd   : > { %v4041_v7 = vpop.f32.mrf.mxu1 }
 0x5be   : > { %v4093_v0 = vadd.f32 %v4041_v7, %v3899_v5  ;;  %v3516_v5 = vadd.f32 %v3476_v9, %v3322_v56  ;;  %v3479_v36 = vpop.f32.mrf.mxu2 }
 0x5bf   : > { %v3517_v39 = vadd.f32 %v3479_v36, %v3323_v20 }
 0x5c0   : > { %v4125_v8 = vadd.f32 %v4453_v44, %v4093_v0  ;;  %v3865_v32 = vpop.f32.mrf.mxu0  ;;  %v3711_v42 = vadd.f32 %v3671_v62, %v3516_v5  ;;  %v4458_v44 = vld [vmem:[#allocation2 + $0x159] sm:$0xff] }
 0x5c2   : > { %4157 = vst [vmem:[%s6545_s23 + $0xb0] sm:$0xff] %v4125_v8  ;;  %v3674_v16 = vpop.f32.mrf.mxu3  ;;  %v3905_v57 = vadd.f32 %v3865_v32, %v3711_v42 }
 0x5c3   : > { %v3712_v43 = vadd.f32 %v3674_v16, %v3517_v39 }
 0x5c5   : > { %v4044_v40 = vpop.f32.mrf.mxu1 }
 0x5c6   : > { %v4094_v63 = vadd.f32 %v4044_v40, %v3900_v59  ;;  %v3482_v40 = vpop.f32.mrf.mxu2 }
 0x5c8   : > { %v4126_v30 = vadd.f32 %v4454_v2, %v4094_v63  ;;  %v3868_v51 = vpop.f32.mrf.mxu0  ;;  %v4459_v63 = vld [vmem:[#allocation2 + $0x169] sm:$0xff] }
 0x5c9   : > { %v3906_v3 = vadd.f32 %v3868_v51, %v3712_v43 }
 0x5ca   : > { %4158 = vst [vmem:[%s6545_s23 + $0xb8] sm:$0xff] %v4126_v30  ;;  %v3677_v2 = vpop.f32.mrf.mxu3  ;;  %v3518_v30 = vadd.f32 %v3482_v40, %v3324_v60 }
 0x5cc   : > { %v3713_v46 = vadd.f32 %v3677_v2, %v3518_v30 }
 0x5cd   : > { %v4047_v6 = vpop.f32.mrf.mxu1 }
 0x5ce   : > { %v4095_v35 = vadd.f32 %v4047_v6, %v3901_v53  ;;  %v4460_v53 = vld [vmem:[#allocation2 + $0x171] sm:$0xff]  ;;  %v3485_v6 = vpop.f32.mrf.mxu2 }
 0x5d0   : > { %v4127_v61 = vadd.f32 %v4455_v21, %v4095_v35  ;;  %v3871_v25 = vpop.f32.mrf.mxu0  ;;  %v3325_v35 = vadd.f32 %v6538_v58, %v6424_v37 }
 0x5d1   : > { %v3907_v23 = vadd.f32 %v3871_v25, %v3713_v46 }
 0x5d2   : > { %4159 = vst [vmem:[%s6545_s23 + $0xc0] sm:$0xff] %v4127_v61  ;;  %v3519_v45 = vadd.f32 %v3485_v6, %v3325_v35  ;;  %v3680_v13 = vpop.f32.mrf.mxu3 }
 0x5d4   : > { %v3714_v61 = vadd.f32 %v3680_v13, %v3519_v45 }
 0x5d5   : > { %v4050_v31 = vpop.f32.mrf.mxu1 }
 0x5d6   : > { %v4096_v12 = vadd.f32 %v4050_v31, %v3902_v14  ;;  %v4462_v14 = vld [vmem:[#allocation2 + $0x189] sm:$0xff] }
 0x5d8   : > { %v4128_v18 = vadd.f32 %v4456_v48, %v4096_v12  ;;  %v3874_v10 = vpop.f32.mrf.mxu0 }
 0x5d9   : > { %v3908_v37 = vadd.f32 %v3874_v10, %v3714_v61 }
 0x5da   : > { %4160 = vst [vmem:[%s6545_s23 + $0xc8] sm:$0xff] %v4128_v18 }
 0x5dd   : > { %v4053_v4 = vpop.f32.mrf.mxu1 }
 0x5de   : > { %v4097_v54 = vadd.f32 %v4053_v4, %v3903_v34 }
 0x5e0   : > { %v4129_v24 = vadd.f32 %v4457_v41, %v4097_v54 }
 0x5e2   : > { %4161 = vst [vmem:[%s6545_s23 + $0xd0] sm:$0xff] %v4129_v24 }
 0x5e5   : > { %v4056_v7 = vpop.f32.mrf.mxu1 }
 0x5e6   : > { %v4098_v0 = vadd.f32 %v4056_v7, %v3904_v52 }
 0x5e8   : > { %v4130_v8 = vadd.f32 %v4458_v44, %v4098_v0 }
 0x5ea   : > { %4162 = vst [vmem:[%s6545_s23 + $0xd8] sm:$0xff] %v4130_v8 }
 0x5ed   : > { %v4059_v59 = vpop.f32.mrf.mxu1 }
 0x5ee   : > { %v4099_v26 = vadd.f32 %v4059_v59, %v3905_v57 }
 0x5f0   : > { %v4131_v27 = vadd.f32 %v4459_v63, %v4099_v26 }
 0x5f2   : > { %4163 = vst [vmem:[%s6545_s23 + $0xe0] sm:$0xff] %v4131_v27 }
 0x5f5   : > { %v4062_v33 = vpop.f32.mrf.mxu1 }
 0x5f6   : > { %v4100_v17 = vadd.f32 %v4062_v33, %v3906_v3 }
 0x5f8   : > { %v4132_v1 = vadd.f32 %v4460_v53, %v4100_v17 }
 0x5fa   : > { %4164 = vst [vmem:[%s6545_s23 + $0xe8] sm:$0xff] %v4132_v1 }
 0x5fd   : > { %v4065_v15 = vpop.f32.mrf.mxu1 }
 0x5fe   : > { %v4101_v21 = vadd.f32 %v4065_v15, %v3907_v23 }
 0x600   : > { %v4133_v19 = vadd.f32 %v4461_v38, %v4101_v21 }
 0x602   : > { %4165 = vst [vmem:[%s6545_s23 + $0xf0] sm:$0xff] %v4133_v19 }
 0x605   : > { %v4068_v58 = vpop.f32.mrf.mxu1 }
 0x606   : > { %v4102_v29 = vadd.f32 %v4068_v58, %v3908_v37 }
 0x608   : > { %v4134_v31 = vadd.f32 %v4462_v14, %v4102_v29 }
 0x60a   : > { %4166 = vst [vmem:[%s6545_s23 + $0xf8] sm:$0xff] %v4134_v31 }
 0x60b   : > { %4610 = shalt.err (!%p4607_p11)
}
 0x60c   : > { %s4665_s19 = smov 128   ;;  %s4666_s23 = smov 8  }
 0x60d   : > { %4353 = dma.vmem_to_hbm [thread:$0]  (%p4795_p3), %s4181_s10, 4096, %s4183_s14, %s4168_s28, %s4665_s19, %s4665_s19, %s4666_s23  }
 0x60e PF: > { %s4197_s1 = sand.u32 1, %s4645_s24   ;;  %p6765_p12 = scmp.ge.s32.totalorder %s4657_s27, 2 }
 0x60f   : > { %s4198_s30 = scalar_lea.sflag [#allocation6], %s4197_s1 }
 0x610   : > { %p4370_p13 = pnand %p6765_p12, %p4742_p6 }
 0x612   : > { %p4371_p0 = pneg %p4370_p13 }
 0x614   : > { %4640 = dma.done.wait (%p4371_p0), %s4198_s30, 4096  }
 0x615   : > { %4642 = vsyncadd (%p4371_p0), %s4198_s30, 4294963200  ;;  %p22_p5 = scmp.ge.s32.totalorder %s4782_s13, 4   ;;  %s6766_s24 = smov %s4649_s25 }
 0x616   : > { %s6767_s25 = smov %s4653_s26  ;;  %s6768_s26 = smov %s4791_s16 }
 0x617   : > { %s6769_s27 = smov %s4782_s13  ;;  %24 = sbr.rel (!%p22_p5) target bundleno = 9 (0x9), region = 127 }
 0x61c   :  { %4204 = vsyncpa [#allocation5], 1 }
 0x61d   :  { %4206 = vsyncpa [#allocation5 + $0x1], 1 }
 0x61e   :  { %4207 = vsyncpa [#allocation8], 1 }
 0x61f   :  { %4208 = vsyncpa [#allocation11], 1 }
 0x620   :  { %4209 = vsyncpa [#allocation6], 1 }
 0x621   :  { %4211 = vsyncpa [#allocation6 + $0x1], 1 }

</bundles_post_ra>
